<compile_context>
chip_gen: v7x
topology: tpu7x:2x2x1
jax: 0.10.0
libtpu: 0.0.40
codegen_flags: <defaults>
</compile_context>

<pallas_src>
import jax
import jax.numpy as jnp
import numpy as np
from jax import lax
from jax.experimental import pallas as pl
from jax.experimental.pallas import tpu as pltpu

K = 4          # conv kernel size
PAD = 1
NPH = 4        # deconv sub-pixel phases (2x2)
BN_EPS = 1e-5
NEG_SLOPE = 0.2
LANE = 128


# ---------------------------------------------------------------------------
# Small helpers
# ---------------------------------------------------------------------------
def _round_up(n, q):
    return ((n + q - 1) // q) * q


def _tn_target():
    """256-wide N tiles for the 2x256x256 MXUs (v6e/v7x); 128 elsewhere."""
    try:
        kind = jax.devices()[0].device_kind.lower()
    except Exception:
        return 256
    return 256 if ("v6" in kind or "v7" in kind) else 128


def _pick_tn(cp, target):
    """Largest multiple of 128 that divides cp and is <= target (cp % 128 == 0)."""
    t = max((min(target, cp) // LANE) * LANE, LANE)
    while cp % t != 0:
        t -= LANE
    return t


# ---------------------------------------------------------------------------
# Pallas kernels
# ---------------------------------------------------------------------------
def conv_relu_kernel(x_ref, w_ref, b_ref, o_ref):
    """Conv2d(k4, s2, p1) + bias + ReLU for one image / one Cout tile.

    x_ref : (1, Hs, Ws, 4*C)  space-to-depth of the zero-padded input
            (Hs = H/2 + 1, Ws = W/2 + 1, channel order (ph, pw, ci)).
    w_ref : (4, 4*C, tn)      per-(dh, dw) sub-kernels.
    b_ref : (1, tn)           f32 bias.
    o_ref : (1, Ho, Wo, tn)   conv1 output (MXU dtype).

    The 4 (dh, dw) taps are built in-kernel from static ref slices, so no
    im2col expansion ever touches HBM.
    """
    hs, ws = x_ref.shape[1], x_ref.shape[2]
    ho, wo = hs - 1, ws - 1
    kc = x_ref.shape[3]
    tn = o_ref.shape[3]
    acc = jnp.zeros((ho * wo, tn), jnp.float32)
    for dh in range(2):
        for dw in range(2):
            tap = x_ref[0, dh:dh + ho, dw:dw + wo, :].reshape(ho * wo, kc)
            acc = acc + jnp.dot(tap, w_ref[2 * dh + dw],
                                preferred_element_type=jnp.float32)
    y = jnp.maximum(acc + b_ref[...], 0.0)
    o_ref[0] = y.reshape(ho, wo, tn).astype(o_ref.dtype)


def deconv_stats_kernel(y_ref, w_ref, b_ref, z_ref, sum_ref, sq_ref):
    """ConvTranspose2d(k4, s2, p1) via the 4-phase (sub-pixel) decomposition
    for one image / one Cout tile, plus per-channel BN partial sums.

    y_ref  : (1, Ho+2, Wo+2, Cp)  conv1 output with a 1-pixel zero halo.
    w_ref  : (4, 4, Cp, tn)       [phase 2r+s, tap 2dh+dw] sub-kernels.
    b_ref  : (1, tn)              f32 bias.
    z_ref  : (1, 4, Ho*Wo, tn)    pre-BN activations (MXU dtype).
    sum_ref, sq_ref : (1, 1, tn)  f32 channel sums / sums of squares (exact,
                                  taken from the f32 accumulator).
    """
    ho = y_ref.shape[1] - 2
    wo = y_ref.shape[2] - 2
    cin = y_ref.shape[3]
    tn = z_ref.shape[3]
    m = ho * wo

    # Hoist the 9 distinct spatial windows (load/relayout once, reuse across phases).
    taps = {}
    for a in range(3):
        for c in range(3):
            taps[(a, c)] = y_ref[0, a:a + ho, c:c + wo, :].reshape(m, cin)

    s_acc = jnp.zeros((1, tn), jnp.float32)
    q_acc = jnp.zeros((1, tn), jnp.float32)
    for r in range(2):
        for s in range(2):
            acc = jnp.zeros((m, tn), jnp.float32)
            for dh in range(2):
                for dw in range(2):
                    acc = acc + jnp.dot(taps[(r + dh, s + dw)],
                                        w_ref[2 * r + s, 2 * dh + dw],
                                        preferred_element_type=jnp.float32)
            zval = acc + b_ref[...]
            z_ref[0, 2 * r + s] = zval.astype(z_ref.dtype)
            s_acc = s_acc + jnp.sum(zval, axis=0, keepdims=True)
            q_acc = q_acc + jnp.sum(zval * zval, axis=0, keepdims=True)
    sum_ref[0] = s_acc
    sq_ref[0] = q_acc


def bn_lrelu_kernel(z_ref, scale_ref, shift_ref, o_ref):
    """y = z * scale + shift, then LeakyReLU(0.2).  Full lane-dense blocks."""
    y = z_ref[0, 0].astype(jnp.float32) * scale_ref[...] + shift_ref[...]
    o_ref[0, 0] = jnp.where(y > 0, y, NEG_SLOPE * y)


# ---------------------------------------------------------------------------
# Bottleneck forward
# ---------------------------------------------------------------------------
def bottleneck_forward(x_nchw, params, *, mxu_dtype=jnp.bfloat16):
    """x_nchw: (B, C, H, W) float32 -> (B, C, H, W) float32.

    mxu_dtype=bfloat16 is the default (f32 accumulation / f32 epilogues);
    pass jnp.float32 as a debug path.
    """
    w1, b1, w2_ct, b2, gamma, beta = params
    B, C, H, W = x_nchw.shape
    assert H % 2 == 0 and W % 2 == 0, "Bottleneck needs even spatial dims"
    Ho, Wo = H // 2, W // 2
    Hs, Ws = Ho + 1, Wo + 1
    M = Ho * Wo
    Cp = _round_up(C, LANE)
    # TODO(synk): for C << 128 the lane padding wastes up to Cp/C of MXU and
    # HBM work; fold spatial factors into the lane axis (or fall back to
    # lax.conv) below a channel threshold.
    tn = _pick_tn(Cp, _tn_target())
    gn = Cp // tn
    # TODO(synk): with B == 1 and gn == 1 the grid has a single parallel block,
    # so only one v7x TensorCore is used; split output rows in that case.

    # ---- input transform: pad + space-to-depth(2) + NCHW->NHWC -------------
    # One fused XLA transpose over 1x the input bytes; replaces the old 16x
    # im2col expansion.
    xp = jnp.pad(x_nchw, ((0, 0), (0, 0), (PAD, PAD), (PAD, PAD)))
    x_sd = xp.reshape(B, C, Hs, 2, Ws, 2)
    x_sd = jnp.transpose(x_sd, (0, 2, 4, 3, 5, 1)).reshape(B, Hs, Ws, 4 * C)
    x_sd = x_sd.astype(mxu_dtype)

    # Conv2d weight (Cout, Cin, kh, kw) -> 4 space-to-depth sub-kernels
    # (rows ordered (ph, pw, ci) to match x_sd's channel packing).
    w1_k = jnp.transpose(w1, (2, 3, 1, 0))                     # (kh, kw, ci, co)
    w1_taps = [w1_k[2 * dh:2 * dh + 2, 2 * dw:2 * dw + 2].reshape(4 * C, C)
               for dh in range(2) for dw in range(2)]
    w1_sd = jnp.stack(w1_taps, axis=0)                         # (4, 4C, C)
    w1_sd = jnp.pad(w1_sd, ((0, 0), (0, 0), (0, Cp - C))).astype(mxu_dtype)
    b1_p = jnp.pad(b1, (0, Cp - C)).reshape(1, Cp).astype(jnp.float32)

    # ---- stage 1: Conv2d + bias + ReLU --------------------------------------
    y1 = pl.pallas_call(
        conv_relu_kernel,
        out_shape=jax.ShapeDtypeStruct((B, Ho, Wo, Cp), mxu_dtype),
        grid_spec=pltpu.PrefetchScalarGridSpec(
            num_scalar_prefetch=0,
            grid=(B, gn),
            in_specs=[pl.BlockSpec((1, Hs, Ws, 4 * C), lambda b, j: (b, 0, 0, 0)),
                      pl.BlockSpec((4, 4 * C, tn), lambda b, j: (0, 0, j)),
                      pl.BlockSpec((1, tn), lambda b, j: (0, j))],
            out_specs=pl.BlockSpec((1, Ho, Wo, tn), lambda b, j: (b, 0, 0, j))),
        compiler_params=pltpu.CompilerParams(
            dimension_semantics=("parallel", "parallel")),
    )(x_sd, w1_sd, b1_p)

    # 1-pixel zero halo for the transposed conv (small tensor, single pad pass).
    # TODO(synk): fold this halo into the stage-1 output store to save a pass.
    y1_halo = jnp.pad(y1, ((0, 0), (1, 1), (1, 1), (0, 0)))

    # ConvTranspose2d weight (Cin, Cout, kh, kw) -> (phase, tap) sub-kernels:
    #   out[2i+r, 2j+s] = sum_{dh,dw} y1_halo[i+r+dh, j+s+dw]
    #                                 @ w2_ct[:, :, 3-r-2dh, 3-s-2dw]
    w2_list = []
    for r in range(2):
        for s in range(2):
            w2_list.append(jnp.stack(
                [w2_ct[:, :, 3 - r - 2 * dh, 3 - s - 2 * dw]
                 for dh in range(2) for dw in range(2)], axis=0))
    w2_pt = jnp.stack(w2_list, axis=0)                          # (4, 4, Cin, Cout)
    w2_pt = jnp.pad(w2_pt, ((0, 0), (0, 0), (0, Cp - C), (0, Cp - C)))
    w2_pt = w2_pt.astype(mxu_dtype)
    b2_p = jnp.pad(b2, (0, Cp - C)).reshape(1, Cp).astype(jnp.float32)

    # ---- stage 2: ConvTranspose2d (4 sub-pixel phases) + BN partial sums ----
    z, sums, sumsq = pl.pallas_call(
        deconv_stats_kernel,
        out_shape=(jax.ShapeDtypeStruct((B, NPH, M, Cp), mxu_dtype),
                   jax.ShapeDtypeStruct((B, 1, Cp), jnp.float32),
                   jax.ShapeDtypeStruct((B, 1, Cp), jnp.float32)),
        grid_spec=pltpu.PrefetchScalarGridSpec(
            num_scalar_prefetch=0,
            grid=(B, gn),
            in_specs=[pl.BlockSpec((1, Ho + 2, Wo + 2, Cp),
                                   lambda b, j: (b, 0, 0, 0)),
                      pl.BlockSpec((NPH, NPH, Cp, tn), lambda b, j: (0, 0, 0, j)),
                      pl.BlockSpec((1, tn), lambda b, j: (0, j))],
            out_specs=(pl.BlockSpec((1, NPH, M, tn), lambda b, j: (b, 0, 0, j)),
                       pl.BlockSpec((1, 1, tn), lambda b, j: (b, 0, j)),
                       pl.BlockSpec((1, 1, tn), lambda b, j: (b, 0, j)))),
        compiler_params=pltpu.CompilerParams(
            dimension_semantics=("parallel", "parallel")),
    )(y1_halo, w2_pt, b2_p)

    # ---- BatchNorm2d batch statistics (training mode, biased variance) ------
    count = float(B * NPH * M)                                  # = B * H * W
    mean = jnp.sum(sums, axis=(0, 1)) / count
    var = jnp.sum(sumsq, axis=(0, 1)) / count - mean * mean
    # TODO(synk): E[z^2]-mean^2 in f32 can cancel for huge activations; switch
    # to per-tile-centered sums if that ever matters.
    var = jnp.maximum(var, 0.0)
    gamma_p = jnp.pad(gamma, (0, Cp - C)).astype(jnp.float32)   # padded chans: 0
    beta_p = jnp.pad(beta, (0, Cp - C)).astype(jnp.float32)
    scale = (gamma_p * lax.rsqrt(var + BN_EPS)).reshape(1, Cp)
    shift = (beta_p - mean * scale[0]).reshape(1, Cp)

    # ---- stage 3: affine + LeakyReLU(0.2), full lane-dense blocks -----------
    # TODO(synk): could alias z in place if a bf16 final output were acceptable.
    out4 = pl.pallas_call(
        bn_lrelu_kernel,
        out_shape=jax.ShapeDtypeStruct((B, NPH, M, Cp), jnp.float32),
        grid_spec=pltpu.PrefetchScalarGridSpec(
            num_scalar_prefetch=0,
            grid=(B, NPH),
            in_specs=[pl.BlockSpec((1, 1, M, Cp), lambda b, p: (b, p, 0, 0)),
                      pl.BlockSpec((1, Cp), lambda b, p: (0, 0)),
                      pl.BlockSpec((1, Cp), lambda b, p: (0, 0))],
            out_specs=pl.BlockSpec((1, 1, M, Cp), lambda b, p: (b, p, 0, 0))),
        compiler_params=pltpu.CompilerParams(
            dimension_semantics=("parallel", "parallel")),
    )(z, scale, shift)

    # ---- output transform: phase interleave + NHWC->NCHW in ONE transpose ---
    out6 = out4.reshape(B, 2, 2, Ho, Wo, Cp)[..., :C]           # (b, r, s, i, j, c)
    out = jnp.transpose(out6, (0, 5, 3, 1, 4, 2)).reshape(B, C, H, W)
    return out


# ---------------------------------------------------------------------------
# Pure-JAX reference (for self-check)
# ---------------------------------------------------------------------------
def bottleneck_reference(x_nchw, params):
    w1, b1, w2_ct, b2, gamma, beta = params
    x = jnp.transpose(x_nchw, (0, 2, 3, 1))
    w1_hwio = jnp.transpose(w1, (2, 3, 1, 0))
    y1 = lax.conv_general_dilated(
        x, w1_hwio, window_strides=(2, 2), padding=[(1, 1), (1, 1)],
        dimension_numbers=("NHWC", "HWIO", "NHWC"))
    y1 = jnp.maximum(y1 + b1.reshape(1, 1, 1, -1), 0.0)

    w2_eq = jnp.flip(jnp.transpose(w2_ct, (1, 0, 2, 3)), axis=(2, 3))
    w2_hwio = jnp.transpose(w2_eq, (2, 3, 1, 0))
    z = lax.conv_general_dilated(
        y1, w2_hwio, window_strides=(1, 1), padding=[(2, 2), (2, 2)],
        lhs_dilation=(2, 2), dimension_numbers=("NHWC", "HWIO", "NHWC"))
    z = z + b2.reshape(1, 1, 1, -1)

    mean = jnp.mean(z, axis=(0, 1, 2), keepdims=True)
    var = jnp.mean((z - mean) ** 2, axis=(0, 1, 2), keepdims=True)
    y = (z - mean) * lax.rsqrt(var + BN_EPS)
    y = y * gamma.reshape(1, 1, 1, -1) + beta.reshape(1, 1, 1, -1)
    y = jnp.where(y > 0, y, NEG_SLOPE * y)
    return jnp.transpose(y, (0, 3, 1, 2))


# ---------------------------------------------------------------------------
if __name__ == "__main__":
    B, C, H, W = 2, 4, 16, 16
    key = jax.random.PRNGKey(0)
    kx, k1, k2, k3, k4, k5, k6 = jax.random.split(key, 7)

    x = jax.random.normal(kx, (B, C, H, W), jnp.float32)

    # Synthetic parameters (shapes follow the nn.Module):
    w1 = 0.1 * jax.random.normal(k1, (C, C, K, K), jnp.float32)   # Conv2d weight
    b1 = 0.1 * jax.random.normal(k2, (C,), jnp.float32)           # Conv2d bias
    w2 = 0.1 * jax.random.normal(k3, (C, C, K, K), jnp.float32)   # ConvTranspose2d weight (Cin,Cout,kh,kw)
    b2 = 0.1 * jax.random.normal(k4, (C,), jnp.float32)           # ConvTranspose2d bias
    gamma = 1.0 + 0.1 * jax.random.normal(k5, (C,), jnp.float32)  # BatchNorm2d weight
    beta = 0.1 * jax.random.normal(k6, (C,), jnp.float32)         # BatchNorm2d bias
    params = (w1, b1, w2, b2, gamma, beta)

    ref = jax.block_until_ready(bottleneck_reference(x, params))

    # Default path: bf16 MXU operands, f32 accumulation/epilogues.
    out = jax.block_until_ready(jax.jit(bottleneck_forward)(x, params))
    assert out.shape == (B, C, H, W)
    np.testing.assert_allclose(np.asarray(out), np.asarray(ref), rtol=5e-2, atol=5e-2)

    # f32 debug path.
    fwd_f32 = jax.jit(lambda xx, pp: bottleneck_forward(xx, pp, mxu_dtype=jnp.float32))
    out_f32 = jax.block_until_ready(fwd_f32(x, params))
    np.testing.assert_allclose(np.asarray(out_f32), np.asarray(ref), rtol=5e-2, atol=5e-2)

    print("KERNEL_OK")
</pallas_src>

<mosaic_0001>
module attributes {stable_mosaic.version = 11 : i64} {
  func.func @conv_relu_kernel(%arg0: i32, %arg1: i32, %arg2: memref<1x9x9x16xbf16, #tpu.memory_space<vmem>>, %arg3: memref<4x16x128xbf16, #tpu.memory_space<vmem>>, %arg4: memref<1x128xf32, #tpu.memory_space<vmem>>, %arg5: memref<1x8x8x128xbf16, #tpu.memory_space<vmem>>) attributes {dimension_semantics = [#tpu.dimension_semantics<parallel>, #tpu.dimension_semantics<parallel>], iteration_bounds = array<i64: 2, 1>, scalar_prefetch = 0 : i64, scratch_operands = 0 : i64, tpu.core_type = #tpu.core_type<tc>, window_params = [{transform_indices = @transform_0, window_bounds = array<i64: 1, 9, 9, 16>}, {transform_indices = @transform_1, window_bounds = array<i64: 4, 16, 128>}, {transform_indices = @transform_2, window_bounds = array<i64: 1, 128>}, {transform_indices = @transform_3, window_bounds = array<i64: 1, 8, 8, 128>}]} {
    %cst = arith.constant 0.000000e+00 : f32
    %0 = vector.broadcast %cst : f32 to vector<64x128xf32>
    %c0 = arith.constant 0 : index
    %c0_0 = arith.constant 0 : index
    %c0_1 = arith.constant 0 : index
    %c0_2 = arith.constant 0 : index
    %1 = vector.load %arg2[%c0, %c0_0, %c0_1, %c0_2] : memref<1x9x9x16xbf16, #tpu.memory_space<vmem>>, vector<1x8x8x16xbf16>
    %2 = vector.shape_cast %1 : vector<1x8x8x16xbf16> to vector<8x8x16xbf16>
    %3 = vector.shape_cast %2 : vector<8x8x16xbf16> to vector<64x16xbf16>
    %c0_3 = arith.constant 0 : index
    %c0_4 = arith.constant 0 : index
    %c0_5 = arith.constant 0 : index
    %4 = vector.load %arg3[%c0_3, %c0_4, %c0_5] : memref<4x16x128xbf16, #tpu.memory_space<vmem>>, vector<1x16x128xbf16>
    %5 = vector.shape_cast %4 : vector<1x16x128xbf16> to vector<16x128xbf16>
    %cst_6 = arith.constant dense<0.000000e+00> : vector<64x128xf32>
    %6 = tpu.matmul %3, %5, %cst_6 {dimension_numbers = #tpu.dot_dimension_numbers<[1], [0], [0], [1], [0, 0, 1, 1], [], []>} : vector<64x16xbf16>, vector<16x128xbf16>, vector<64x128xf32> -> vector<64x128xf32>
    %7 = arith.addf %0, %6 : vector<64x128xf32>
    %c0_7 = arith.constant 0 : index
    %c0_8 = arith.constant 0 : index
    %c1 = arith.constant 1 : index
    %c0_9 = arith.constant 0 : index
    %8 = vector.load %arg2[%c0_7, %c0_8, %c1, %c0_9] : memref<1x9x9x16xbf16, #tpu.memory_space<vmem>>, vector<1x8x8x16xbf16>
    %9 = vector.shape_cast %8 : vector<1x8x8x16xbf16> to vector<8x8x16xbf16>
    %10 = vector.shape_cast %9 : vector<8x8x16xbf16> to vector<64x16xbf16>
    %c1_10 = arith.constant 1 : index
    %c0_11 = arith.constant 0 : index
    %c0_12 = arith.constant 0 : index
    %11 = vector.load %arg3[%c1_10, %c0_11, %c0_12] : memref<4x16x128xbf16, #tpu.memory_space<vmem>>, vector<1x16x128xbf16>
    %12 = vector.shape_cast %11 : vector<1x16x128xbf16> to vector<16x128xbf16>
    %cst_13 = arith.constant dense<0.000000e+00> : vector<64x128xf32>
    %13 = tpu.matmul %10, %12, %cst_13 {dimension_numbers = #tpu.dot_dimension_numbers<[1], [0], [0], [1], [0, 0, 1, 1], [], []>} : vector<64x16xbf16>, vector<16x128xbf16>, vector<64x128xf32> -> vector<64x128xf32>
    %14 = arith.addf %7, %13 : vector<64x128xf32>
    %c0_14 = arith.constant 0 : index
    %c1_15 = arith.constant 1 : index
    %c0_16 = arith.constant 0 : index
    %c0_17 = arith.constant 0 : index
    %15 = vector.load %arg2[%c0_14, %c1_15, %c0_16, %c0_17] : memref<1x9x9x16xbf16, #tpu.memory_space<vmem>>, vector<1x8x8x16xbf16>
    %16 = vector.shape_cast %15 : vector<1x8x8x16xbf16> to vector<8x8x16xbf16>
    %17 = vector.shape_cast %16 : vector<8x8x16xbf16> to vector<64x16xbf16>
    %c2 = arith.constant 2 : index
    %c0_18 = arith.constant 0 : index
    %c0_19 = arith.constant 0 : index
    %18 = vector.load %arg3[%c2, %c0_18, %c0_19] : memref<4x16x128xbf16, #tpu.memory_space<vmem>>, vector<1x16x128xbf16>
    %19 = vector.shape_cast %18 : vector<1x16x128xbf16> to vector<16x128xbf16>
    %cst_20 = arith.constant dense<0.000000e+00> : vector<64x128xf32>
    %20 = tpu.matmul %17, %19, %cst_20 {dimension_numbers = #tpu.dot_dimension_numbers<[1], [0], [0], [1], [0, 0, 1, 1], [], []>} : vector<64x16xbf16>, vector<16x128xbf16>, vector<64x128xf32> -> vector<64x128xf32>
    %21 = arith.addf %14, %20 : vector<64x128xf32>
    %c0_21 = arith.constant 0 : index
    %c1_22 = arith.constant 1 : index
    %c1_23 = arith.constant 1 : index
    %c0_24 = arith.constant 0 : index
    %22 = vector.load %arg2[%c0_21, %c1_22, %c1_23, %c0_24] : memref<1x9x9x16xbf16, #tpu.memory_space<vmem>>, vector<1x8x8x16xbf16>
    %23 = vector.shape_cast %22 : vector<1x8x8x16xbf16> to vector<8x8x16xbf16>
    %24 = vector.shape_cast %23 : vector<8x8x16xbf16> to vector<64x16xbf16>
    %c3 = arith.constant 3 : index
    %c0_25 = arith.constant 0 : index
    %c0_26 = arith.constant 0 : index
    %25 = vector.load %arg3[%c3, %c0_25, %c0_26] : memref<4x16x128xbf16, #tpu.memory_space<vmem>>, vector<1x16x128xbf16>
    %26 = vector.shape_cast %25 : vector<1x16x128xbf16> to vector<16x128xbf16>
    %cst_27 = arith.constant dense<0.000000e+00> : vector<64x128xf32>
    %27 = tpu.matmul %24, %26, %cst_27 {dimension_numbers = #tpu.dot_dimension_numbers<[1], [0], [0], [1], [0, 0, 1, 1], [], []>} : vector<64x16xbf16>, vector<16x128xbf16>, vector<64x128xf32> -> vector<64x128xf32>
    %28 = arith.addf %21, %27 : vector<64x128xf32>
    %c0_28 = arith.constant 0 : index
    %c0_29 = arith.constant 0 : index
    %29 = vector.load %arg4[%c0_28, %c0_29] : memref<1x128xf32, #tpu.memory_space<vmem>>, vector<1x128xf32>
    %30 = vector.broadcast %29 : vector<1x128xf32> to vector<64x128xf32>
    %31 = arith.addf %28, %30 : vector<64x128xf32>
    %cst_30 = arith.constant 0.000000e+00 : f32
    %32 = vector.broadcast %cst_30 : f32 to vector<64x128xf32>
    %33 = arith.maximumf %31, %32 : vector<64x128xf32>
    %34 = vector.shape_cast %33 : vector<64x128xf32> to vector<8x8x128xf32>
    %35 = arith.truncf %34 : vector<8x8x128xf32> to vector<8x8x128xbf16>
    %c0_31 = arith.constant 0 : index
    %c0_32 = arith.constant 0 : index
    %c0_33 = arith.constant 0 : index
    %c0_34 = arith.constant 0 : index
    %36 = vector.load %arg5[%c0_31, %c0_32, %c0_33, %c0_34] : memref<1x8x8x128xbf16, #tpu.memory_space<vmem>>, vector<1x8x8x128xbf16>
    %37 = vector.shape_cast %36 : vector<1x8x8x128xbf16> to vector<8x8x128xbf16>
    %38 = vector.shape_cast %35 : vector<8x8x128xbf16> to vector<1x8x8x128xbf16>
    tpu.vector_store %arg5[%c0_31, %c0_32, %c0_33, %c0_34], %38 {strides = array<i32>} : memref<1x8x8x128xbf16, #tpu.memory_space<vmem>>, vector<1x8x8x128xbf16>,
    return
  }
  func.func @transform_0(%arg0: i32, %arg1: i32) -> (i32, i32, i32, i32) {
    %c0_i32 = arith.constant 0 : i32
    %c0_i32_0 = arith.constant 0 : i32
    %c0_i32_1 = arith.constant 0 : i32
    %c0_i32_2 = arith.constant 0 : i32
    return %arg0, %c0_i32, %c0_i32_0, %c0_i32_1 : i32, i32, i32, i32
  }
  func.func @transform_1(%arg0: i32, %arg1: i32) -> (i32, i32, i32) {
    %c0_i32 = arith.constant 0 : i32
    %c0_i32_0 = arith.constant 0 : i32
    %c0_i32_1 = arith.constant 0 : i32
    return %c0_i32, %c0_i32_0, %arg1 : i32, i32, i32
  }
  func.func @transform_2(%arg0: i32, %arg1: i32) -> (i32, i32) {
    %c0_i32 = arith.constant 0 : i32
    %c0_i32_0 = arith.constant 0 : i32
    return %c0_i32, %arg1 : i32, i32
  }
  func.func @transform_3(%arg0: i32, %arg1: i32) -> (i32, i32, i32, i32) {
    %c0_i32 = arith.constant 0 : i32
    %c0_i32_0 = arith.constant 0 : i32
    %c0_i32_1 = arith.constant 0 : i32
    return %arg0, %c0_i32, %c0_i32_0, %arg1 : i32, i32, i32, i32
  }
}

module attributes {stable_mosaic.version = 11 : i64} {
  func.func @deconv_stats_kernel(%arg0: i32, %arg1: i32, %arg2: memref<1x10x10x128xbf16, #tpu.memory_space<vmem>>, %arg3: memref<4x4x128x128xbf16, #tpu.memory_space<vmem>>, %arg4: memref<1x128xf32, #tpu.memory_space<vmem>>, %arg5: memref<1x4x64x128xbf16, #tpu.memory_space<vmem>>, %arg6: memref<1x1x128xf32, #tpu.memory_space<vmem>>, %arg7: memref<1x1x128xf32, #tpu.memory_space<vmem>>) attributes {dimension_semantics = [#tpu.dimension_semantics<parallel>, #tpu.dimension_semantics<parallel>], iteration_bounds = array<i64: 2, 1>, scalar_prefetch = 0 : i64, scratch_operands = 0 : i64, tpu.core_type = #tpu.core_type<tc>, window_params = [{transform_indices = @transform_0, window_bounds = array<i64: 1, 10, 10, 128>}, {transform_indices = @transform_1, window_bounds = array<i64: 4, 4, 128, 128>}, {transform_indices = @transform_2, window_bounds = array<i64: 1, 128>}, {transform_indices = @transform_3, window_bounds = array<i64: 1, 4, 64, 128>}, {transform_indices = @transform_4, window_bounds = array<i64: 1, 1, 128>}, {transform_indices = @transform_5, window_bounds = array<i64: 1, 1, 128>}]} {
    %c0 = arith.constant 0 : index
    %c0_0 = arith.constant 0 : index
    %c0_1 = arith.constant 0 : index
    %c0_2 = arith.constant 0 : index
    %0 = vector.load %arg2[%c0, %c0_0, %c0_1, %c0_2] : memref<1x10x10x128xbf16, #tpu.memory_space<vmem>>, vector<1x8x8x128xbf16>
    %1 = vector.shape_cast %0 : vector<1x8x8x128xbf16> to vector<8x8x128xbf16>
    %2 = vector.shape_cast %1 : vector<8x8x128xbf16> to vector<64x128xbf16>
    %c0_3 = arith.constant 0 : index
    %c0_4 = arith.constant 0 : index
    %c1 = arith.constant 1 : index
    %c0_5 = arith.constant 0 : index
    %3 = vector.load %arg2[%c0_3, %c0_4, %c1, %c0_5] : memref<1x10x10x128xbf16, #tpu.memory_space<vmem>>, vector<1x8x8x128xbf16>
    %4 = vector.shape_cast %3 : vector<1x8x8x128xbf16> to vector<8x8x128xbf16>
    %5 = vector.shape_cast %4 : vector<8x8x128xbf16> to vector<64x128xbf16>
    %c0_6 = arith.constant 0 : index
    %c0_7 = arith.constant 0 : index
    %c2 = arith.constant 2 : index
    %c0_8 = arith.constant 0 : index
    %6 = vector.load %arg2[%c0_6, %c0_7, %c2, %c0_8] : memref<1x10x10x128xbf16, #tpu.memory_space<vmem>>, vector<1x8x8x128xbf16>
    %7 = vector.shape_cast %6 : vector<1x8x8x128xbf16> to vector<8x8x128xbf16>
    %8 = vector.shape_cast %7 : vector<8x8x128xbf16> to vector<64x128xbf16>
    %c0_9 = arith.constant 0 : index
    %c1_10 = arith.constant 1 : index
    %c0_11 = arith.constant 0 : index
    %c0_12 = arith.constant 0 : index
    %9 = vector.load %arg2[%c0_9, %c1_10, %c0_11, %c0_12] : memref<1x10x10x128xbf16, #tpu.memory_space<vmem>>, vector<1x8x8x128xbf16>
    %10 = vector.shape_cast %9 : vector<1x8x8x128xbf16> to vector<8x8x128xbf16>
    %11 = vector.shape_cast %10 : vector<8x8x128xbf16> to vector<64x128xbf16>
    %c0_13 = arith.constant 0 : index
    %c1_14 = arith.constant 1 : index
    %c1_15 = arith.constant 1 : index
    %c0_16 = arith.constant 0 : index
    %12 = vector.load %arg2[%c0_13, %c1_14, %c1_15, %c0_16] : memref<1x10x10x128xbf16, #tpu.memory_space<vmem>>, vector<1x8x8x128xbf16>
    %13 = vector.shape_cast %12 : vector<1x8x8x128xbf16> to vector<8x8x128xbf16>
    %14 = vector.shape_cast %13 : vector<8x8x128xbf16> to vector<64x128xbf16>
    %c0_17 = arith.constant 0 : index
    %c1_18 = arith.constant 1 : index
    %c2_19 = arith.constant 2 : index
    %c0_20 = arith.constant 0 : index
    %15 = vector.load %arg2[%c0_17, %c1_18, %c2_19, %c0_20] : memref<1x10x10x128xbf16, #tpu.memory_space<vmem>>, vector<1x8x8x128xbf16>
    %16 = vector.shape_cast %15 : vector<1x8x8x128xbf16> to vector<8x8x128xbf16>
    %17 = vector.shape_cast %16 : vector<8x8x128xbf16> to vector<64x128xbf16>
    %c0_21 = arith.constant 0 : index
    %c2_22 = arith.constant 2 : index
    %c0_23 = arith.constant 0 : index
    %c0_24 = arith.constant 0 : index
    %18 = vector.load %arg2[%c0_21, %c2_22, %c0_23, %c0_24] : memref<1x10x10x128xbf16, #tpu.memory_space<vmem>>, vector<1x8x8x128xbf16>
    %19 = vector.shape_cast %18 : vector<1x8x8x128xbf16> to vector<8x8x128xbf16>
    %20 = vector.shape_cast %19 : vector<8x8x128xbf16> to vector<64x128xbf16>
    %c0_25 = arith.constant 0 : index
    %c2_26 = arith.constant 2 : index
    %c1_27 = arith.constant 1 : index
    %c0_28 = arith.constant 0 : index
    %21 = vector.load %arg2[%c0_25, %c2_26, %c1_27, %c0_28] : memref<1x10x10x128xbf16, #tpu.memory_space<vmem>>, vector<1x8x8x128xbf16>
    %22 = vector.shape_cast %21 : vector<1x8x8x128xbf16> to vector<8x8x128xbf16>
    %23 = vector.shape_cast %22 : vector<8x8x128xbf16> to vector<64x128xbf16>
    %c0_29 = arith.constant 0 : index
    %c2_30 = arith.constant 2 : index
    %c2_31 = arith.constant 2 : index
    %c0_32 = arith.constant 0 : index
    %24 = vector.load %arg2[%c0_29, %c2_30, %c2_31, %c0_32] : memref<1x10x10x128xbf16, #tpu.memory_space<vmem>>, vector<1x8x8x128xbf16>
    %25 = vector.shape_cast %24 : vector<1x8x8x128xbf16> to vector<8x8x128xbf16>
    %26 = vector.shape_cast %25 : vector<8x8x128xbf16> to vector<64x128xbf16>
    %cst = arith.constant 0.000000e+00 : f32
    %27 = vector.broadcast %cst : f32 to vector<1x128xf32>
    %cst_33 = arith.constant 0.000000e+00 : f32
    %28 = vector.broadcast %cst_33 : f32 to vector<1x128xf32>
    %cst_34 = arith.constant 0.000000e+00 : f32
    %29 = vector.broadcast %cst_34 : f32 to vector<64x128xf32>
    %c0_35 = arith.constant 0 : index
    %c0_36 = arith.constant 0 : index
    %c0_37 = arith.constant 0 : index
    %c0_38 = arith.constant 0 : index
    %30 = vector.load %arg3[%c0_35, %c0_36, %c0_37, %c0_38] : memref<4x4x128x128xbf16, #tpu.memory_space<vmem>>, vector<1x1x128x128xbf16>
    %31 = vector.shape_cast %30 : vector<1x1x128x128xbf16> to vector<128x128xbf16>
    %cst_39 = arith.constant dense<0.000000e+00> : vector<64x128xf32>
    %32 = tpu.matmul %2, %31, %cst_39 {dimension_numbers = #tpu.dot_dimension_numbers<[1], [0], [0], [1], [0, 0, 1, 1], [], []>} : vector<64x128xbf16>, vector<128x128xbf16>, vector<64x128xf32> -> vector<64x128xf32>
    %33 = arith.addf %29, %32 : vector<64x128xf32>
    %c0_40 = arith.constant 0 : index
    %c1_41 = arith.constant 1 : index
    %c0_42 = arith.constant 0 : index
    %c0_43 = arith.constant 0 : index
    %34 = vector.load %arg3[%c0_40, %c1_41, %c0_42, %c0_43] : memref<4x4x128x128xbf16, #tpu.memory_space<vmem>>, vector<1x1x128x128xbf16>
    %35 = vector.shape_cast %34 : vector<1x1x128x128xbf16> to vector<128x128xbf16>
    %cst_44 = arith.constant dense<0.000000e+00> : vector<64x128xf32>
    %36 = tpu.matmul %5, %35, %cst_44 {dimension_numbers = #tpu.dot_dimension_numbers<[1], [0], [0], [1], [0, 0, 1, 1], [], []>} : vector<64x128xbf16>, vector<128x128xbf16>, vector<64x128xf32> -> vector<64x128xf32>
    %37 = arith.addf %33, %36 : vector<64x128xf32>
    %c0_45 = arith.constant 0 : index
    %c2_46 = arith.constant 2 : index
    %c0_47 = arith.constant 0 : index
    %c0_48 = arith.constant 0 : index
    %38 = vector.load %arg3[%c0_45, %c2_46, %c0_47, %c0_48] : memref<4x4x128x128xbf16, #tpu.memory_space<vmem>>, vector<1x1x128x128xbf16>
    %39 = vector.shape_cast %38 : vector<1x1x128x128xbf16> to vector<128x128xbf16>
    %cst_49 = arith.constant dense<0.000000e+00> : vector<64x128xf32>
    %40 = tpu.matmul %11, %39, %cst_49 {dimension_numbers = #tpu.dot_dimension_numbers<[1], [0], [0], [1], [0, 0, 1, 1], [], []>} : vector<64x128xbf16>, vector<128x128xbf16>, vector<64x128xf32> -> vector<64x128xf32>
    %41 = arith.addf %37, %40 : vector<64x128xf32>
    %c0_50 = arith.constant 0 : index
    %c3 = arith.constant 3 : index
    %c0_51 = arith.constant 0 : index
    %c0_52 = arith.constant 0 : index
    %42 = vector.load %arg3[%c0_50, %c3, %c0_51, %c0_52] : memref<4x4x128x128xbf16, #tpu.memory_space<vmem>>, vector<1x1x128x128xbf16>
    %43 = vector.shape_cast %42 : vector<1x1x128x128xbf16> to vector<128x128xbf16>
    %cst_53 = arith.constant dense<0.000000e+00> : vector<64x128xf32>
    %44 = tpu.matmul %14, %43, %cst_53 {dimension_numbers = #tpu.dot_dimension_numbers<[1], [0], [0], [1], [0, 0, 1, 1], [], []>} : vector<64x128xbf16>, vector<128x128xbf16>, vector<64x128xf32> -> vector<64x128xf32>
    %45 = arith.addf %41, %44 : vector<64x128xf32>
    %c0_54 = arith.constant 0 : index
    %c0_55 = arith.constant 0 : index
    %46 = vector.load %arg4[%c0_54, %c0_55] : memref<1x128xf32, #tpu.memory_space<vmem>>, vector<1x128xf32>
    %47 = vector.broadcast %46 : vector<1x128xf32> to vector<64x128xf32>
    %48 = arith.addf %45, %47 : vector<64x128xf32>
    %49 = arith.truncf %48 : vector<64x128xf32> to vector<64x128xbf16>
    %c0_56 = arith.constant 0 : index
    %c0_57 = arith.constant 0 : index
    %c0_58 = arith.constant 0 : index
    %c0_59 = arith.constant 0 : index
    %50 = vector.load %arg5[%c0_56, %c0_57, %c0_58, %c0_59] : memref<1x4x64x128xbf16, #tpu.memory_space<vmem>>, vector<1x1x64x128xbf16>
    %51 = vector.shape_cast %50 : vector<1x1x64x128xbf16> to vector<64x128xbf16>
    %52 = vector.shape_cast %49 : vector<64x128xbf16> to vector<1x1x64x128xbf16>
    tpu.vector_store %arg5[%c0_56, %c0_57, %c0_58, %c0_59], %52 {strides = array<i32>} : memref<1x4x64x128xbf16, #tpu.memory_space<vmem>>, vector<1x1x64x128xbf16>,
    %cst_60 = arith.constant dense<0.000000e+00> : vector<128xf32>
    %53 = vector.multi_reduction <add>, %48, %cst_60 [0] : vector<64x128xf32> to vector<128xf32>
    %54 = vector.shape_cast %53 : vector<128xf32> to vector<1x128xf32>
    %55 = arith.addf %27, %54 : vector<1x128xf32>
    %56 = arith.mulf %48, %48 : vector<64x128xf32>
    %cst_61 = arith.constant dense<0.000000e+00> : vector<128xf32>
    %57 = vector.multi_reduction <add>, %56, %cst_61 [0] : vector<64x128xf32> to vector<128xf32>
    %58 = vector.shape_cast %57 : vector<128xf32> to vector<1x128xf32>
    %59 = arith.addf %28, %58 : vector<1x128xf32>
    %cst_62 = arith.constant 0.000000e+00 : f32
    %60 = vector.broadcast %cst_62 : f32 to vector<64x128xf32>
    %c1_63 = arith.constant 1 : index
    %c0_64 = arith.constant 0 : index
    %c0_65 = arith.constant 0 : index
    %c0_66 = arith.constant 0 : index
    %61 = vector.load %arg3[%c1_63, %c0_64, %c0_65, %c0_66] : memref<4x4x128x128xbf16, #tpu.memory_space<vmem>>, vector<1x1x128x128xbf16>
    %62 = vector.shape_cast %61 : vector<1x1x128x128xbf16> to vector<128x128xbf16>
    %cst_67 = arith.constant dense<0.000000e+00> : vector<64x128xf32>
    %63 = tpu.matmul %5, %62, %cst_67 {dimension_numbers = #tpu.dot_dimension_numbers<[1], [0], [0], [1], [0, 0, 1, 1], [], []>} : vector<64x128xbf16>, vector<128x128xbf16>, vector<64x128xf32> -> vector<64x128xf32>
    %64 = arith.addf %60, %63 : vector<64x128xf32>
    %c1_68 = arith.constant 1 : index
    %c1_69 = arith.constant 1 : index
    %c0_70 = arith.constant 0 : index
    %c0_71 = arith.constant 0 : index
    %65 = vector.load %arg3[%c1_68, %c1_69, %c0_70, %c0_71] : memref<4x4x128x128xbf16, #tpu.memory_space<vmem>>, vector<1x1x128x128xbf16>
    %66 = vector.shape_cast %65 : vector<1x1x128x128xbf16> to vector<128x128xbf16>
    %cst_72 = arith.constant dense<0.000000e+00> : vector<64x128xf32>
    %67 = tpu.matmul %8, %66, %cst_72 {dimension_numbers = #tpu.dot_dimension_numbers<[1], [0], [0], [1], [0, 0, 1, 1], [], []>} : vector<64x128xbf16>, vector<128x128xbf16>, vector<64x128xf32> -> vector<64x128xf32>
    %68 = arith.addf %64, %67 : vector<64x128xf32>
    %c1_73 = arith.constant 1 : index
    %c2_74 = arith.constant 2 : index
    %c0_75 = arith.constant 0 : index
    %c0_76 = arith.constant 0 : index
    %69 = vector.load %arg3[%c1_73, %c2_74, %c0_75, %c0_76] : memref<4x4x128x128xbf16, #tpu.memory_space<vmem>>, vector<1x1x128x128xbf16>
    %70 = vector.shape_cast %69 : vector<1x1x128x128xbf16> to vector<128x128xbf16>
    %cst_77 = arith.constant dense<0.000000e+00> : vector<64x128xf32>
    %71 = tpu.matmul %14, %70, %cst_77 {dimension_numbers = #tpu.dot_dimension_numbers<[1], [0], [0], [1], [0, 0, 1, 1], [], []>} : vector<64x128xbf16>, vector<128x128xbf16>, vector<64x128xf32> -> vector<64x128xf32>
    %72 = arith.addf %68, %71 : vector<64x128xf32>
    %c1_78 = arith.constant 1 : index
    %c3_79 = arith.constant 3 : index
    %c0_80 = arith.constant 0 : index
    %c0_81 = arith.constant 0 : index
    %73 = vector.load %arg3[%c1_78, %c3_79, %c0_80, %c0_81] : memref<4x4x128x128xbf16, #tpu.memory_space<vmem>>, vector<1x1x128x128xbf16>
    %74 = vector.shape_cast %73 : vector<1x1x128x128xbf16> to vector<128x128xbf16>
    %cst_82 = arith.constant dense<0.000000e+00> : vector<64x128xf32>
    %75 = tpu.matmul %17, %74, %cst_82 {dimension_numbers = #tpu.dot_dimension_numbers<[1], [0], [0], [1], [0, 0, 1, 1], [], []>} : vector<64x128xbf16>, vector<128x128xbf16>, vector<64x128xf32> -> vector<64x128xf32>
    %76 = arith.addf %72, %75 : vector<64x128xf32>
    %c0_83 = arith.constant 0 : index
    %c0_84 = arith.constant 0 : index
    %77 = vector.load %arg4[%c0_83, %c0_84] : memref<1x128xf32, #tpu.memory_space<vmem>>, vector<1x128xf32>
    %78 = vector.broadcast %77 : vector<1x128xf32> to vector<64x128xf32>
    %79 = arith.addf %76, %78 : vector<64x128xf32>
    %80 = arith.truncf %79 : vector<64x128xf32> to vector<64x128xbf16>
    %c0_85 = arith.constant 0 : index
    %c1_86 = arith.constant 1 : index
    %c0_87 = arith.constant 0 : index
    %c0_88 = arith.constant 0 : index
    %81 = vector.load %arg5[%c0_85, %c1_86, %c0_87, %c0_88] : memref<1x4x64x128xbf16, #tpu.memory_space<vmem>>, vector<1x1x64x128xbf16>
    %82 = vector.shape_cast %81 : vector<1x1x64x128xbf16> to vector<64x128xbf16>
    %83 = vector.shape_cast %80 : vector<64x128xbf16> to vector<1x1x64x128xbf16>
    tpu.vector_store %arg5[%c0_85, %c1_86, %c0_87, %c0_88], %83 {strides = array<i32>} : memref<1x4x64x128xbf16, #tpu.memory_space<vmem>>, vector<1x1x64x128xbf16>,
    %cst_89 = arith.constant dense<0.000000e+00> : vector<128xf32>
    %84 = vector.multi_reduction <add>, %79, %cst_89 [0] : vector<64x128xf32> to vector<128xf32>
    %85 = vector.shape_cast %84 : vector<128xf32> to vector<1x128xf32>
    %86 = arith.addf %55, %85 : vector<1x128xf32>
    %87 = arith.mulf %79, %79 : vector<64x128xf32>
    %cst_90 = arith.constant dense<0.000000e+00> : vector<128xf32>
    %88 = vector.multi_reduction <add>, %87, %cst_90 [0] : vector<64x128xf32> to vector<128xf32>
    %89 = vector.shape_cast %88 : vector<128xf32> to vector<1x128xf32>
    %90 = arith.addf %59, %89 : vector<1x128xf32>
    %cst_91 = arith.constant 0.000000e+00 : f32
    %91 = vector.broadcast %cst_91 : f32 to vector<64x128xf32>
    %c2_92 = arith.constant 2 : index
    %c0_93 = arith.constant 0 : index
    %c0_94 = arith.constant 0 : index
    %c0_95 = arith.constant 0 : index
    %92 = vector.load %arg3[%c2_92, %c0_93, %c0_94, %c0_95] : memref<4x4x128x128xbf16, #tpu.memory_space<vmem>>, vector<1x1x128x128xbf16>
    %93 = vector.shape_cast %92 : vector<1x1x128x128xbf16> to vector<128x128xbf16>
    %cst_96 = arith.constant dense<0.000000e+00> : vector<64x128xf32>
    %94 = tpu.matmul %11, %93, %cst_96 {dimension_numbers = #tpu.dot_dimension_numbers<[1], [0], [0], [1], [0, 0, 1, 1], [], []>} : vector<64x128xbf16>, vector<128x128xbf16>, vector<64x128xf32> -> vector<64x128xf32>
    %95 = arith.addf %91, %94 : vector<64x128xf32>
    %c2_97 = arith.constant 2 : index
    %c1_98 = arith.constant 1 : index
    %c0_99 = arith.constant 0 : index
    %c0_100 = arith.constant 0 : index
    %96 = vector.load %arg3[%c2_97, %c1_98, %c0_99, %c0_100] : memref<4x4x128x128xbf16, #tpu.memory_space<vmem>>, vector<1x1x128x128xbf16>
    %97 = vector.shape_cast %96 : vector<1x1x128x128xbf16> to vector<128x128xbf16>
    %cst_101 = arith.constant dense<0.000000e+00> : vector<64x128xf32>
    %98 = tpu.matmul %14, %97, %cst_101 {dimension_numbers = #tpu.dot_dimension_numbers<[1], [0], [0], [1], [0, 0, 1, 1], [], []>} : vector<64x128xbf16>, vector<128x128xbf16>, vector<64x128xf32> -> vector<64x128xf32>
    %99 = arith.addf %95, %98 : vector<64x128xf32>
    %c2_102 = arith.constant 2 : index
    %c2_103 = arith.constant 2 : index
    %c0_104 = arith.constant 0 : index
    %c0_105 = arith.constant 0 : index
    %100 = vector.load %arg3[%c2_102, %c2_103, %c0_104, %c0_105] : memref<4x4x128x128xbf16, #tpu.memory_space<vmem>>, vector<1x1x128x128xbf16>
    %101 = vector.shape_cast %100 : vector<1x1x128x128xbf16> to vector<128x128xbf16>
    %cst_106 = arith.constant dense<0.000000e+00> : vector<64x128xf32>
    %102 = tpu.matmul %20, %101, %cst_106 {dimension_numbers = #tpu.dot_dimension_numbers<[1], [0], [0], [1], [0, 0, 1, 1], [], []>} : vector<64x128xbf16>, vector<128x128xbf16>, vector<64x128xf32> -> vector<64x128xf32>
    %103 = arith.addf %99, %102 : vector<64x128xf32>
    %c2_107 = arith.constant 2 : index
    %c3_108 = arith.constant 3 : index
    %c0_109 = arith.constant 0 : index
    %c0_110 = arith.constant 0 : index
    %104 = vector.load %arg3[%c2_107, %c3_108, %c0_109, %c0_110] : memref<4x4x128x128xbf16, #tpu.memory_space<vmem>>, vector<1x1x128x128xbf16>
    %105 = vector.shape_cast %104 : vector<1x1x128x128xbf16> to vector<128x128xbf16>
    %cst_111 = arith.constant dense<0.000000e+00> : vector<64x128xf32>
    %106 = tpu.matmul %23, %105, %cst_111 {dimension_numbers = #tpu.dot_dimension_numbers<[1], [0], [0], [1], [0, 0, 1, 1], [], []>} : vector<64x128xbf16>, vector<128x128xbf16>, vector<64x128xf32> -> vector<64x128xf32>
    %107 = arith.addf %103, %106 : vector<64x128xf32>
    %c0_112 = arith.constant 0 : index
    %c0_113 = arith.constant 0 : index
    %108 = vector.load %arg4[%c0_112, %c0_113] : memref<1x128xf32, #tpu.memory_space<vmem>>, vector<1x128xf32>
    %109 = vector.broadcast %108 : vector<1x128xf32> to vector<64x128xf32>
    %110 = arith.addf %107, %109 : vector<64x128xf32>
    %111 = arith.truncf %110 : vector<64x128xf32> to vector<64x128xbf16>
    %c0_114 = arith.constant 0 : index
    %c2_115 = arith.constant 2 : index
    %c0_116 = arith.constant 0 : index
    %c0_117 = arith.constant 0 : index
    %112 = vector.load %arg5[%c0_114, %c2_115, %c0_116, %c0_117] : memref<1x4x64x128xbf16, #tpu.memory_space<vmem>>, vector<1x1x64x128xbf16>
    %113 = vector.shape_cast %112 : vector<1x1x64x128xbf16> to vector<64x128xbf16>
    %114 = vector.shape_cast %111 : vector<64x128xbf16> to vector<1x1x64x128xbf16>
    tpu.vector_store %arg5[%c0_114, %c2_115, %c0_116, %c0_117], %114 {strides = array<i32>} : memref<1x4x64x128xbf16, #tpu.memory_space<vmem>>, vector<1x1x64x128xbf16>,
    %cst_118 = arith.constant dense<0.000000e+00> : vector<128xf32>
    %115 = vector.multi_reduction <add>, %110, %cst_118 [0] : vector<64x128xf32> to vector<128xf32>
    %116 = vector.shape_cast %115 : vector<128xf32> to vector<1x128xf32>
    %117 = arith.addf %86, %116 : vector<1x128xf32>
    %118 = arith.mulf %110, %110 : vector<64x128xf32>
    %cst_119 = arith.constant dense<0.000000e+00> : vector<128xf32>
    %119 = vector.multi_reduction <add>, %118, %cst_119 [0] : vector<64x128xf32> to vector<128xf32>
    %120 = vector.shape_cast %119 : vector<128xf32> to vector<1x128xf32>
    %121 = arith.addf %90, %120 : vector<1x128xf32>
    %cst_120 = arith.constant 0.000000e+00 : f32
    %122 = vector.broadcast %cst_120 : f32 to vector<64x128xf32>
    %c3_121 = arith.constant 3 : index
    %c0_122 = arith.constant 0 : index
    %c0_123 = arith.constant 0 : index
    %c0_124 = arith.constant 0 : index
    %123 = vector.load %arg3[%c3_121, %c0_122, %c0_123, %c0_124] : memref<4x4x128x128xbf16, #tpu.memory_space<vmem>>, vector<1x1x128x128xbf16>
    %124 = vector.shape_cast %123 : vector<1x1x128x128xbf16> to vector<128x128xbf16>
    %cst_125 = arith.constant dense<0.000000e+00> : vector<64x128xf32>
    %125 = tpu.matmul %14, %124, %cst_125 {dimension_numbers = #tpu.dot_dimension_numbers<[1], [0], [0], [1], [0, 0, 1, 1], [], []>} : vector<64x128xbf16>, vector<128x128xbf16>, vector<64x128xf32> -> vector<64x128xf32>
    %126 = arith.addf %122, %125 : vector<64x128xf32>
    %c3_126 = arith.constant 3 : index
    %c1_127 = arith.constant 1 : index
    %c0_128 = arith.constant 0 : index
    %c0_129 = arith.constant 0 : index
    %127 = vector.load %arg3[%c3_126, %c1_127, %c0_128, %c0_129] : memref<4x4x128x128xbf16, #tpu.memory_space<vmem>>, vector<1x1x128x128xbf16>
    %128 = vector.shape_cast %127 : vector<1x1x128x128xbf16> to vector<128x128xbf16>
    %cst_130 = arith.constant dense<0.000000e+00> : vector<64x128xf32>
    %129 = tpu.matmul %17, %128, %cst_130 {dimension_numbers = #tpu.dot_dimension_numbers<[1], [0], [0], [1], [0, 0, 1, 1], [], []>} : vector<64x128xbf16>, vector<128x128xbf16>, vector<64x128xf32> -> vector<64x128xf32>
    %130 = arith.addf %126, %129 : vector<64x128xf32>
    %c3_131 = arith.constant 3 : index
    %c2_132 = arith.constant 2 : index
    %c0_133 = arith.constant 0 : index
    %c0_134 = arith.constant 0 : index
    %131 = vector.load %arg3[%c3_131, %c2_132, %c0_133, %c0_134] : memref<4x4x128x128xbf16, #tpu.memory_space<vmem>>, vector<1x1x128x128xbf16>
    %132 = vector.shape_cast %131 : vector<1x1x128x128xbf16> to vector<128x128xbf16>
    %cst_135 = arith.constant dense<0.000000e+00> : vector<64x128xf32>
    %133 = tpu.matmul %23, %132, %cst_135 {dimension_numbers = #tpu.dot_dimension_numbers<[1], [0], [0], [1], [0, 0, 1, 1], [], []>} : vector<64x128xbf16>, vector<128x128xbf16>, vector<64x128xf32> -> vector<64x128xf32>
    %134 = arith.addf %130, %133 : vector<64x128xf32>
    %c3_136 = arith.constant 3 : index
    %c3_137 = arith.constant 3 : index
    %c0_138 = arith.constant 0 : index
    %c0_139 = arith.constant 0 : index
    %135 = vector.load %arg3[%c3_136, %c3_137, %c0_138, %c0_139] : memref<4x4x128x128xbf16, #tpu.memory_space<vmem>>, vector<1x1x128x128xbf16>
    %136 = vector.shape_cast %135 : vector<1x1x128x128xbf16> to vector<128x128xbf16>
    %cst_140 = arith.constant dense<0.000000e+00> : vector<64x128xf32>
    %137 = tpu.matmul %26, %136, %cst_140 {dimension_numbers = #tpu.dot_dimension_numbers<[1], [0], [0], [1], [0, 0, 1, 1], [], []>} : vector<64x128xbf16>, vector<128x128xbf16>, vector<64x128xf32> -> vector<64x128xf32>
    %138 = arith.addf %134, %137 : vector<64x128xf32>
    %c0_141 = arith.constant 0 : index
    %c0_142 = arith.constant 0 : index
    %139 = vector.load %arg4[%c0_141, %c0_142] : memref<1x128xf32, #tpu.memory_space<vmem>>, vector<1x128xf32>
    %140 = vector.broadcast %139 : vector<1x128xf32> to vector<64x128xf32>
    %141 = arith.addf %138, %140 : vector<64x128xf32>
    %142 = arith.truncf %141 : vector<64x128xf32> to vector<64x128xbf16>
    %c0_143 = arith.constant 0 : index
    %c3_144 = arith.constant 3 : index
    %c0_145 = arith.constant 0 : index
    %c0_146 = arith.constant 0 : index
    %143 = vector.load %arg5[%c0_143, %c3_144, %c0_145, %c0_146] : memref<1x4x64x128xbf16, #tpu.memory_space<vmem>>, vector<1x1x64x128xbf16>
    %144 = vector.shape_cast %143 : vector<1x1x64x128xbf16> to vector<64x128xbf16>
    %145 = vector.shape_cast %142 : vector<64x128xbf16> to vector<1x1x64x128xbf16>
    tpu.vector_store %arg5[%c0_143, %c3_144, %c0_145, %c0_146], %145 {strides = array<i32>} : memref<1x4x64x128xbf16, #tpu.memory_space<vmem>>, vector<1x1x64x128xbf16>,
    %cst_147 = arith.constant dense<0.000000e+00> : vector<128xf32>
    %146 = vector.multi_reduction <add>, %141, %cst_147 [0] : vector<64x128xf32> to vector<128xf32>
    %147 = vector.shape_cast %146 : vector<128xf32> to vector<1x128xf32>
    %148 = arith.addf %117, %147 : vector<1x128xf32>
    %149 = arith.mulf %141, %141 : vector<64x128xf32>
    %cst_148 = arith.constant dense<0.000000e+00> : vector<128xf32>
    %150 = vector.multi_reduction <add>, %149, %cst_148 [0] : vector<64x128xf32> to vector<128xf32>
    %151 = vector.shape_cast %150 : vector<128xf32> to vector<1x128xf32>
    %152 = arith.addf %121, %151 : vector<1x128xf32>
    %c0_149 = arith.constant 0 : index
    %c0_150 = arith.constant 0 : index
    %c0_151 = arith.constant 0 : index
    %153 = vector.load %arg6[%c0_149, %c0_150, %c0_151] : memref<1x1x128xf32, #tpu.memory_space<vmem>>, vector<1x1x128xf32>
    %154 = vector.shape_cast %153 : vector<1x1x128xf32> to vector<1x128xf32>
    %155 = vector.shape_cast %148 : vector<1x128xf32> to vector<1x1x128xf32>
    tpu.vector_store %arg6[%c0_149, %c0_150, %c0_151], %155 {strides = array<i32>} : memref<1x1x128xf32, #tpu.memory_space<vmem>>, vector<1x1x128xf32>,
    %c0_152 = arith.constant 0 : index
    %c0_153 = arith.constant 0 : index
    %c0_154 = arith.constant 0 : index
    %156 = vector.load %arg7[%c0_152, %c0_153, %c0_154] : memref<1x1x128xf32, #tpu.memory_space<vmem>>, vector<1x1x128xf32>
    %157 = vector.shape_cast %156 : vector<1x1x128xf32> to vector<1x128xf32>
    %158 = vector.shape_cast %152 : vector<1x128xf32> to vector<1x1x128xf32>
    tpu.vector_store %arg7[%c0_152, %c0_153, %c0_154], %158 {strides = array<i32>} : memref<1x1x128xf32, #tpu.memory_space<vmem>>, vector<1x1x128xf32>,
    return
  }
  func.func @transform_0(%arg0: i32, %arg1: i32) -> (i32, i32, i32, i32) {
    %c0_i32 = arith.constant 0 : i32
    %c0_i32_0 = arith.constant 0 : i32
    %c0_i32_1 = arith.constant 0 : i32
    %c0_i32_2 = arith.constant 0 : i32
    return %arg0, %c0_i32, %c0_i32_0, %c0_i32_1 : i32, i32, i32, i32
  }
  func.func @transform_1(%arg0: i32, %arg1: i32) -> (i32, i32, i32, i32) {
    %c0_i32 = arith.constant 0 : i32
    %c0_i32_0 = arith.constant 0 : i32
    %c0_i32_1 = arith.constant 0 : i32
    %c0_i32_2 = arith.constant 0 : i32
    return %c0_i32, %c0_i32_0, %c0_i32_1, %arg1 : i32, i32, i32, i32
  }
  func.func @transform_2(%arg0: i32, %arg1: i32) -> (i32, i32) {
    %c0_i32 = arith.constant 0 : i32
    %c0_i32_0 = arith.constant 0 : i32
    return %c0_i32, %arg1 : i32, i32
  }
  func.func @transform_3(%arg0: i32, %arg1: i32) -> (i32, i32, i32, i32) {
    %c0_i32 = arith.constant 0 : i32
    %c0_i32_0 = arith.constant 0 : i32
    %c0_i32_1 = arith.constant 0 : i32
    return %arg0, %c0_i32, %c0_i32_0, %arg1 : i32, i32, i32, i32
  }
  func.func @transform_4(%arg0: i32, %arg1: i32) -> (i32, i32, i32) {
    %c0_i32 = arith.constant 0 : i32
    %c0_i32_0 = arith.constant 0 : i32
    return %arg0, %c0_i32, %arg1 : i32, i32, i32
  }
  func.func @transform_5(%arg0: i32, %arg1: i32) -> (i32, i32, i32) {
    %c0_i32 = arith.constant 0 : i32
    %c0_i32_0 = arith.constant 0 : i32
    return %arg0, %c0_i32, %arg1 : i32, i32, i32
  }
}

module attributes {stable_mosaic.version = 11 : i64} {
  func.func @bn_lrelu_kernel(%arg0: i32, %arg1: i32, %arg2: memref<1x1x64x128xbf16, #tpu.memory_space<vmem>>, %arg3: memref<1x128xf32, #tpu.memory_space<vmem>>, %arg4: memref<1x128xf32, #tpu.memory_space<vmem>>, %arg5: memref<1x1x64x128xf32, #tpu.memory_space<vmem>>) attributes {dimension_semantics = [#tpu.dimension_semantics<parallel>, #tpu.dimension_semantics<parallel>], iteration_bounds = array<i64: 2, 4>, scalar_prefetch = 0 : i64, scratch_operands = 0 : i64, tpu.core_type = #tpu.core_type<tc>, window_params = [{transform_indices = @transform_0, window_bounds = array<i64: 1, 1, 64, 128>}, {pipeline_mode = #tpu.pipeline_mode<synchronous>, transform_indices = @transform_1, window_bounds = array<i64: 1, 128>}, {pipeline_mode = #tpu.pipeline_mode<synchronous>, transform_indices = @transform_2, window_bounds = array<i64: 1, 128>}, {transform_indices = @transform_3, window_bounds = array<i64: 1, 1, 64, 128>}]} {
    %c0 = arith.constant 0 : index
    %c0_0 = arith.constant 0 : index
    %c0_1 = arith.constant 0 : index
    %c0_2 = arith.constant 0 : index
    %0 = vector.load %arg2[%c0, %c0_0, %c0_1, %c0_2] : memref<1x1x64x128xbf16, #tpu.memory_space<vmem>>, vector<1x1x64x128xbf16>
    %1 = vector.shape_cast %0 : vector<1x1x64x128xbf16> to vector<64x128xbf16>
    %2 = arith.extf %1 : vector<64x128xbf16> to vector<64x128xf32>
    %c0_3 = arith.constant 0 : index
    %c0_4 = arith.constant 0 : index
    %3 = vector.load %arg3[%c0_3, %c0_4] : memref<1x128xf32, #tpu.memory_space<vmem>>, vector<1x128xf32>
    %4 = vector.broadcast %3 : vector<1x128xf32> to vector<64x128xf32>
    %5 = arith.mulf %2, %4 : vector<64x128xf32>
    %c0_5 = arith.constant 0 : index
    %c0_6 = arith.constant 0 : index
    %6 = vector.load %arg4[%c0_5, %c0_6] : memref<1x128xf32, #tpu.memory_space<vmem>>, vector<1x128xf32>
    %7 = vector.broadcast %6 : vector<1x128xf32> to vector<64x128xf32>
    %8 = arith.addf %5, %7 : vector<64x128xf32>
    %cst = arith.constant 0.000000e+00 : f32
    %9 = vector.broadcast %cst : f32 to vector<64x128xf32>
    %10 = arith.cmpf ogt, %8, %9 : vector<64x128xf32>
    %cst_7 = arith.constant 2.000000e-01 : f32
    %11 = vector.broadcast %cst_7 : f32 to vector<64x128xf32>
    %12 = arith.mulf %11, %8 : vector<64x128xf32>
    %13 = arith.select %10, %8, %12 : vector<64x128xi1>, vector<64x128xf32>
    %c0_8 = arith.constant 0 : index
    %c0_9 = arith.constant 0 : index
    %c0_10 = arith.constant 0 : index
    %c0_11 = arith.constant 0 : index
    %14 = vector.load %arg5[%c0_8, %c0_9, %c0_10, %c0_11] : memref<1x1x64x128xf32, #tpu.memory_space<vmem>>, vector<1x1x64x128xf32>
    %15 = vector.shape_cast %14 : vector<1x1x64x128xf32> to vector<64x128xf32>
    %16 = vector.shape_cast %13 : vector<64x128xf32> to vector<1x1x64x128xf32>
    tpu.vector_store %arg5[%c0_8, %c0_9, %c0_10, %c0_11], %16 {strides = array<i32>} : memref<1x1x64x128xf32, #tpu.memory_space<vmem>>, vector<1x1x64x128xf32>,
    return
  }
  func.func @transform_0(%arg0: i32, %arg1: i32) -> (i32, i32, i32, i32) {
    %c0_i32 = arith.constant 0 : i32
    %c0_i32_0 = arith.constant 0 : i32
    %c0_i32_1 = arith.constant 0 : i32
    return %arg0, %arg1, %c0_i32, %c0_i32_0 : i32, i32, i32, i32
  }
  func.func @transform_1(%arg0: i32, %arg1: i32) -> (i32, i32) {
    %c0_i32 = arith.constant 0 : i32
    %c0_i32_0 = arith.constant 0 : i32
    %c0_i32_1 = arith.constant 0 : i32
    return %c0_i32, %c0_i32_0 : i32, i32
  }
  func.func @transform_2(%arg0: i32, %arg1: i32) -> (i32, i32) {
    %c0_i32 = arith.constant 0 : i32
    %c0_i32_0 = arith.constant 0 : i32
    %c0_i32_1 = arith.constant 0 : i32
    return %c0_i32, %c0_i32_0 : i32, i32
  }
  func.func @transform_3(%arg0: i32, %arg1: i32) -> (i32, i32, i32, i32) {
    %c0_i32 = arith.constant 0 : i32
    %c0_i32_0 = arith.constant 0 : i32
    %c0_i32_1 = arith.constant 0 : i32
    return %arg0, %arg1, %c0_i32, %c0_i32_0 : i32, i32, i32, i32
  }
}

</mosaic_0001>

<bundles_post_ra>
// kernel: bottleneck_forward.3
= control target key start
LH: loop header
LB: loop body
LE: loop exit
PB: predicated region body
PF: predicated region fallthrough
CT: control target
= control target key end

     0   :  { %s1327_s12 = smov 0   ;;  %s1329_s13 = smov 0   ;;  %s1515_s0 = inlined_call_operand.vmem [shape: bf16[2,9,9,16], index: 0, kind: input, shape index: {}]   ;;  %s1516_s1 = inlined_call_operand.vmem [shape: bf16[4,16,128], index: 1, kind: input, shape index: {}]   ;;  %s1517_s2 = inlined_call_operand.vmem [shape: f32[1,128], index: 2, kind: input, shape index: {}]   ;;  %s1518_s3 = inlined_call_operand.vmem [shape: bf16[2,8,8,128], index: 3, kind: output, shape index: {}]  }
   0x1   :  { %s1331_s14 = smov 0  }
   0x2 LB: > { %s25_s15 = sadd.s32 1, %s1301_s13  ;;  %p1065_p0 = scmp.ge.s32.totalorder %s1305_s14, 1  ;;  %s1305_s14 = sphi %s1331_s14, %s13_s14   ;;  %s1301_s13 = sphi %s1329_s13, %s1522_s13   ;;  %s1297_s12 = sphi %s1327_s12, %s1521_s12  }
   0x3   : > { %p27_p1 = scmp.ge.s32.totalorder %s25_s15, 2  ;;  %p168_p2 = scmp.lt.s32.totalorder %s1305_s14, 3 }
   0x5   : > { %s1524_s15 = smov (%p27_p1, %s25_s15), 0  ;;  %p169_p3 = pnand %p1065_p0, %p168_p2 }
   0x6   : > { %v1271_v0 = vld [vmem:[%s1516_s1 + $0x10] sm:$0xff] (!%p169_p3)   ;;  %p202_p4 = scmp.lt.s32.totalorder (!%p169_p3), %s1297_s12, 1  ;;  %v1274_v1 = vld [vmem:[%s1516_s1 + $0x8] sm:$0xff] (!%p169_p3)   ;;  %v1356_v2 = vld [vmem:[%s1516_s1] sm:$0xff] (!%p169_p3)   ;;  %vm377_vm0 = vcmask (!%p169_p3), 130048  }
   0x7   : > { %172 = sbr.rel (%p169_p3) target bundleno = 297 (0x129), region = 32  ;;  %1202 = vmatprep.subr.bf16.mxu0 (!%p169_p3), %v1271_v0  ;;  %1182 = vmatprep.subr.bf16.mxu1 (!%p169_p3), %v1274_v1  ;;  %v1278_v3 = vld [vmem:[%s1516_s1 + $0x18] sm:$0xff] (!%p169_p3)   ;;  %vm241_vm1 = vsmask.f32 (!%p169_p3), 3328  ;;  %vm242_vm2 = vsmask.f32 (!%p169_p3), 7440 }
   0x8   : > { %1203 = vmatpush3.bf16.msra.mxu0 (!%p169_p3), %v1271_v0  ;;  %1183 = vmatpush3.bf16.msra.mxu1 (!%p169_p3), %v1274_v1  ;;  %vm1399_vm3 = vmor (!%p169_p3), %vm241_vm1, %vm242_vm2  ;;  %v1135_v31 = vld [vmem:[%s1517_s2] ss:$0 sm:$0xff] (!%p169_p3) }
   0x9   : > { %1192 = vmatprep.subr.bf16.mxu1 (!%p169_p3), %v1356_v2  ;;  %1212 = vmatprep.subr.bf16.mxu0 (!%p169_p3), %v1278_v3 }
   0xe   : > { %s1526_s12 = smov (!%p202_p4, %s1297_s12), 1 }
   0xf   : > { %s1246_s22 = smul.u32 72, %s1526_s12  ;;  %s1138_s30 = sshll.u32 %s1526_s12, 5 }
  0x10   : > { %s221_s6 = scalar_lea.vmem %s1518_s3, %s1138_s30 }
  0x11   : > { %s1366_s27 = scalar_lea.vmem %s1515_s0, %s1246_s22 }
  0x12   : > { %v1272_v4 = vld [vmem:[%s1366_s27 + $0x8] ss:$8 sps:$4 sm:$0xff]   ;;  %v1273_v5 = vld [vmem:[%s1366_s27 + $0x18] ss:$8 sps:$4 sm:$0xff]   ;;  %v233_v9 = vld [vmem:[%s1366_s27 + $0x4] sm:$0x1] }
  0x13   : > { %1204 = vmatprep.mubr.msk.bf16.mxu0 %vm377_vm0, %v1272_v4  ;;  %v1275_v6 = vld [vmem:[%s1366_s27 + $0x28] ss:$8 sps:$4 sm:$0xff]   ;;  %v1374_v7 = vld [vmem:[%s1366_s27] sm:$0xf]  ;;  %v234_v10 = vld [vmem:[%s1366_s27 + $0xc] sm:$0x1] }
  0x14   : > { %1205 = vmatmul.mubr.msk.bf16.vlgmr.msra.gmra.mrb[0].mxu0 %vm377_vm0, %v1273_v5  ;;  %v1377_v8 = vld [vmem:[%s1366_s27 + $0x8] sm:$0xf]  ;;  %v245_v11 = vshrl.u32 %v1374_v7, 16  ;;  %v248_v12 = vshll.u32 %v1374_v7, 16  ;;  %v254_v13 = vshll.u32 %v233_v9, 16  ;;  %v268_v16 = vshll.u32 %v234_v10, 16 }
  0x15   : > { %1208 = vmatprep.mubr.msk.bf16.mxu0 %vm377_vm0, %v1275_v6  ;;  %v259_v14 = vshrl.u32 %v1377_v8, 16  ;;  %1213 = vmatpush3.bf16.msra.mxu0 %v1278_v3  ;;  %v262_v15 = vshll.u32 %v1377_v8, 16  ;;  %v1277_v21 = vld [vmem:[%s1366_s27 + $0x38] ss:$8 sps:$4 sm:$0xff]   ;;  %v1388_v24 = vld [vmem:[%s1366_s27 + $0x10] sm:$0xf] }
  0x16   : > { %v247_v17 = vrot.slane %v245_v11, 4  ;;  %v250_v18 = vrot.slane %v248_v12, 5  ;;  %v256_v19 = vrot.slane %v254_v13, 5  ;;  %v270_v23 = vrot.slane %v268_v16, 5  ;;  %v1391_v25 = vld [vmem:[%s1366_s27 + $0x18] sm:$0xf] }
  0x17   : > { %v261_v20 = vrot.slane %v259_v14, 4  ;;  %v264_v22 = vrot.slane %v262_v15, 5  ;;  %v235_v27 = vld [vmem:[%s1366_s27 + $0x14] sm:$0x1]  ;;  %v236_v28 = vld [vmem:[%s1366_s27 + $0x1c] sm:$0x1] }
  0x18   : > { %v251_v26 = vor.u32 %v250_v18, %v247_v17  ;;  %v273_v29 = vshrl.u32 %v1388_v24, 16  ;;  %v276_v30 = vshll.u32 %v1388_v24, 16  ;;  %v282_v33 = vshll.u32 %v235_v27, 16  ;;  %v1108_v36 = vld [vmem:[%s1366_s27 + $0x8] sm:$0xf] }
  0x19   : > { %v265_v32 = vor.u32 %v264_v22, %v261_v20  ;;  %v287_v34 = vshrl.u32 %v1391_v25, 16  ;;  %v290_v35 = vshll.u32 %v1391_v25, 16  ;;  %v296_v40 = vshll.u32 %v236_v28, 16  ;;  %v1109_v41 = vld [vmem:[%s1366_s27 + $0xc] sm:$0x1] }
  0x1a   : > { %v252_v37 = vrot.slane %v251_v26, 4  ;;  %v275_v38 = vrot.slane %v273_v29, 4  ;;  %v278_v39 = vrot.slane %v276_v30, 5  ;;  %v284_v43 = vrot.slane %v282_v33, 5  ;;  %v1110_v46 = vld [vmem:[%s1366_s27 + $0x10] sm:$0xf] }
  0x1b   : > { %v266_v42 = vrot.slane %v265_v32, 4  ;;  %v289_v44 = vrot.slane %v287_v34, 4  ;;  %v292_v45 = vrot.slane %v290_v35, 5  ;;  %v298_v49 = vrot.slane %v296_v40, 5  ;;  %v1111_v53 = vld [vmem:[%s1366_s27 + $0x14] sm:$0x1] }
  0x1c   : > { %1209 = vmatmul.mubr.msk.bf16.gmra.mrb[4].mxu0 %vm377_vm0, %v1277_v21  ;;  %v257_v47 = vsel %vm1399_vm3, %v252_v37, %v256_v19  ;;  %v279_v48 = vor.u32 %v278_v39, %v275_v38  ;;  %v698_v50 = vshrl.u32 %v1108_v36, 16  ;;  %v701_v54 = vshll.u32 %v1108_v36, 16  ;;  %v1415_v56 = vld [vmem:[%s1366_s27 + $0x20] sm:$0xf]  ;;  %v237_v1 = vld [vmem:[%s1366_s27 + $0x24] sm:$0x1] }
  0x1d   : > { %v271_v51 = vsel %vm1399_vm3, %v266_v42, %v270_v23  ;;  %v293_v52 = vor.u32 %v292_v45, %v289_v44  ;;  %v707_v55 = vshll.u32 %v1109_v41, 16  ;;  %v712_v60 = vshrl.u32 %v1110_v46, 16  ;;  %v1422_v6 = vld [vmem:[%s1366_s27 + $0x28] sm:$0xf]  ;;  %v238_v13 = vld [vmem:[%s1366_s27 + $0x2c] sm:$0x1] }
  0x1e   : > { %v1071_v57 = vcombine.low %v257_v47, %v271_v51  ;;  %v280_v58 = vrot.slane %v279_v48, 4  ;;  %v700_v59 = vrot.slane %v698_v50, 4  ;;  %v703_v62 = vrot.slane %v701_v54, 5  ;;  %v1112_v15 = vld [vmem:[%s1366_s27 + $0x18] sm:$0xf] }
  0x1f   : > { %v294_v61 = vrot.slane %v293_v52, 4  ;;  %v709_v63 = vrot.slane %v707_v55, 5  ;;  %v715_v0 = vshll.u32 %v1110_v46, 16  ;;  %v714_v4 = vrot.slane %v712_v60, 4  ;;  %v1113_v26 = vld [vmem:[%s1366_s27 + $0x1c] sm:$0x1] }
  0x20   : > { %1184 = vmatprep.mubr.msk.bf16.mxu1 %vm377_vm0, %v1071_v57  ;;  %v285_v3 = vsel %vm1399_vm3, %v280_v58, %v284_v43  ;;  %v721_v5 = vshll.u32 %v1111_v53, 16  ;;  %v301_v9 = vshrl.u32 %v1415_v56, 16  ;;  %v704_v11 = vor.u32 %v703_v62, %v700_v59  ;;  %v1114_v30 = vld [vmem:[%s1366_s27 + $0x20] sm:$0xf]  ;;  %v1115_v39 = vld [vmem:[%s1366_s27 + $0x24] sm:$0x1] }
  0x21   : > { %v299_v10 = vsel %vm1399_vm3, %v294_v61, %v298_v49  ;;  %v717_v12 = vrot.slane %v715_v0, 5  ;;  %v304_v14 = vshll.u32 %v1415_v56, 16  ;;  %v310_v19 = vshll.u32 %v237_v1, 16  ;;  %v1445_v50 = vld [vmem:[%s1366_s27 + $0x38] sm:$0xf] }
  0x22   : > { %v1072_v16 = vcombine.low %v285_v3, %v299_v10  ;;  %v723_v17 = vrot.slane %v721_v5, 5  ;;  %v303_v18 = vrot.slane %v301_v9, 4  ;;  %v705_v20 = vrot.slane %v704_v11, 4  ;;  %v239_v51 = vld [vmem:[%s1366_s27 + $0x34] sm:$0x1] }
  0x23   : > { %v718_v21 = vor.u32 %v717_v12, %v714_v4  ;;  %v306_v22 = vrot.slane %v304_v14, 5  ;;  %v315_v23 = vshrl.u32 %v1422_v6, 16  ;;  %v312_v27 = vrot.slane %v310_v19, 5  ;;  %v240_v62 = vld [vmem:[%s1366_s27 + $0x3c] sm:$0x1] }
  0x24   : > { %1185 = vmatmul.mubr.msk.bf16.vlgmr.msra.gmra.mrb[0].mxu1 %vm377_vm0, %v1072_v16  ;;  %v318_v28 = vshll.u32 %v1422_v6, 16  ;;  %v324_v29 = vshll.u32 %v238_v13, 16  ;;  %v726_v32 = vshrl.u32 %v1112_v15, 16  ;;  %v710_v33 = vsel %vm1399_vm3, %v705_v20, %v709_v63  ;;  %v1116_v10 = vld [vmem:[%s1366_s27 + $0x28] sm:$0xf] }
  0x25   : > { %1193 = vmatpush3.bf16.msra.mxu1 %v1356_v2  ;;  %v719_v34 = vrot.slane %v718_v21, 4  ;;  %v307_v35 = vor.u32 %v306_v22, %v303_v18  ;;  %v317_v36 = vrot.slane %v315_v23, 4  ;;  %v729_v41 = vshll.u32 %v1112_v15, 16  ;;  %v1442_v2 = vld [vmem:[%s1366_s27 + $0x30] sm:$0xf] }
  0x26   : > { %v320_v37 = vrot.slane %v318_v28, 5  ;;  %v326_v38 = vrot.slane %v324_v29, 5  ;;  %v728_v40 = vrot.slane %v726_v32, 4  ;;  %v735_v44 = vshll.u32 %v1113_v26, 16  ;;  %v1117_v11 = vld [vmem:[%s1366_s27 + $0x2c] sm:$0x1] }
  0x27   : > { %v724_v42 = vsel %vm1399_vm3, %v719_v34, %v723_v17  ;;  %v308_v43 = vrot.slane %v307_v35, 4  ;;  %v740_v45 = vshrl.u32 %v1114_v30, 16  ;;  %v731_v48 = vrot.slane %v729_v41, 5  ;;  %v1118_v15 = vld [vmem:[%s1366_s27 + $0x30] sm:$0xf] }
  0x28   : > { %v1126_v46 = vcombine.low %v710_v33, %v724_v42  ;;  %v321_v47 = vor.u32 %v320_v37, %v317_v36  ;;  %v743_v49 = vshll.u32 %v1114_v30, 16  ;;  %v737_v53 = vrot.slane %v735_v44, 5  ;;  %v1119_v22 = vld [vmem:[%s1366_s27 + $0x34] sm:$0x1]  ;;  %v1120_v30 = vld [vmem:[%s1366_s27 + $0x38] sm:$0xf] }
  0x29   : > { %v313_v52 = vsel %vm1399_vm3, %v308_v43, %v312_v27  ;;  %v742_v54 = vrot.slane %v740_v45, 4  ;;  %v749_v55 = vshll.u32 %v1115_v39, 16  ;;  %v732_v58 = vor.u32 %v731_v48, %v728_v40  ;;  %v1121_v36 = vld [vmem:[%s1366_s27 + $0x3c] sm:$0x1]  ;;  %v1122_v41 = vld [vmem:[%s1366_s27 + $0x40] sm:$0xf] }
  0x2a   : > { %1214 = vmatprep.mubr.msk.bf16.mxu0 %vm377_vm0, %v1126_v46  ;;  %v322_v57 = vrot.slane %v321_v47, 4  ;;  %v745_v59 = vrot.slane %v743_v49, 5  ;;  %v329_v60 = vshrl.u32 %v1442_v2, 16  ;;  %v332_v63 = vshll.u32 %v1442_v2, 16 }
  0x2b   : > { %v751_v61 = vrot.slane %v749_v55, 5  ;;  %v338_v0 = vshll.u32 %v239_v51, 16  ;;  %v343_v1 = vshrl.u32 %v1445_v50, 16  ;;  %v733_v4 = vrot.slane %v732_v58, 4 }
  0x2c   : > { %v327_v3 = vsel %vm1399_vm3, %v322_v57, %v326_v38  ;;  %v746_v5 = vor.u32 %v745_v59, %v742_v54  ;;  %v331_v9 = vrot.slane %v329_v60, 4  ;;  %v334_v13 = vrot.slane %v332_v63, 5 }
  0x2d   : > { %v1073_v12 = vcombine.low %v313_v52, %v327_v3  ;;  %v345_v14 = vrot.slane %v343_v1, 4  ;;  %v1080_v16 = vcombine.low %v1374_v7, %v1377_v8  ;;  %v738_v17 = vsel %vm1399_vm3, %v733_v4, %v737_v53  ;;  %v1123_v52 = vld [vmem:[%s1366_s27 + $0x44] sm:$0x1] }
  0x2e   : > { %v747_v18 = vrot.slane %v746_v5, 4  ;;  %v346_v19 = vshll.u32 %v1445_v50, 16  ;;  %v352_v20 = vshll.u32 %v240_v62, 16  ;;  %v335_v21 = vor.u32 %v334_v13, %v331_v9 }
  0x2f   : > { %1188 = vmatprep.mubr.msk.bf16.mxu1 %vm377_vm0, %v1073_v12  ;;  %v754_v23 = vshrl.u32 %v1116_v10, 16  ;;  %v757_v26 = vshll.u32 %v1116_v10, 16  ;;  %v763_v27 = vshll.u32 %v1117_v11, 16  ;;  %v340_v7 = vrot.slane %v338_v0, 5 }
  0x30   : > { %v752_v28 = vsel %vm1399_vm3, %v747_v18, %v751_v61  ;;  %v348_v8 = vrot.slane %v346_v19, 5  ;;  %v768_v29 = vshrl.u32 %v1118_v15, 16  ;;  %v336_v33 = vrot.slane %v335_v21, 4 }
  0x31   : > { %v1127_v32 = vcombine.low %v738_v17, %v752_v28  ;;  %v756_v34 = vrot.slane %v754_v23, 4  ;;  %v759_v35 = vrot.slane %v757_v26, 5  ;;  %v354_v38 = vrot.slane %v352_v20, 5 }
  0x32   : > { %v349_v37 = vor.u32 %v348_v8, %v345_v14  ;;  %v770_v39 = vrot.slane %v768_v29, 4  ;;  %v771_v40 = vshll.u32 %v1118_v15, 16  ;;  %v765_v43 = vrot.slane %v763_v27, 5 }
  0x33   : > { %1215 = vmatmul.mubr.msk.bf16.vlgmr.msra.gmra.mrb[0].mxu0 %vm377_vm0, %v1127_v32  ;;  %v760_v42 = vor.u32 %v759_v35, %v756_v34  ;;  %v777_v44 = vshll.u32 %v1119_v22, 16  ;;  %v782_v45 = vshrl.u32 %v1120_v30, 16  ;;  %v341_v46 = vsel %vm1399_vm3, %v336_v33, %v340_v7 }
  0x34   : > { %v350_v47 = vrot.slane %v349_v37, 4  ;;  %v773_v48 = vrot.slane %v771_v40, 5  ;;  %v785_v49 = vshll.u32 %v1120_v30, 16  ;;  %v791_v54 = vshll.u32 %v1121_v36, 16 }
  0x35   : > { %v761_v51 = vrot.slane %v760_v42, 4  ;;  %v784_v53 = vrot.slane %v782_v45, 4  ;;  %v796_v55 = vshrl.u32 %v1122_v41, 16  ;;  %v779_v59 = vrot.slane %v777_v44, 5 }
  0x36   : > { %v355_v57 = vsel %vm1399_vm3, %v350_v47, %v354_v38  ;;  %v774_v58 = vor.u32 %v773_v48, %v770_v39  ;;  %v787_v60 = vrot.slane %v785_v49, 5  ;;  %v799_v63 = vshll.u32 %v1122_v41, 16 }
  0x37   : > { %v1074_v61 = vcombine.low %v341_v46, %v355_v57  ;;  %v798_v62 = vrot.slane %v796_v55, 4  ;;  %v766_v0 = vsel %vm1399_vm3, %v761_v51, %v765_v43  ;;  %v805_v4 = vshll.u32 %v1123_v52, 16 }
  0x38   : > { %v775_v1 = vrot.slane %v774_v58, 4  ;;  %v788_v3 = vor.u32 %v787_v60, %v784_v53  ;;  %v793_v5 = vrot.slane %v791_v54, 5  ;;  %v801_v9 = vrot.slane %v799_v63, 5 }
  0x39   : > { %1189 = vmatmul.mubr.msk.bf16.gmra.mrb[4].mxu1 %vm377_vm0, %v1074_v61  ;;  %v807_v14 = vrot.slane %v805_v4, 5  ;;  %v1081_v18 = vcombine.low %v1388_v24, %v1391_v25  ;;  %v1082_v19 = vcombine.low %v1415_v56, %v1422_v6  ;;  %v1083_v21 = vcombine.low %v1442_v2, %v1445_v50 }
  0x3a   : > { %v780_v10 = vsel %vm1399_vm3, %v775_v1, %v779_v59  ;;  %1194 = vmatprep.mubr.msk.bf16.mxu1 %vm377_vm0, %v1080_v16  ;;  %v789_v11 = vrot.slane %v788_v3, 4  ;;  %v802_v13 = vor.u32 %v801_v9, %v798_v62 }
  0x3b   : > { %v1128_v12 = vcombine.low %v766_v0, %v780_v10 }
  0x3c   : > { %v794_v15 = vsel %vm1399_vm3, %v789_v11, %v793_v5  ;;  %v803_v17 = vrot.slane %v802_v13, 4 }
  0x3d   : > { %1218 = vmatprep.mubr.msk.bf16.mxu0 %vm377_vm0, %v1128_v12 }
  0x3e   : > { %v808_v20 = vsel %vm1399_vm3, %v803_v17, %v807_v14 }
  0x3f   : > { %v1129_v16 = vcombine.low %v794_v15, %v808_v20 }
  0x41   : > { %1195 = vmatmul.mubr.msk.bf16.vlgmr.msra.gmra.mrb[0].mxu1 %vm377_vm0, %v1081_v18  ;;  %1219 = vmatmul.mubr.msk.bf16.gmra.mrb[4].mxu0 %vm377_vm0, %v1129_v16 }
  0x42   : > { %1198 = vmatprep.mubr.msk.bf16.mxu1 %vm377_vm0, %v1082_v19 }
  0x49   : > { %1199 = vmatmul.mubr.msk.bf16.gmra.mrb[4].mxu1 %vm377_vm0, %v1083_v21 }
 0x106   : > { %v1216_v22 = vpop.f32.mrb[0].mxu0 }
 0x107   : > { %v876_v24 = vpop.f32.mrb[1].mxu0 }
 0x108   : > { %v1217_v25 = vpop.f32.mrb[2].mxu0 }
 0x109   : > { %v879_v23 = vpop.f32.mrb[3].mxu0 }
 0x114   : > { %v1196_v56 = vpop.f32.mrb[0].mxu1  ;;  %v1220_v6 = vpop.f32.mrb[4].mxu0 }
 0x115   : > { %v1222_v26 = vadd.f32 %v1216_v22, %v1196_v56  ;;  %v527_v27 = vpop.f32.mrb[1].mxu1  ;;  %v892_v28 = vpop.f32.mrb[5].mxu0 }
 0x116   : > { %v1223_v7 = vadd.f32 %v876_v24, %v527_v27  ;;  %v1197_v8 = vpop.f32.mrb[2].mxu1  ;;  %v1221_v2 = vpop.f32.mrb[6].mxu0 }
 0x117   : > { %v924_v29 = vadd.f32 %v1222_v26, %v1135_v31  ;;  %v1224_v50 = vadd.f32 %v1217_v25, %v1197_v8  ;;  %v530_v30 = vpop.f32.mrb[3].mxu1  ;;  %v895_v33 = vpop.f32.mrb[7].mxu0 }
 0x118   : > { %v922_v32 = vadd.f32 %v1223_v7, %v1135_v31  ;;  %v1225_v34 = vadd.f32 %v879_v23, %v530_v30 }
 0x119   : > { %v925_v35 = vadd.f32 %v1224_v50, %v1135_v31  ;;  %v932_v37 = vmax.f32 %v924_v29, 0.0 }
 0x11a   : > { %v923_v36 = vadd.f32 %v1225_v34, %v1135_v31  ;;  %v930_v39 = vmax.f32 %v922_v32, 0.0 }
 0x11b   : > { %v933_v38 = vmax.f32 %v925_v35, 0.0 }
 0x11c   : > { %v931_v40 = vmax.f32 %v923_v36, 0.0  ;;  %v1200_v41 = vpop.f32.mrb[4].mxu1 }
 0x11d   : > { %v1147_v42 = vpack.c.bf16 %v933_v38, %v932_v37  ;;  %v1226_v43 = vadd.f32 %v1220_v6, %v1200_v41  ;;  %v543_v44 = vpop.f32.mrb[5].mxu1 }
 0x11e   : > { %v1142_v45 = vpack.c.bf16 %v931_v40, %v930_v39  ;;  %v1227_v46 = vadd.f32 %v892_v28, %v543_v44  ;;  %v1201_v47 = vpop.f32.mrb[6].mxu1 }
 0x11f   : > { %1159 = vst [vmem:[%s221_s6 + $0x8] sm:$0xff] %v1147_v42   ;;  %v928_v48 = vadd.f32 %v1226_v43, %v1135_v31  ;;  %v1228_v49 = vadd.f32 %v1221_v2, %v1201_v47  ;;  %v546_v51 = vpop.f32.mrb[7].mxu1 }
 0x120   : > { %1143 = vst [vmem:[%s221_s6] sm:$0xff] %v1142_v45   ;;  %v926_v52 = vadd.f32 %v1227_v46, %v1135_v31  ;;  %v1229_v53 = vadd.f32 %v895_v33, %v546_v51 }
 0x121   : > { %v929_v54 = vadd.f32 %v1228_v49, %v1135_v31  ;;  %v936_v57 = vmax.f32 %v928_v48, 0.0 }
 0x122   : > { %v927_v55 = vadd.f32 %v1229_v53, %v1135_v31  ;;  %v934_v59 = vmax.f32 %v926_v52, 0.0 }
 0x123   : > { %v937_v58 = vmax.f32 %v929_v54, 0.0 }
 0x124   : > { %v935_v60 = vmax.f32 %v927_v55, 0.0 }
 0x125   : > { %v1157_v61 = vpack.c.bf16 %v937_v58, %v936_v57 }
 0x126   : > { %v1152_v62 = vpack.c.bf16 %v935_v60, %v934_v59 }
 0x127   : > { %1161 = vst [vmem:[%s221_s6 + $0x18] sm:$0xff] %v1157_v61  }
 0x128   : > { %1160 = vst [vmem:[%s221_s6 + $0x10] sm:$0xff] %v1152_v62  }
 0x129 PF: > { %s13_s14 = sadd.s32 1, %s1305_s14   ;;  %s1521_s12 = smov %s1301_s13 }
 0x12a   : > { %p10_p5 = scmp.ge.s32.totalorder %s13_s14, 4   ;;  %s1522_s13 = smov %s1524_s15 }
 0x12c   :  { %12 = sbr.rel (!%p10_p5) target bundleno = 2 (0x2), region = 72 }

// kernel: bottleneck_forward.5
= control target key start
LH: loop header
LB: loop body
LE: loop exit
PB: predicated region body
PF: predicated region fallthrough
CT: control target
= control target key end

     0   :  { %s514_s12 = smov 0   ;;  %s516_s13 = smov 0   ;;  %s585_s0 = inlined_call_operand.vmem [shape: bf16[2,4,64,128], index: 0, kind: input, shape index: {}]   ;;  %s586_s1 = inlined_call_operand.vmem [shape: f32[1,128], index: 1, kind: input, shape index: {}]   ;;  %s587_s2 = inlined_call_operand.vmem [shape: f32[1,128], index: 2, kind: input, shape index: {}]   ;;  %s588_s3 = inlined_call_operand.vmem [shape: f32[2,4,64,128], index: 3, kind: output, shape index: {}]  }
   0x1   :  { %s518_s14 = smov 0   ;;  %s520_s15 = smov 0  }
   0x2   :  { %s522_s16 = smov 0  }
   0x3 LB: > { %s22_s17 = sadd.s32 1, %s484_s14  ;;  %s25_s18 = sadd.s32 1, %s488_s15  ;;  %s492_s16 = sphi %s522_s16, %s13_s16   ;;  %s488_s15 = sphi %s520_s15, %s592_s15   ;;  %s484_s14 = sphi %s518_s14, %s591_s14   ;;  %s480_s13 = sphi %s516_s13, %s590_s13   ;;  %s476_s12 = sphi %s514_s12, %s589_s12  }
   0x4   : > { %p23_p0 = scmp.ge.s32.totalorder %s22_s17, 4  ;;  %p384_p1 = scmp.ge.s32.totalorder %s492_s16, 1 }
   0x5   : > { %p157_p2 = scmp.lt.s32.totalorder %s492_s16, 9 }
   0x6   : > { %s594_s17 = smov (%p23_p0, %s22_s17), 0  ;;  %s596_s18 = smov (!%p23_p0, %s25_s18), %s488_s15 }
   0x7   : > { %p158_p3 = pnand %p384_p1, %p157_p2  ;;  %p27_p4 = scmp.ge.s32.totalorder %s596_s18, 2 }
   0x8   : > { %p189_p5 = scmp.lt.s32.totalorder (!%p158_p3), %s480_s13, 1  ;;  %p191_p6 = scmp.lt.s32.totalorder (!%p158_p3), %s476_s12, 3  ;;  %v391_v0 = vld [vmem:[%s586_s1] ss:$0 sm:$0xff] (!%p158_p3) }
   0x9   : > { %s598_s18 = smov (%p27_p4, %s596_s18), 0  ;;  %161 = sbr.rel (%p158_p3) target bundleno = 37 (0x25), region = 32 }
   0xa   : > { %v392_v9 = vld [vmem:[%s587_s2] ss:$0 sm:$0xff] (!%p158_p3) }
  0x10   : > { %s600_s13 = smov (!%p189_p5, %s480_s13), 1  ;;  %s602_s12 = smov (!%p191_p6, %s476_s12), 3 }
  0x11   : > { %s386_s19 = sshll.u32 %s600_s13, 5  ;;  %s385_s20 = sshll.u32 %s602_s12, 3 }
  0x12   : > { %s544_s21 = sadd.s32 %s386_s19, %s385_s20 }
  0x13   : > { %s387_s22 = sshll.u32 %s544_s21, 2  ;;  %s390_s30 = sshll.u32 %s544_s21, 3 }
  0x14   : > { %s197_s25 = scalar_lea.vmem %s585_s0, %s387_s22  ;;  %s560_s6 = scalar_lea.vmem %s588_s3, %s390_s30 }
  0x15   : > { %v396_v1 = vld [vmem:[%s197_s25] sm:$0xff]   ;;  %v411_v2 = vld [vmem:[%s197_s25 + $0x8] sm:$0xff]   ;;  %v412_v3 = vld [vmem:[%s197_s25 + $0x10] sm:$0xff]  }
  0x16   : > { %v397_v4 = vunpack.c.l.bf16 %v396_v1  ;;  %v398_v5 = vunpack.c.h.bf16 %v396_v1  ;;  %v401_v6 = vunpack.c.l.bf16 %v411_v2  ;;  %v402_v7 = vunpack.c.h.bf16 %v411_v2  ;;  %v413_v8 = vld [vmem:[%s197_s25 + $0x18] sm:$0xff]  }
  0x17   : > { %v405_v10 = vunpack.c.l.bf16 %v412_v3  ;;  %v406_v11 = vunpack.c.h.bf16 %v412_v3  ;;  %v409_v12 = vunpack.c.l.bf16 %v413_v8  ;;  %v410_v13 = vunpack.c.h.bf16 %v413_v8 }
  0x18   : > { %v230_v14 = vmul.f32 %v397_v4, %v391_v0  ;;  %v231_v15 = vmul.f32 %v398_v5, %v391_v0  ;;  %v232_v16 = vmul.f32 %v401_v6, %v391_v0  ;;  %v233_v17 = vmul.f32 %v402_v7, %v391_v0 }
  0x19   : > { %v234_v18 = vmul.f32 %v405_v10, %v391_v0  ;;  %v235_v19 = vmul.f32 %v406_v11, %v391_v0  ;;  %v236_v20 = vmul.f32 %v409_v12, %v391_v0  ;;  %v237_v21 = vmul.f32 %v410_v13, %v391_v0 }
  0x1a   : > { %v245_v22 = vadd.f32 %v392_v9, %v230_v14  ;;  %v246_v23 = vadd.f32 %v392_v9, %v231_v15  ;;  %v247_v24 = vadd.f32 %v392_v9, %v232_v16  ;;  %v248_v25 = vadd.f32 %v392_v9, %v233_v17 }
  0x1b   : > { %v249_v26 = vadd.f32 %v392_v9, %v234_v18  ;;  %v250_v27 = vadd.f32 %v392_v9, %v235_v19  ;;  %v251_v28 = vadd.f32 %v392_v9, %v236_v20  ;;  %v252_v29 = vadd.f32 %v392_v9, %v237_v21 }
  0x1c   : > { %vm253_vm0 = vcmp.gt.f32.partialorder %v245_v22, 0.0  ;;  %v261_v30 = vmul.f32 0.2, %v245_v22  ;;  %vm254_vm1 = vcmp.gt.f32.partialorder %v246_v23, 0.0  ;;  %v262_v31 = vmul.f32 0.2, %v246_v23 }
  0x1d   : > { %vm255_vm2 = vcmp.gt.f32.partialorder %v247_v24, 0.0  ;;  %v263_v32 = vmul.f32 0.2, %v247_v24  ;;  %vm256_vm3 = vcmp.gt.f32.partialorder %v248_v25, 0.0  ;;  %v264_v33 = vmul.f32 0.2, %v248_v25 }
  0x1e   : > { %v269_v34 = vsel %vm253_vm0, %v245_v22, %v261_v30  ;;  %v270_v35 = vsel %vm254_vm1, %v246_v23, %v262_v31  ;;  %vm257_vm4 = vcmp.gt.f32.partialorder %v249_v26, 0.0  ;;  %v265_v36 = vmul.f32 0.2, %v249_v26 }
  0x1f   : > { %277 = vst [vmem:[%s560_s6] sm:$0xff] %v269_v34  ;;  %278 = vst [vmem:[%s560_s6 + $0x8] sm:$0xff] %v270_v35  ;;  %v271_v37 = vsel %vm255_vm2, %v247_v24, %v263_v32  ;;  %v272_v38 = vsel %vm256_vm3, %v248_v25, %v264_v33  ;;  %vm258_vm5 = vcmp.gt.f32.partialorder %v250_v27, 0.0  ;;  %v266_v39 = vmul.f32 0.2, %v250_v27 }
  0x20   : > { %279 = vst [vmem:[%s560_s6 + $0x10] sm:$0xff] %v271_v37  ;;  %280 = vst [vmem:[%s560_s6 + $0x18] sm:$0xff] %v272_v38  ;;  %v273_v40 = vsel %vm257_vm4, %v249_v26, %v265_v36  ;;  %vm259_vm6 = vcmp.gt.f32.partialorder %v251_v28, 0.0  ;;  %v267_v41 = vmul.f32 0.2, %v251_v28  ;;  %vm260_vm7 = vcmp.gt.f32.partialorder %v252_v29, 0.0 }
  0x21   : > { %281 = vst [vmem:[%s560_s6 + $0x20] sm:$0xff] %v273_v40  ;;  %v274_v42 = vsel %vm258_vm5, %v250_v27, %v266_v39  ;;  %v268_v43 = vmul.f32 0.2, %v252_v29 }
  0x22   : > { %282 = vst [vmem:[%s560_s6 + $0x28] sm:$0xff] %v274_v42  ;;  %v275_v44 = vsel %vm259_vm6, %v251_v28, %v267_v41 }
  0x23   : > { %283 = vst [vmem:[%s560_s6 + $0x30] sm:$0xff] %v275_v44  ;;  %v276_v45 = vsel %vm260_vm7, %v252_v29, %v268_v43 }
  0x24   : > { %284 = vst [vmem:[%s560_s6 + $0x38] sm:$0xff] %v276_v45 }
  0x25 PF: > { %s13_s16 = sadd.s32 1, %s492_s16   ;;  %s589_s12 = smov %s484_s14 }
  0x26   : > { %p10_p7 = scmp.ge.s32.totalorder %s13_s16, 10   ;;  %s590_s13 = smov %s488_s15 }
  0x27   : > { %s591_s14 = smov %s594_s17  ;;  %s592_s15 = smov %s598_s18 }
  0x28   :  { %12 = sbr.rel (!%p10_p7) target bundleno = 3 (0x3), region = 62 }

// kernel: bottleneck_forward.4
= control target key start
LH: loop header
LB: loop body
LE: loop exit
PB: predicated region body
PF: predicated region fallthrough
CT: control target
= control target key end

     0   :  { %s5292_s18 = smov 0   ;;  %s5294_s19 = smov 0   ;;  %s6226_s0 = inlined_call_operand.vmem [shape: bf16[2,10,10,128], index: 0, kind: input, shape index: {}]   ;;  %s6227_s1 = inlined_call_operand.vmem [shape: bf16[4,4,128,128], index: 1, kind: input, shape index: {}]   ;;  %s6228_s2 = inlined_call_operand.vmem [shape: f32[1,128], index: 2, kind: input, shape index: {}]   ;;  %s6229_s3 = inlined_call_operand.vmem [shape: bf16[2,4,64,128], index: 3, kind: output, shape index: {0}]   ;;  %s6230_s4 = inlined_call_operand.vmem [shape: f32[2,1,128], index: 4, kind: output, shape index: {1}]   ;;  %s6231_s5 = inlined_call_operand.vmem [shape: f32[2,1,128], index: 5, kind: output, shape index: {2}]  }
   0x1   :  { %s5296_s20 = smov 0  }
   0x2 LB: > { %s28_s21 = sadd.s32 1, %s5256_s19  ;;  %p3731_p0 = scmp.ge.s32.totalorder %s5260_s20, 1  ;;  %s5260_s20 = sphi %s5296_s20, %s16_s20   ;;  %s5256_s19 = sphi %s5294_s19, %s6237_s19   ;;  %s5252_s18 = sphi %s5292_s18, %s6236_s18  }
   0x3   : > { %p30_p1 = scmp.ge.s32.totalorder %s28_s21, 2  ;;  %p227_p2 = scmp.lt.s32.totalorder %s5260_s20, 3 }
   0x5   : > { %s6239_s21 = smov (%p30_p1, %s28_s21), 0  ;;  %p228_p3 = pnand %p3731_p0, %p227_p2 }
   0x6   : > { %v5098_v0 = vld [vmem:[%s6227_s1 + $0x40] sm:$0xff] (!%p228_p3)   ;;  %p277_p4 = scmp.lt.s32.totalorder (!%p228_p3), %s5252_s18, 1  ;;  %v5100_v2 = vld [vmem:[%s6227_s1 + $0x48] sm:$0xff] (!%p228_p3)   ;;  %v5102_v4 = vld [vmem:[%s6227_s1 + $0x50] sm:$0xff] (!%p228_p3)   ;;  %vm465_vm0 = vcmask (!%p228_p3), 1042432   ;;  %vm466_vm1 = vcmask (!%p228_p3), 1046532  }
   0x7   : > { %231 = sbr.rel (%p228_p3) target bundleno = 515 (0x203), region = 32  ;;  %v5099_v1 = vld [vmem:[%s6227_s1 + $0x140] sm:$0xff] (!%p228_p3)   ;;  %4593 = vmatprep.subr.bf16.mxu0 (!%p228_p3), %v5098_v0  ;;  %v5101_v3 = vld [vmem:[%s6227_s1 + $0x148] sm:$0xff] (!%p228_p3)   ;;  %v5103_v5 = vld [vmem:[%s6227_s1 + $0x150] sm:$0xff] (!%p228_p3)   ;;  %vm326_vm2 = vsmask.f32 (!%p228_p3), 3328 }
   0x8   : > { %4689 = vmatprep.subr.bf16.mxu1 (!%p228_p3), %v5099_v1  ;;  %4594 = vmatpush3.bf16.msra.mxu0 (!%p228_p3), %v5098_v0  ;;  %v5104_v6 = vld [vmem:[%s6227_s1 + $0x58] sm:$0xff] (!%p228_p3)   ;;  %v5106_v8 = vld [vmem:[%s6227_s1 + $0x60] sm:$0xff] (!%p228_p3)   ;;  %v5108_v10 = vld [vmem:[%s6227_s1 + $0x68] sm:$0xff] (!%p228_p3)   ;;  %vm327_vm3 = vsmask.f32 (!%p228_p3), 7440 }
   0x9   : > { %4690 = vmatpush3.bf16.msra.mxu1 (!%p228_p3), %v5099_v1  ;;  %4595 = vmatprep.subr.bf16.mxu0 (!%p228_p3), %v5100_v2  ;;  %v5105_v7 = vld [vmem:[%s6227_s1 + $0x158] sm:$0xff] (!%p228_p3)   ;;  %v5107_v9 = vld [vmem:[%s6227_s1 + $0x160] sm:$0xff] (!%p228_p3)   ;;  %v5109_v11 = vld [vmem:[%s6227_s1 + $0x168] sm:$0xff] (!%p228_p3)  }
   0xa   : > { %4691 = vmatprep.subr.bf16.mxu1 (!%p228_p3), %v5101_v3  ;;  %v5110_v20 = vld [vmem:[%s6227_s1 + $0x70] sm:$0xff] (!%p228_p3)   ;;  %vm5375_vm4 = vmor (!%p228_p3), %vm465_vm0, %vm466_vm1  ;;  %v5112_v44 = vld [vmem:[%s6227_s1 + $0x78] sm:$0xff] (!%p228_p3)  }
   0xb   : > { %v5111_v24 = vld [vmem:[%s6227_s1 + $0x170] sm:$0xff] (!%p228_p3)   ;;  %vm5382_vm5 = vmor (!%p228_p3), %vm326_vm2, %vm327_vm3  ;;  %v5113_v50 = vld [vmem:[%s6227_s1 + $0x178] sm:$0xff] (!%p228_p3)  }
   0xc   : > { %4596 = vmatpush3.bf16.msra.mxu0 (!%p228_p3), %v5100_v2  ;;  %v5114_v62 = vld [vmem:[%s6227_s1] sm:$0xff] (!%p228_p3)   ;;  %v5224_v35 = vld [vmem:[%s6227_s1 + $0x2d0] sm:$0xff] (!%p228_p3)  }
   0xd   : > { %4692 = vmatpush3.bf16.msra.mxu1 (!%p228_p3), %v5101_v3  ;;  %4597 = vmatprep.subr.bf16.mxu0 (!%p228_p3), %v5102_v4 }
   0xe   : > { %s6241_s18 = smov (!%p277_p4, %s5252_s18), 1  ;;  %4693 = vmatprep.subr.bf16.mxu1 %v5103_v5 }
   0xf   : > { %s5073_s13 = smul.u32 80, %s6241_s18  ;;  %s4273_s17 = sshll.u32 %s6241_s18, 7 }
  0x10   : > { %4598 = vmatpush3.bf16.msra.mxu0 %v5102_v4  ;;  %s6157_s25 = scalar_lea.vmem %s6229_s3, %s4273_s17  ;;  %s302_s28 = scalar_lea.vmem %s6230_s4, %s6241_s18 }
  0x11   : > { %4694 = vmatpush3.bf16.msra.mxu1 %v5103_v5  ;;  %4599 = vmatprep.subr.bf16.mxu0 %v5104_v6  ;;  %s5346_s24 = scalar_lea.vmem %s6226_s0, %s5073_s13  ;;  %s308_s6 = scalar_lea.vmem %s6231_s5, %s6241_s18 }
  0x12   : > { %4695 = vmatprep.subr.bf16.mxu1 %v5105_v7  ;;  %v5355_v12 = vld [vmem:[%s5346_s24] sm:$0xf]  ;;  %v5358_v13 = vld [vmem:[%s5346_s24 + $0x8] sm:$0xf]  ;;  %v318_v14 = vld [vmem:[%s5346_s24 + $0x4] sm:$0x1] }
  0x13   : > { %v319_v15 = vld [vmem:[%s5346_s24 + $0xc] sm:$0x1]  ;;  %v330_v16 = vshrl.u32 %v5355_v12, 16  ;;  %v333_v17 = vshll.u32 %v5355_v12, 16  ;;  %v339_v18 = vshll.u32 %v318_v14, 16  ;;  %v344_v19 = vshrl.u32 %v5358_v13, 16 }
  0x14   : > { %4600 = vmatpush3.bf16.msra.mxu0 %v5104_v6  ;;  %v347_v21 = vshll.u32 %v5358_v13, 16  ;;  %v353_v22 = vshll.u32 %v319_v15, 16  ;;  %v470_v23 = vrot.slane %v318_v14, 5  ;;  %v441_v28 = vld [vmem:[%s5346_s24] sm:$0xe]  ;;  %v474_v34 = vrot.slane %v319_v15, 5 }
  0x15   : > { %4696 = vmatpush3.bf16.msra.mxu1 %v5105_v7  ;;  %4601 = vmatprep.subr.bf16.mxu0 %v5106_v8  ;;  %v332_v25 = vrot.slane %v330_v16, 4  ;;  %v335_v26 = vrot.slane %v333_v17, 5  ;;  %v346_v27 = vrot.slane %v344_v19, 4  ;;  %v341_v30 = vrot.slane %v339_v18, 5  ;;  %v442_v32 = vld [vmem:[%s5346_s24 + $0x8] sm:$0xe] }
  0x16   : > { %4697 = vmatprep.subr.bf16.mxu1 %v5107_v9  ;;  %v349_v31 = vrot.slane %v347_v21, 5  ;;  %v3735_v33 = vrot.slane %v441_v28, 9  ;;  %v355_v37 = vrot.slane %v353_v22, 5  ;;  %v3736_v38 = vrot.slane %v442_v32, 9  ;;  %v5389_v41 = vld [vmem:[%s5346_s24 + $0x10] sm:$0xf] }
  0x17   : > { %v336_v36 = vor.u32 %v335_v26, %v332_v25  ;;  %v5392_v42 = vld [vmem:[%s5346_s24 + $0x18] sm:$0xf]  ;;  %v320_v43 = vld [vmem:[%s5346_s24 + $0x14] sm:$0x1]  ;;  %v321_v47 = vld [vmem:[%s5346_s24 + $0x1c] sm:$0x1] }
  0x18   : > { %4602 = vmatpush3.bf16.msra.mxu0 %v5106_v8  ;;  %v350_v39 = vor.u32 %v349_v31, %v346_v27  ;;  %v471_v40 = vsel %vm5375_vm4, %v3735_v33, %v470_v23  ;;  %v475_v46 = vsel %vm5375_vm4, %v3736_v38, %v474_v34  ;;  %v358_v48 = vshrl.u32 %v5389_v41, 16  ;;  %v443_v55 = vld [vmem:[%s5346_s24 + $0x10] sm:$0xe]  ;;  %v444_v60 = vld [vmem:[%s5346_s24 + $0x18] sm:$0xe]  ;;  %v5115_v6 = vld [vmem:[%s6227_s1 + $0x100] sm:$0xff]  }
  0x19   : > { %4698 = vmatpush3.bf16.msra.mxu1 %v5107_v9  ;;  %4603 = vmatprep.subr.bf16.mxu0 %v5108_v10  ;;  %v337_v45 = vrot.slane %v336_v36, 4  ;;  %v361_v49 = vshll.u32 %v5389_v41, 16  ;;  %v3944_v52 = vcombine.low %v471_v40, %v475_v46  ;;  %v367_v53 = vshll.u32 %v320_v43, 16  ;;  %v5116_v23 = vld [vmem:[%s6227_s1 + $0x8] sm:$0xff]   ;;  %v5119_v25 = vld [vmem:[%s6227_s1 + $0x110] sm:$0xff]  }
  0x1a   : > { %4699 = vmatprep.subr.bf16.mxu1 %v5109_v11  ;;  %v351_v51 = vrot.slane %v350_v39, 4  ;;  %v372_v54 = vshrl.u32 %v5392_v42, 16  ;;  %v360_v57 = vrot.slane %v358_v48, 4  ;;  %v375_v59 = vshll.u32 %v5392_v42, 16  ;;  %v5447_v26 = vld [vmem:[%s5346_s24 + $0x20] sm:$0xf] }
  0x1b   : > { %v342_v56 = vsel %vm5382_vm5, %v337_v45, %v341_v30  ;;  %v363_v58 = vrot.slane %v361_v49, 5  ;;  %4705 = vmatprep.mubr.bf16.mxu1 %v3944_v52  ;;  %v369_v63 = vrot.slane %v367_v53, 5  ;;  %v381_v1 = vshll.u32 %v321_v47, 16  ;;  %v5450_v27 = vld [vmem:[%s5346_s24 + $0x28] sm:$0xf] }
  0x1c   : > { %4604 = vmatpush3.bf16.msra.mxu0 %v5108_v10  ;;  %v356_v61 = vsel %vm5382_vm5, %v351_v51, %v355_v37  ;;  %v374_v0 = vrot.slane %v372_v54, 4  ;;  %v377_v4 = vrot.slane %v375_v59, 5  ;;  %v3737_v5 = vrot.slane %v443_v55, 9  ;;  %v322_v28 = vld [vmem:[%s5346_s24 + $0x24] sm:$0x1] }
  0x1d   : > { %4700 = vmatpush3.bf16.msra.mxu1 %v5109_v11  ;;  %4605 = vmatprep.subr.bf16.mxu0 %v5110_v20  ;;  %v5417_v2 = vcombine.low %v342_v56, %v356_v61  ;;  %v364_v3 = vor.u32 %v363_v58, %v360_v57  ;;  %v478_v7 = vrot.slane %v320_v43, 5  ;;  %v3738_v8 = vrot.slane %v444_v60, 9  ;;  %v323_v30 = vld [vmem:[%s5346_s24 + $0x2c] sm:$0x1]  ;;  %v5120_v43 = vld [vmem:[%s6227_s1 + $0x18] sm:$0xff]  }
  0x1e   : > { %4701 = vmatprep.subr.bf16.mxu1 %v5111_v24  ;;  %v482_v9 = vrot.slane %v321_v47, 5  ;;  %v378_v11 = vor.u32 %v377_v4, %v374_v0  ;;  %v383_v14 = vrot.slane %v381_v1, 5  ;;  %v386_v31 = vshrl.u32 %v5447_v26, 16  ;;  %v445_v48 = vld [vmem:[%s5346_s24 + $0x20] sm:$0xe] }
  0x1f   : > { %4609 = vmatprep.mubr.bf16.mxu0 %v5417_v2  ;;  %v365_v10 = vrot.slane %v364_v3, 4  ;;  %v479_v15 = vsel %vm5375_vm4, %v3737_v5, %v478_v7  ;;  %v389_v32 = vshll.u32 %v5447_v26, 16  ;;  %v395_v33 = vshll.u32 %v322_v28, 16  ;;  %v5467_v56 = vld [vmem:[%s5346_s24 + $0x30] sm:$0xf] }
  0x20   : > { %4606 = vmatpush3.bf16.msra.mxu0 %v5110_v20  ;;  %v483_v16 = vsel %vm5375_vm4, %v3738_v8, %v482_v9  ;;  %v379_v18 = vrot.slane %v378_v11, 4  ;;  %v5117_v20 = vld [vmem:[%s6227_s1 + $0x108] sm:$0xff]   ;;  %v400_v34 = vshrl.u32 %v5450_v27, 16  ;;  %v403_v36 = vshll.u32 %v5450_v27, 16  ;;  %v5472_v59 = vld [vmem:[%s5346_s24 + $0x38] sm:$0xf] }
  0x21   : > { %4702 = vmatpush3.bf16.msra.mxu1 %v5111_v24  ;;  %4607 = vmatprep.subr.bf16.mxu0 %v5112_v44  ;;  %v370_v17 = vsel %vm5382_vm5, %v365_v10, %v369_v63  ;;  %v3945_v19 = vcombine.low %v479_v15, %v483_v16  ;;  %v5118_v24 = vld [vmem:[%s6227_s1 + $0x10] sm:$0xff]   ;;  %v409_v37 = vshll.u32 %v323_v30, 16  ;;  %v388_v38 = vrot.slane %v386_v31, 4  ;;  %v325_v1 = vld [vmem:[%s5346_s24 + $0x3c] sm:$0x1]  ;;  %v5122_v11 = vld [vmem:[%s6227_s1 + $0x20] sm:$0xff]  }
  0x22   : > { %4703 = vmatprep.subr.bf16.mxu1 %v5113_v50  ;;  %v384_v21 = vsel %vm5382_vm5, %v379_v18, %v383_v14  ;;  %v391_v39 = vrot.slane %v389_v32, 5  ;;  %v486_v40 = vrot.slane %v322_v28, 5  ;;  %v397_v45 = vrot.slane %v395_v33, 5  ;;  %v324_v60 = vld [vmem:[%s5346_s24 + $0x34] sm:$0x1]  ;;  %v5124_v31 = vld [vmem:[%s6227_s1 + $0x28] sm:$0xff]  }
  0x23   : > { %v5434_v22 = vcombine.low %v370_v17, %v384_v21  ;;  %v402_v46 = vrot.slane %v400_v34, 4  ;;  %v405_v47 = vrot.slane %v403_v36, 5  ;;  %v3739_v51 = vrot.slane %v445_v48, 9  ;;  %v447_v9 = vld [vmem:[%s5346_s24 + $0x30] sm:$0xe] }
  0x24   : > { %4608 = vmatpush3.bf16.msra.mxu0 %v5112_v44  ;;  %v5121_v44 = vld [vmem:[%s6227_s1 + $0x118] sm:$0xff]   ;;  %v392_v49 = vor.u32 %v391_v39, %v388_v38  ;;  %v490_v52 = vrot.slane %v323_v30, 5  ;;  %v411_v54 = vrot.slane %v409_v37, 5  ;;  %v414_v61 = vshrl.u32 %v5467_v56, 16  ;;  %v5127_v39 = vld [vmem:[%s6227_s1 + $0x130] sm:$0xff]  }
  0x25   : > { %4704 = vmatpush3.bf16.msra.mxu1 %v5113_v50  ;;  %4617 = vmatprep.subr.bf16.mxu0 %v5114_v62  ;;  %v446_v50 = vld [vmem:[%s5346_s24 + $0x28] sm:$0xe]  ;;  %v406_v53 = vor.u32 %v405_v47, %v402_v46  ;;  %v487_v58 = vsel %vm5375_vm4, %v3739_v51, %v486_v40  ;;  %v417_v3 = vshll.u32 %v5467_v56, 16  ;;  %v423_v4 = vshll.u32 %v324_v60, 16  ;;  %v448_v10 = vld [vmem:[%s5346_s24 + $0x38] sm:$0xe] }
  0x26   : > { %4713 = vmatprep.subr.bf16.mxu1 %v5115_v6  ;;  %v3740_v55 = vrot.slane %v446_v50, 9  ;;  %v393_v57 = vrot.slane %v392_v49, 4  ;;  %v416_v7 = vrot.slane %v414_v61, 4  ;;  %v428_v8 = vshrl.u32 %v5472_v59, 16  ;;  %v5129_v49 = vld [vmem:[%s6227_s1 + $0x138] sm:$0xff]   ;;  %v5134_v51 = vld [vmem:[%s6227_s1 + $0x88] sm:$0xff]  }
  0x27   : > { %4610 = vmatmul.mubr.bf16.vlgmr.msra.gmra.mrb[0].mxu0 %v5434_v22  ;;  %v407_v63 = vrot.slane %v406_v53, 4  ;;  %v419_v15 = vrot.slane %v417_v3, 5  ;;  %v425_v16 = vrot.slane %v423_v4, 5  ;;  %v431_v17 = vshll.u32 %v5472_v59, 16  ;;  %v5128_v50 = vld [vmem:[%s6227_s1 + $0x38] sm:$0xff]   ;;  %v5136_v3 = vld [vmem:[%s6227_s1 + $0x90] sm:$0xff]  }
  0x28   : > { %4706 = vmatmul.mubr.bf16.vlgmr.msra.gmra.mrb[0].mxu1 %v3945_v19  ;;  %4618 = vmatpush3.bf16.msra.mxu0 %v5114_v62  ;;  %v5123_v62 = vld [vmem:[%s6227_s1 + $0x120] sm:$0xff]   ;;  %v491_v0 = vsel %vm5375_vm4, %v3740_v55, %v490_v52  ;;  %v398_v5 = vsel %vm5382_vm5, %v393_v57, %v397_v45  ;;  %v430_v19 = vrot.slane %v428_v8, 4  ;;  %v3741_v21 = vrot.slane %v447_v9, 9  ;;  %v5126_v45 = vld [vmem:[%s6227_s1 + $0x30] sm:$0xff]   ;;  %v5135_v52 = vld [vmem:[%s6227_s1 + $0x188] sm:$0xff]  }
  0x29   : > { %4714 = vmatpush3.bf16.msra.mxu1 %v5115_v6  ;;  %4619 = vmatprep.subr.bf16.mxu0 %v5116_v23  ;;  %v3946_v6 = vcombine.low %v487_v58, %v491_v0  ;;  %v412_v14 = vsel %vm5382_vm5, %v407_v63, %v411_v54  ;;  %v494_v28 = vrot.slane %v324_v60, 5  ;;  %v3742_v30 = vrot.slane %v448_v10, 9  ;;  %v3743_v54 = vld [vmem:[%s5346_s24 + $0x8] sm:$0xf]  ;;  %v3744_v55 = vld [vmem:[%s5346_s24 + $0x10] sm:$0xf] }
  0x2a   : > { %4715 = vmatprep.subr.bf16.mxu1 %v5117_v20  ;;  %v5494_v18 = vcombine.low %v398_v5, %v412_v14  ;;  %v498_v32 = vrot.slane %v325_v1, 5  ;;  %v3835_v48 = vcombine.low %v5355_v12, %v5358_v13  ;;  %v5132_v12 = vld [vmem:[%s6227_s1 + $0x180] sm:$0xff]   ;;  %v3837_v53 = vcombine.low %v5447_v26, %v5450_v27  ;;  %v5137_v60 = vld [vmem:[%s6227_s1 + $0x190] sm:$0xff]   ;;  %v5553_v61 = vld [vmem:[%s5346_s24 + $0xc] sm:$0x1] }
  0x2b   : > { %4709 = vmatprep.mubr.bf16.mxu1 %v3946_v6  ;;  %v495_v37 = vsel %vm5375_vm4, %v3741_v21, %v494_v28  ;;  %v5131_v13 = vld [vmem:[%s6227_s1 + $0x80] sm:$0xff]   ;;  %v532_v57 = vshrl.u32 %v3744_v55, 16  ;;  %v535_v58 = vshll.u32 %v3744_v55, 16  ;;  %v5556_v26 = vld [vmem:[%s5346_s24 + $0x14] sm:$0x1]  ;;  %v527_v0 = vshll.u32 %v5553_v61, 16 }
  0x2c   : > { %4620 = vmatpush3.bf16.msra.mxu0 %v5116_v23  ;;  %v5125_v23 = vld [vmem:[%s6227_s1 + $0x128] sm:$0xff]   ;;  %4613 = vmatprep.mubr.bf16.mxu0 %v5494_v18  ;;  %v499_v38 = vsel %vm5375_vm4, %v3742_v30, %v498_v32  ;;  %v5564_v6 = vld [vmem:[%s5346_s24 + $0x18] sm:$0xf]  ;;  %v5140_v32 = vld [vmem:[%s6227_s1 + $0xa0] sm:$0xff]  }
  0x2d   : > { %4716 = vmatpush3.bf16.msra.mxu1 %v5117_v20  ;;  %4621 = vmatprep.subr.bf16.mxu0 %v5118_v24  ;;  %v437_v20 = vshll.u32 %v325_v1, 16  ;;  %v537_v63 = vrot.slane %v535_v58, 5  ;;  %v541_v1 = vshll.u32 %v5556_v26, 16  ;;  %v529_v8 = vrot.slane %v527_v0, 5  ;;  %v5138_v14 = vld [vmem:[%s6227_s1 + $0x98] sm:$0xff]  }
  0x2e   : > { %4717 = vmatprep.subr.bf16.mxu1 %v5119_v25  ;;  %v546_v10 = vshrl.u32 %v5564_v6, 16 }
  0x2f   : > { %v439_v36 = vrot.slane %v437_v20, 5  ;;  %v543_v9 = vrot.slane %v541_v1, 5 }
  0x30   : > { %4622 = vmatpush3.bf16.msra.mxu0 %v5118_v24  ;;  %v420_v24 = vor.u32 %v419_v15, %v416_v7  ;;  %v5567_v7 = vld [vmem:[%s5346_s24 + $0x20] sm:$0xf]  ;;  %v5139_v15 = vld [vmem:[%s6227_s1 + $0x198] sm:$0xff]   ;;  %v548_v28 = vrot.slane %v546_v10, 4 }
  0x31   : > { %4718 = vmatpush3.bf16.msra.mxu1 %v5119_v25  ;;  %4623 = vmatprep.subr.bf16.mxu0 %v5120_v43  ;;  %v433_v25 = vrot.slane %v431_v17, 5  ;;  %v560_v20 = vshrl.u32 %v5567_v7, 16  ;;  %v563_v21 = vshll.u32 %v5567_v7, 16  ;;  %v5148_v10 = vld [vmem:[%s6227_s1 + $0xb8] sm:$0xff]  }
  0x32   : > { %4719 = vmatprep.subr.bf16.mxu1 %v5121_v44  ;;  %v421_v33 = vrot.slane %v420_v24, 4 }
  0x33   : > { %v434_v34 = vor.u32 %v433_v25, %v430_v19  ;;  %v5579_v19 = vcombine.low %v3743_v54, %v3744_v55 }
  0x34   : > { %4624 = vmatpush3.bf16.msra.mxu0 %v5120_v43  ;;  %v426_v40 = vsel %vm5382_vm5, %v421_v33, %v425_v16  ;;  %v3838_v16 = vcombine.low %v5467_v56, %v5472_v59  ;;  %v5592_v59 = vld [vmem:[%s5346_s24 + $0x24] sm:$0x1]  ;;  %v562_v33 = vrot.slane %v560_v20, 4 }
  0x35   : > { %4720 = vmatpush3.bf16.msra.mxu1 %v5121_v44  ;;  %4625 = vmatprep.subr.bf16.mxu0 %v5122_v11  ;;  %v435_v43 = vrot.slane %v434_v34, 4  ;;  %v3947_v44 = vcombine.low %v495_v37, %v499_v38  ;;  %v565_v34 = vrot.slane %v563_v21, 5  ;;  %v569_v37 = vshll.u32 %v5592_v59, 16 }
  0x36   : > { %4721 = vmatprep.subr.bf16.mxu1 %v5123_v62 }
  0x37   : > { %v440_v46 = vsel %vm5382_vm5, %v435_v43, %v439_v36  ;;  %4710 = vmatmul.mubr.bf16.gmra.mrb[4].mxu1 %v3947_v44  ;;  %v566_v43 = vor.u32 %v565_v34, %v562_v33  ;;  %v5146_v44 = vld [vmem:[%s6227_s1 + $0x1b0] sm:$0xff]  }
  0x38   : > { %4626 = vmatpush3.bf16.msra.mxu0 %v5122_v11  ;;  %v5517_v47 = vcombine.low %v426_v40, %v440_v46  ;;  %4729 = vmatprep.mubr.bf16.mxu1 %v5417_v2  ;;  %v3836_v2 = vcombine.low %v5389_v41, %v5392_v42  ;;  %v518_v41 = vshrl.u32 %v3743_v54, 16  ;;  %v521_v42 = vshll.u32 %v3743_v54, 16  ;;  %v5142_v40 = vld [vmem:[%s6227_s1 + $0xa8] sm:$0xff]   ;;  %v5632_v54 = vld [vmem:[%s5346_s24 + $0x34] sm:$0x1] }
  0x39   : > { %4722 = vmatpush3.bf16.msra.mxu1 %v5123_v62  ;;  %4627 = vmatprep.subr.bf16.mxu0 %v5124_v31  ;;  %v534_v62 = vrot.slane %v532_v57, 4  ;;  %v549_v11 = vshll.u32 %v5564_v6, 16 }
  0x3a   : > { %4723 = vmatprep.subr.bf16.mxu1 %v5125_v23  ;;  %4614 = vmatmul.mubr.bf16.gmra.mrb[4].mxu0 %v5517_v47  ;;  %v523_v27 = vrot.slane %v521_v42, 5  ;;  %v5149_v42 = vld [vmem:[%s6227_s1 + $0x1b8] sm:$0xff]  }
  0x3b   : > { %4633 = vmatprep.mubr.bf16.mxu0 %v3835_v48  ;;  %v538_v5 = vor.u32 %v537_v63, %v534_v62  ;;  %v551_v30 = vrot.slane %v549_v11, 5  ;;  %v5616_v48 = vld [vmem:[%s5346_s24 + $0x28] sm:$0xf]  ;;  %v597_v63 = vshll.u32 %v5632_v54, 16 }
  0x3c   : > { %4628 = vmatpush3.bf16.msra.mxu0 %v5124_v31  ;;  %v5141_v31 = vld [vmem:[%s6227_s1 + $0x1a0] sm:$0xff]  }
  0x3d   : > { %4724 = vmatpush3.bf16.msra.mxu1 %v5125_v23  ;;  %4629 = vmatprep.subr.bf16.mxu0 %v5126_v45  ;;  %v5584_v23 = vld [vmem:[%s5346_s24 + $0x1c] sm:$0x1]  ;;  %v552_v38 = vor.u32 %v551_v30, %v548_v28 }
  0x3e   : > { %4725 = vmatprep.subr.bf16.mxu1 %v5127_v39  ;;  %v555_v36 = vshll.u32 %v5584_v23, 16 }
  0x3f   : > { %v553_v46 = vrot.slane %v552_v38, 4 }
  0x40   : > { %4630 = vmatpush3.bf16.msra.mxu0 %v5126_v45  ;;  %v557_v45 = vrot.slane %v555_v36, 5 }
  0x41   : > { %4726 = vmatpush3.bf16.msra.mxu1 %v5127_v39  ;;  %4631 = vmatprep.subr.bf16.mxu0 %v5128_v50  ;;  %v5143_v39 = vld [vmem:[%s6227_s1 + $0x1a8] sm:$0xff]  }
  0x42   : > { %4727 = vmatprep.subr.bf16.mxu1 %v5129_v49  ;;  %v558_v11 = vsel %vm5382_vm5, %v553_v46, %v557_v45  ;;  %v659_v45 = vrot.slane %v5556_v26, 5  ;;  %v5155_v46 = vld [vmem:[%s6227_s1 + $0x1c8] sm:$0xff]  }
  0x43   : > { %v5154_v26 = vld [vmem:[%s6227_s1 + $0xc8] sm:$0xff]  }
  0x44   : > { %4632 = vmatpush3.bf16.msra.mxu0 %v5128_v50  ;;  %v5145_v50 = vld [vmem:[%s6227_s1 + $0xb0] sm:$0xff]  }
  0x45   : > { %4728 = vmatpush3.bf16.msra.mxu1 %v5129_v49  ;;  %4641 = vmatprep.subr.bf16.mxu0 %v5131_v13  ;;  %v5619_v49 = vld [vmem:[%s5346_s24 + $0x30] sm:$0xf] }
  0x46   : > { %4737 = vmatprep.subr.bf16.mxu1 %v5132_v12 }
  0x47   : > { %4634 = vmatmul.mubr.bf16.vlgmr.msra.gmra.mrb[0].mxu0 %v3836_v2  ;;  %v588_v2 = vshrl.u32 %v5619_v49, 16 }
  0x48   : > { %4730 = vmatmul.mubr.bf16.vlgmr.msra.gmra.mrb[0].mxu1 %v5434_v22  ;;  %v520_v22 = vrot.slane %v518_v41, 4  ;;  %4642 = vmatpush3.bf16.msra.mxu0 %v5131_v13  ;;  %v577_v13 = vshll.u32 %v5616_v48, 16  ;;  %v5636_v41 = vld [vmem:[%s5346_s24 + $0x38] sm:$0xf] }
  0x49   : > { %4738 = vmatpush3.bf16.msra.mxu1 %v5132_v12  ;;  %4733 = vmatprep.mubr.bf16.mxu1 %v5494_v18  ;;  %v539_v18 = vrot.slane %v538_v5, 4  ;;  %v574_v12 = vshrl.u32 %v5616_v48, 16  ;;  %v602_v0 = vshrl.u32 %v5636_v41, 16  ;;  %v605_v1 = vshll.u32 %v5636_v41, 16 }
  0x4a   : > { %4739 = vmatprep.subr.bf16.mxu1 %v5135_v52  ;;  %4637 = vmatprep.mubr.bf16.mxu0 %v3837_v53  ;;  %v524_v4 = vor.u32 %v523_v27, %v520_v22  ;;  %v567_v53 = vrot.slane %v566_v43, 4  ;;  %v579_v58 = vrot.slane %v577_v13, 5  ;;  %v5642_v27 = vld [vmem:[%s5346_s24 + $0x40] sm:$0xf]  ;;  %v3760_v43 = vld [vmem:[%s5346_s24 + $0x10] sm:$0xe] }
  0x4b   : > { %4643 = vmatprep.subr.bf16.mxu0 %v5134_v51  ;;  %v544_v56 = vsel %vm5382_vm5, %v539_v18, %v543_v9  ;;  %v576_v57 = vrot.slane %v574_v12, 4  ;;  %v616_v5 = vshrl.u32 %v5642_v27, 16  ;;  %v5650_v9 = vld [vmem:[%s5346_s24 + $0x3c] sm:$0x1] }
  0x4c   : > { %v525_v17 = vrot.slane %v524_v4, 4  ;;  %4644 = vmatpush3.bf16.msra.mxu0 %v5134_v51  ;;  %v591_v51 = vshll.u32 %v5619_v49, 16  ;;  %v611_v30 = vshll.u32 %v5650_v9, 16 }
  0x4d   : > { %4740 = vmatpush3.bf16.msra.mxu1 %v5135_v52  ;;  %4645 = vmatprep.subr.bf16.mxu0 %v5136_v3  ;;  %v5629_v52 = vld [vmem:[%s5346_s24 + $0x2c] sm:$0x1]  ;;  %v618_v21 = vrot.slane %v616_v5, 4  ;;  %v5167_v5 = vld [vmem:[%s6227_s1 + $0x1f0] sm:$0xff]  }
  0x4e   : > { %4741 = vmatprep.subr.bf16.mxu1 %v5137_v60  ;;  %v530_v24 = vsel %vm5382_vm5, %v525_v17, %v529_v8  ;;  %v583_v55 = vshll.u32 %v5629_v52, 16  ;;  %v593_v22 = vrot.slane %v591_v51, 5  ;;  %v619_v8 = vshll.u32 %v5642_v27, 16  ;;  %v5658_v17 = vld [vmem:[%s5346_s24 + $0x44] sm:$0x1] }
  0x4f   : > { %v5594_v25 = vcombine.low %v530_v24, %v544_v56  ;;  %4638 = vmatmul.mubr.bf16.gmra.mrb[4].mxu0 %v3838_v16  ;;  %v607_v16 = vrot.slane %v605_v1, 5  ;;  %v613_v12 = vrot.slane %v611_v30, 5  ;;  %v663_v1 = vrot.slane %v5584_v23, 5  ;;  %v3764_v23 = vld [vmem:[%s5346_s24 + $0x30] sm:$0xe] }
  0x50   : > { %4734 = vmatmul.mubr.bf16.gmra.mrb[4].mxu1 %v5517_v47  ;;  %4646 = vmatpush3.bf16.msra.mxu0 %v5136_v3  ;;  %v571_v47 = vrot.slane %v569_v37, 5  ;;  %v585_v62 = vrot.slane %v583_v55, 5  ;;  %v580_v3 = vor.u32 %v579_v58, %v576_v57  ;;  %v621_v24 = vrot.slane %v619_v8, 5  ;;  %v5151_v37 = vld [vmem:[%s6227_s1 + $0xc0] sm:$0xff]   ;;  %v3761_v8 = vld [vmem:[%s5346_s24 + $0x18] sm:$0xe] }
  0x51   : > { %4742 = vmatpush3.bf16.msra.mxu1 %v5137_v60  ;;  %4657 = vmatprep.mubr.bf16.mxu0 %v5579_v19  ;;  %v590_v60 = vrot.slane %v588_v2, 4  ;;  %v5687_v2 = vcombine.low %v5564_v6, %v5567_v7 }
  0x52   : > { %4743 = vmatprep.subr.bf16.mxu1 %v5139_v15  ;;  %4647 = vmatprep.subr.bf16.mxu0 %v5138_v14  ;;  %v581_v18 = vrot.slane %v580_v3, 4  ;;  %v572_v56 = vsel %vm5382_vm5, %v567_v53, %v571_v47  ;;  %v622_v36 = vor.u32 %v621_v24, %v618_v21  ;;  %v3768_v53 = vrot.slane %v3760_v43, 9  ;;  %v5168_v21 = vld [vmem:[%s6227_s1 + $0xf8] sm:$0xff]   ;;  %v5171_v24 = vld [vmem:[%s6227_s1 + $0x340] sm:$0xff]  }
  0x53   : > { %4753 = vmatprep.mubr.bf16.mxu1 %v5594_v25  ;;  %v594_v4 = vor.u32 %v593_v22, %v590_v60  ;;  %v5674_v38 = vcombine.low %v558_v11, %v572_v56  ;;  %v5159_v60 = vld [vmem:[%s6227_s1 + $0x1d8] sm:$0xff]   ;;  %v5723_v22 = vcombine.low %v5636_v41, %v5642_v27  ;;  %v5160_v41 = vld [vmem:[%s6227_s1 + $0xe0] sm:$0xff]   ;;  %v5162_v27 = vld [vmem:[%s6227_s1 + $0xe8] sm:$0xff]   ;;  %v667_v3 = vrot.slane %v5592_v59, 5 }
  0x54   : > { %4648 = vmatpush3.bf16.msra.mxu0 %v5138_v14  ;;  %v599_v14 = vrot.slane %v597_v63, 5  ;;  %v586_v33 = vsel %vm5382_vm5, %v581_v18, %v585_v62  ;;  %v660_v55 = vsel %vm5375_vm4, %v3768_v53, %v659_v45  ;;  %v5158_v62 = vld [vmem:[%s6227_s1 + $0xd8] sm:$0xff]   ;;  %v5161_v63 = vld [vmem:[%s6227_s1 + $0x1e0] sm:$0xff]   ;;  %v5166_v11 = vld [vmem:[%s6227_s1 + $0xf0] sm:$0xff]  }
  0x55   : > { %4744 = vmatpush3.bf16.msra.mxu1 %v5139_v15  ;;  %4649 = vmatprep.subr.bf16.mxu0 %v5140_v32  ;;  %v604_v15 = vrot.slane %v602_v0, 4  ;;  %v595_v20 = vrot.slane %v594_v4, 4  ;;  %v5163_v0 = vld [vmem:[%s6227_s1 + $0x1e8] sm:$0xff]   ;;  %v671_v4 = vrot.slane %v5629_v52, 5  ;;  %v5169_v59 = vld [vmem:[%s6227_s1 + $0x1f8] sm:$0xff]   ;;  %v3769_v52 = vrot.slane %v3761_v8, 9 }
  0x56   : > { %4745 = vmatprep.subr.bf16.mxu1 %v5141_v31  ;;  %v5173_v45 = vld [vmem:[%s6227_s1 + $0x348] sm:$0xff]   ;;  %v5179_v53 = vld [vmem:[%s6227_s1 + $0x360] sm:$0xff]   ;;  %v5887_v8 = vld [vmem:[%s5346_s24 + $0x18] sm:$0xf] }
  0x57   : > { %v608_v28 = vor.u32 %v607_v16, %v604_v15  ;;  %v600_v34 = vsel %vm5382_vm5, %v595_v20, %v599_v14  ;;  %v3763_v14 = vld [vmem:[%s5346_s24 + $0x28] sm:$0xe]  ;;  %v675_v16 = vrot.slane %v5632_v54, 5  ;;  %v3772_v20 = vrot.slane %v3764_v23, 9 }
  0x58   : > { %4650 = vmatpush3.bf16.msra.mxu0 %v5140_v32  ;;  %v5152_v32 = vld [vmem:[%s6227_s1 + $0x1c0] sm:$0xff]   ;;  %v3771_v18 = vrot.slane %v3763_v14, 9  ;;  %v664_v56 = vsel %vm5375_vm4, %v3769_v52, %v663_v1  ;;  %v5192_v1 = vld [vmem:[%s6227_s1 + $0x218] sm:$0xff]   ;;  %v717_v23 = vshrl.u32 %v5887_v8, 16  ;;  %v5198_v52 = vld [vmem:[%s6227_s1 + $0x230] sm:$0xff]  }
  0x59   : > { %4746 = vmatpush3.bf16.msra.mxu1 %v5141_v31  ;;  %4651 = vmatprep.subr.bf16.mxu0 %v5142_v40  ;;  %v625_v31 = vshll.u32 %v5658_v17, 16  ;;  %v609_v47 = vrot.slane %v608_v28, 4  ;;  %v3765_v28 = vld [vmem:[%s5346_s24 + $0x38] sm:$0xe] }
  0x5a   : > { %4747 = vmatprep.subr.bf16.mxu1 %v5143_v39  ;;  %v672_v30 = vsel %vm5375_vm4, %v3771_v18, %v671_v4  ;;  %v3773_v43 = vrot.slane %v3765_v28, 9  ;;  %v5194_v4 = vld [vmem:[%s6227_s1 + $0x220] sm:$0xff]  }
  0x5b   : > { %v627_v13 = vrot.slane %v625_v31, 5  ;;  %v614_v6 = vsel %vm5382_vm5, %v609_v47, %v613_v12  ;;  %v676_v31 = vsel %vm5375_vm4, %v3772_v20, %v675_v16  ;;  %v5175_v47 = vld [vmem:[%s6227_s1 + $0x350] sm:$0xff]   ;;  %v719_v20 = vrot.slane %v717_v23, 4  ;;  %v5203_v28 = vld [vmem:[%s6227_s1 + $0x380] sm:$0xff]  }
  0x5c   : > { %4652 = vmatpush3.bf16.msra.mxu0 %v5142_v40  ;;  %v3759_v40 = vld [vmem:[%s5346_s24 + $0x8] sm:$0xe]  ;;  %v5174_v12 = vld [vmem:[%s6227_s1 + $0x250] sm:$0xff]  }
  0x5d   : > { %4748 = vmatpush3.bf16.msra.mxu1 %v5143_v39  ;;  %4653 = vmatprep.subr.bf16.mxu0 %v5145_v50  ;;  %v5676_v39 = vcombine.low %v586_v33, %v600_v34  ;;  %v3767_v51 = vrot.slane %v3759_v40, 9  ;;  %v5170_v33 = vld [vmem:[%s6227_s1 + $0x240] sm:$0xff]   ;;  %v5784_v40 = vcombine.low %v672_v30, %v676_v31 }
  0x5e   : > { %4749 = vmatprep.subr.bf16.mxu1 %v5146_v44 }
  0x60   : > { %4654 = vmatpush3.bf16.msra.mxu0 %v5145_v50  ;;  %v623_v50 = vrot.slane %v622_v36, 4  ;;  %v679_v36 = vrot.slane %v5650_v9, 5  ;;  %v5172_v9 = vld [vmem:[%s6227_s1 + $0x248] sm:$0xff]  }
  0x61   : > { %4750 = vmatpush3.bf16.msra.mxu1 %v5146_v44  ;;  %4655 = vmatprep.subr.bf16.mxu0 %v5148_v10  ;;  %v655_v44 = vrot.slane %v5553_v61, 5  ;;  %v5691_v61 = vcombine.low %v5616_v48, %v5619_v49  ;;  %v5157_v48 = vld [vmem:[%s6227_s1 + $0x1d0] sm:$0xff]  }
  0x62   : > { %4751 = vmatprep.subr.bf16.mxu1 %v5149_v42  ;;  %v628_v7 = vsel %vm5382_vm5, %v623_v50, %v627_v13  ;;  %v5177_v13 = vld [vmem:[%s6227_s1 + $0x358] sm:$0xff]  }
  0x63   : > { %v656_v49 = vsel %vm5375_vm4, %v3767_v51, %v655_v44  ;;  %v5714_v57 = vcombine.low %v614_v6, %v628_v7  ;;  %v5176_v51 = vld [vmem:[%s6227_s1 + $0x258] sm:$0xff]   ;;  %v5181_v6 = vld [vmem:[%s6227_s1 + $0x368] sm:$0xff]  }
  0x64   : > { %4656 = vmatpush3.bf16.msra.mxu0 %v5148_v10  ;;  %v5716_v58 = vcombine.low %v656_v49, %v660_v55  ;;  %v3762_v10 = vld [vmem:[%s5346_s24 + $0x20] sm:$0xe]  ;;  %v5180_v7 = vld [vmem:[%s6227_s1 + $0x268] sm:$0xff]   ;;  %v5182_v49 = vld [vmem:[%s6227_s1 + $0x270] sm:$0xff]  }
  0x65   : > { %4752 = vmatpush3.bf16.msra.mxu1 %v5149_v42  ;;  %4665 = vmatprep.subr.bf16.mxu0 %v5151_v37  ;;  %v5156_v42 = vld [vmem:[%s6227_s1 + $0xd0] sm:$0xff]   ;;  %v3770_v15 = vrot.slane %v3762_v10, 9  ;;  %v5185_v55 = vld [vmem:[%s6227_s1 + $0x378] sm:$0xff]  }
  0x66   : > { %4761 = vmatprep.subr.bf16.mxu1 %v5152_v32  ;;  %v5199_v10 = vld [vmem:[%s6227_s1 + $0x330] sm:$0xff]  }
  0x67   : > { %4658 = vmatmul.mubr.bf16.vlgmr.msra.gmra.mrb[0].mxu0 %v5687_v2  ;;  %v668_v54 = vsel %vm5375_vm4, %v3770_v15, %v667_v3  ;;  %v5195_v3 = vld [vmem:[%s6227_s1 + $0x320] sm:$0xff]   ;;  %v5201_v15 = vld [vmem:[%s6227_s1 + $0x338] sm:$0xff]  }
  0x68   : > { %4754 = vmatmul.mubr.bf16.vlgmr.msra.gmra.mrb[0].mxu1 %v5674_v38  ;;  %4666 = vmatpush3.bf16.msra.mxu0 %v5151_v37  ;;  %v5780_v34 = vcombine.low %v664_v56, %v668_v54  ;;  %v683_v37 = vrot.slane %v5658_v17, 5  ;;  %v680_v17 = vsel %vm5375_vm4, %v3773_v43, %v679_v36  ;;  %v5909_v56 = vld [vmem:[%s5346_s24 + $0x1c] sm:$0x1]  ;;  %v5205_v36 = vld [vmem:[%s6227_s1 + $0x388] sm:$0xff]  }
  0x69   : > { %4762 = vmatpush3.bf16.msra.mxu1 %v5152_v32  ;;  %4757 = vmatprep.mubr.bf16.mxu1 %v5676_v39  ;;  %v3766_v32 = vld [vmem:[%s5346_s24 + $0x40] sm:$0xe]  ;;  %v5200_v54 = vld [vmem:[%s6227_s1 + $0x238] sm:$0xff]  }
  0x6a   : > { %4763 = vmatprep.subr.bf16.mxu1 %v5155_v46  ;;  %4661 = vmatprep.mubr.bf16.mxu0 %v5691_v61  ;;  %v3774_v44 = vrot.slane %v3766_v32, 9 }
  0x6b   : > { %4667 = vmatprep.subr.bf16.mxu0 %v5154_v26 }
  0x6c   : > { %4668 = vmatpush3.bf16.msra.mxu0 %v5154_v26  ;;  %v5178_v26 = vld [vmem:[%s6227_s1 + $0x260] sm:$0xff]  }
  0x6d   : > { %4764 = vmatpush3.bf16.msra.mxu1 %v5155_v46  ;;  %4669 = vmatprep.subr.bf16.mxu0 %v5156_v42  ;;  %v684_v46 = vsel %vm5375_vm4, %v3774_v44, %v683_v37 }
  0x6e   : > { %4765 = vmatprep.subr.bf16.mxu1 %v5157_v48  ;;  %v5803_v50 = vcombine.low %v680_v17, %v684_v46  ;;  %v5945_v46 = vld [vmem:[%s5346_s24 + $0x20] sm:$0xf] }
  0x6f   : > { %4662 = vmatmul.mubr.bf16.gmra.mrb[4].mxu0 %v5723_v22 }
  0x70   : > { %4758 = vmatmul.mubr.bf16.gmra.mrb[4].mxu1 %v5714_v57  ;;  %4670 = vmatpush3.bf16.msra.mxu0 %v5156_v42  ;;  %v5184_v42 = vld [vmem:[%s6227_s1 + $0x278] sm:$0xff]  }
  0x71   : > { %4766 = vmatpush3.bf16.msra.mxu1 %v5157_v48  ;;  %4777 = vmatprep.mubr.bf16.mxu1 %v5716_v58  ;;  %v5183_v48 = vld [vmem:[%s6227_s1 + $0x370] sm:$0xff]  }
  0x72   : > { %4767 = vmatprep.subr.bf16.mxu1 %v5159_v60  ;;  %4681 = vmatprep.mubr.bf16.mxu0 %v5594_v25 }
  0x73   : > { %4671 = vmatprep.subr.bf16.mxu0 %v5158_v62 }
  0x74   : > { %4672 = vmatpush3.bf16.msra.mxu0 %v5158_v62  ;;  %v5189_v62 = vld [vmem:[%s6227_s1 + $0x308] sm:$0xff]  }
  0x75   : > { %4768 = vmatpush3.bf16.msra.mxu1 %v5159_v60  ;;  %4673 = vmatprep.subr.bf16.mxu0 %v5160_v41  ;;  %v5186_v60 = vld [vmem:[%s6227_s1 + $0x200] sm:$0xff]  }
  0x76   : > { %4769 = vmatprep.subr.bf16.mxu1 %v5161_v63 }
  0x78   : > { %4674 = vmatpush3.bf16.msra.mxu0 %v5160_v41  ;;  %v5191_v41 = vld [vmem:[%s6227_s1 + $0x310] sm:$0xff]  }
  0x79   : > { %4770 = vmatpush3.bf16.msra.mxu1 %v5161_v63  ;;  %4675 = vmatprep.subr.bf16.mxu0 %v5162_v27  ;;  %v5188_v63 = vld [vmem:[%s6227_s1 + $0x208] sm:$0xff]  }
  0x7a   : > { %4771 = vmatprep.subr.bf16.mxu1 %v5163_v0 }
  0x7c   : > { %4676 = vmatpush3.bf16.msra.mxu0 %v5162_v27  ;;  %v5190_v27 = vld [vmem:[%s6227_s1 + $0x210] sm:$0xff]  }
  0x7d   : > { %4772 = vmatpush3.bf16.msra.mxu1 %v5163_v0  ;;  %4677 = vmatprep.subr.bf16.mxu0 %v5166_v11  ;;  %v5193_v0 = vld [vmem:[%s6227_s1 + $0x318] sm:$0xff]  }
  0x7e   : > { %4773 = vmatprep.subr.bf16.mxu1 %v5167_v5 }
  0x80   : > { %4678 = vmatpush3.bf16.msra.mxu0 %v5166_v11 }
  0x81   : > { %4774 = vmatpush3.bf16.msra.mxu1 %v5167_v5  ;;  %4679 = vmatprep.subr.bf16.mxu0 %v5168_v21  ;;  %v5884_v5 = vld [vmem:[%s5346_s24 + $0x10] sm:$0xf] }
  0x82   : > { %4775 = vmatprep.subr.bf16.mxu1 %v5169_v59  ;;  %v703_v11 = vshrl.u32 %v5884_v5, 16  ;;  %v706_v14 = vshll.u32 %v5884_v5, 16 }
  0x84   : > { %4680 = vmatpush3.bf16.msra.mxu0 %v5168_v21  ;;  %v705_v16 = vrot.slane %v703_v11, 4  ;;  %v708_v18 = vrot.slane %v706_v14, 5  ;;  %v5212_v11 = vld [vmem:[%s6227_s1 + $0x2a8] sm:$0xff]  }
  0x85   : > { %4776 = vmatpush3.bf16.msra.mxu1 %v5169_v59  ;;  %4785 = vmatprep.subr.bf16.mxu0 %v5170_v33  ;;  %v720_v59 = vshll.u32 %v5887_v8, 16 }
  0x86   : > { %4881 = vmatprep.subr.bf16.mxu1 %v5171_v24  ;;  %v709_v30 = vor.u32 %v708_v18, %v705_v16 }
  0x87   : > { %4682 = vmatmul.mubr.bf16.vlgmr.msra.gmra.mrb[0].mxu0 %v5674_v38  ;;  %v722_v21 = vrot.slane %v720_v59, 5 }
  0x88   : > { %4778 = vmatmul.mubr.bf16.vlgmr.msra.gmra.mrb[0].mxu1 %v5780_v34  ;;  %4786 = vmatpush3.bf16.msra.mxu0 %v5170_v33  ;;  %v726_v33 = vshll.u32 %v5909_v56, 16  ;;  %v710_v37 = vrot.slane %v709_v30, 4 }
  0x89   : > { %4882 = vmatpush3.bf16.msra.mxu1 %v5171_v24  ;;  %4781 = vmatprep.mubr.bf16.mxu1 %v5784_v40  ;;  %v5906_v24 = vld [vmem:[%s5346_s24 + $0x14] sm:$0x1]  ;;  %v723_v32 = vor.u32 %v722_v21, %v719_v20 }
  0x8a   : > { %4883 = vmatprep.subr.bf16.mxu1 %v5173_v45  ;;  %4685 = vmatprep.mubr.bf16.mxu0 %v5676_v39  ;;  %v712_v31 = vshll.u32 %v5906_v24, 16  ;;  %v728_v44 = vrot.slane %v726_v33, 5  ;;  %v5215_v21 = vld [vmem:[%s6227_s1 + $0x3b0] sm:$0xff]   ;;  %v5217_v33 = vld [vmem:[%s6227_s1 + $0x3b8] sm:$0xff]  }
  0x8b   : > { %4787 = vmatprep.subr.bf16.mxu0 %v5172_v9  ;;  %v724_v43 = vrot.slane %v723_v32, 4  ;;  %v5214_v32 = vld [vmem:[%s6227_s1 + $0x2b0] sm:$0xff]  }
  0x8c   : > { %4788 = vmatpush3.bf16.msra.mxu0 %v5172_v9  ;;  %v5207_v9 = vld [vmem:[%s6227_s1 + $0x390] sm:$0xff]  }
  0x8d   : > { %4884 = vmatpush3.bf16.msra.mxu1 %v5173_v45  ;;  %4789 = vmatprep.subr.bf16.mxu0 %v5174_v12  ;;  %v5204_v45 = vld [vmem:[%s6227_s1 + $0x288] sm:$0xff]   ;;  %v729_v17 = vsel %vm5382_vm5, %v724_v43, %v728_v44 }
  0x8e   : > { %4885 = vmatprep.subr.bf16.mxu1 %v5175_v47 }
  0x8f   : > { %4686 = vmatmul.mubr.bf16.gmra.mrb[4].mxu0 %v5714_v57 }
  0x90   : > { %4782 = vmatmul.mubr.bf16.gmra.mrb[4].mxu1 %v5803_v50  ;;  %4790 = vmatpush3.bf16.msra.mxu0 %v5174_v12  ;;  %v5954_v12 = vld [vmem:[%s5346_s24 + $0x30] sm:$0xf] }
  0x91   : > { %4886 = vmatpush3.bf16.msra.mxu1 %v5175_v47  ;;  %4897 = vmatprep.mubr.bf16.mxu1 %v5716_v58  ;;  %v5187_v58 = vld [vmem:[%s6227_s1 + $0x300] sm:$0xff]   ;;  %v5948_v47 = vld [vmem:[%s5346_s24 + $0x28] sm:$0xf] }
  0x92   : > { %4887 = vmatprep.subr.bf16.mxu1 %v5177_v13  ;;  %4801 = vmatprep.mubr.bf16.mxu0 %v5594_v25 }
  0x93   : > { %4791 = vmatprep.subr.bf16.mxu0 %v5176_v51 }
  0x94   : > { %4792 = vmatpush3.bf16.msra.mxu0 %v5176_v51  ;;  %v5208_v51 = vld [vmem:[%s6227_s1 + $0x298] sm:$0xff]  }
  0x95   : > { %4888 = vmatpush3.bf16.msra.mxu1 %v5177_v13  ;;  %4793 = vmatprep.subr.bf16.mxu0 %v5178_v26  ;;  %v5959_v13 = vld [vmem:[%s5346_s24 + $0x38] sm:$0xf] }
  0x96   : > { %4889 = vmatprep.subr.bf16.mxu1 %v5179_v53 }
  0x98   : > { %4794 = vmatpush3.bf16.msra.mxu0 %v5178_v26  ;;  %v734_v26 = vshll.u32 %v5945_v46, 16 }
  0x99   : > { %4890 = vmatpush3.bf16.msra.mxu1 %v5179_v53  ;;  %4795 = vmatprep.subr.bf16.mxu0 %v5180_v7  ;;  %v731_v53 = vshrl.u32 %v5945_v46, 16 }
  0x9a   : > { %4891 = vmatprep.subr.bf16.mxu1 %v5181_v6 }
  0x9c   : > { %4796 = vmatpush3.bf16.msra.mxu0 %v5180_v7  ;;  %v748_v7 = vshll.u32 %v5948_v47, 16 }
  0x9d   : > { %4892 = vmatpush3.bf16.msra.mxu1 %v5181_v6  ;;  %4797 = vmatprep.subr.bf16.mxu0 %v5182_v49  ;;  %v745_v6 = vshrl.u32 %v5948_v47, 16 }
  0x9e   : > { %4893 = vmatprep.subr.bf16.mxu1 %v5183_v48 }
  0xa0   : > { %4798 = vmatpush3.bf16.msra.mxu0 %v5182_v49  ;;  %v762_v49 = vshll.u32 %v5954_v12, 16 }
  0xa1   : > { %4894 = vmatpush3.bf16.msra.mxu1 %v5183_v48  ;;  %4799 = vmatprep.subr.bf16.mxu0 %v5184_v42  ;;  %v759_v48 = vshrl.u32 %v5954_v12, 16 }
  0xa2   : > { %4895 = vmatprep.subr.bf16.mxu1 %v5185_v55 }
  0xa4   : > { %4800 = vmatpush3.bf16.msra.mxu0 %v5184_v42  ;;  %v776_v42 = vshll.u32 %v5959_v13, 16 }
  0xa5   : > { %4896 = vmatpush3.bf16.msra.mxu1 %v5185_v55  ;;  %4809 = vmatprep.subr.bf16.mxu0 %v5186_v60  ;;  %v773_v55 = vshrl.u32 %v5959_v13, 16 }
  0xa6   : > { %4905 = vmatprep.subr.bf16.mxu1 %v5187_v58 }
  0xa7   : > { %4802 = vmatmul.mubr.bf16.vlgmr.msra.gmra.mrb[8].mxu0 %v5674_v38 }
  0xa8   : > { %4898 = vmatmul.mubr.bf16.vlgmr.msra.gmra.mrb[8].mxu1 %v5780_v34  ;;  %4810 = vmatpush3.bf16.msra.mxu0 %v5186_v60  ;;  %v5202_v34 = vld [vmem:[%s6227_s1 + $0x280] sm:$0xff]   ;;  %v5213_v60 = vld [vmem:[%s6227_s1 + $0x3a8] sm:$0xff]  }
  0xa9   : > { %4906 = vmatpush3.bf16.msra.mxu1 %v5187_v58  ;;  %4901 = vmatprep.mubr.bf16.mxu1 %v5784_v40  ;;  %v714_v40 = vrot.slane %v712_v31, 5  ;;  %v5210_v58 = vld [vmem:[%s6227_s1 + $0x2a0] sm:$0xff]  }
  0xaa   : > { %4907 = vmatprep.subr.bf16.mxu1 %v5189_v62  ;;  %4805 = vmatprep.mubr.bf16.mxu0 %v5676_v39 }
  0xab   : > { %4811 = vmatprep.subr.bf16.mxu0 %v5188_v63 }
  0xac   : > { %4812 = vmatpush3.bf16.msra.mxu0 %v5188_v63  ;;  %v747_v63 = vrot.slane %v745_v6, 4 }
  0xad   : > { %4908 = vmatpush3.bf16.msra.mxu1 %v5189_v62  ;;  %4813 = vmatprep.subr.bf16.mxu0 %v5190_v27  ;;  %v733_v62 = vrot.slane %v731_v53, 4  ;;  %v5216_v53 = vld [vmem:[%s6227_s1 + $0x2b8] sm:$0xff]  }
  0xae   : > { %4909 = vmatprep.subr.bf16.mxu1 %v5191_v41 }
  0xaf   : > { %4806 = vmatmul.mubr.bf16.gmra.mrb[12].mxu0 %v5714_v57 }
  0xb0   : > { %4902 = vmatmul.mubr.bf16.gmra.mrb[12].mxu1 %v5803_v50  ;;  %4814 = vmatpush3.bf16.msra.mxu0 %v5190_v27  ;;  %v5209_v50 = vld [vmem:[%s6227_s1 + $0x398] sm:$0xff]   ;;  %v5985_v27 = vld [vmem:[%s5346_s24 + $0x24] sm:$0x1] }
  0xb1   : > { %4910 = vmatpush3.bf16.msra.mxu1 %v5191_v41  ;;  %4921 = vmatprep.mubr.bf16.mxu1 %v5594_v25  ;;  %v5197_v25 = vld [vmem:[%s6227_s1 + $0x328] sm:$0xff]   ;;  %v750_v41 = vrot.slane %v748_v7, 5  ;;  %v740_v23 = vshll.u32 %v5985_v27, 16 }
  0xb2   : > { %4911 = vmatprep.subr.bf16.mxu1 %v5193_v0  ;;  %4825 = vmatprep.mubr.bf16.mxu0 %v5579_v19  ;;  %v5196_v19 = vld [vmem:[%s6227_s1 + $0x228] sm:$0xff]  }
  0xb3   : > { %4815 = vmatprep.subr.bf16.mxu0 %v5192_v1  ;;  %v751_v59 = vor.u32 %v750_v41, %v747_v63  ;;  %v4098_v63 = vcombine.low %v5945_v46, %v5948_v47  ;;  %v844_v46 = vrot.slane %v5909_v56, 5  ;;  %v4099_v47 = vcombine.low %v5954_v12, %v5959_v13  ;;  %v5225_v12 = vld [vmem:[%s6227_s1 + $0x3d0] sm:$0xff]  }
  0xb4   : > { %4816 = vmatpush3.bf16.msra.mxu0 %v5192_v1  ;;  %v761_v1 = vrot.slane %v759_v48, 4 }
  0xb5   : > { %4912 = vmatpush3.bf16.msra.mxu1 %v5193_v0  ;;  %4817 = vmatprep.subr.bf16.mxu0 %v5194_v4  ;;  %v5988_v0 = vld [vmem:[%s5346_s24 + $0x2c] sm:$0x1] }
  0xb6   : > { %4913 = vmatprep.subr.bf16.mxu1 %v5195_v3 }
  0xb8   : > { %4818 = vmatpush3.bf16.msra.mxu0 %v5194_v4  ;;  %v775_v4 = vrot.slane %v773_v55, 4  ;;  %v5220_v55 = vld [vmem:[%s6227_s1 + $0x3c0] sm:$0xff]  }
  0xb9   : > { %4914 = vmatpush3.bf16.msra.mxu1 %v5195_v3  ;;  %4819 = vmatprep.subr.bf16.mxu0 %v5196_v19  ;;  %v764_v3 = vrot.slane %v762_v49, 5 }
  0xba   : > { %4915 = vmatprep.subr.bf16.mxu1 %v5197_v25 }
  0xbc   : > { %4820 = vmatpush3.bf16.msra.mxu0 %v5196_v19  ;;  %v5997_v19 = vld [vmem:[%s5346_s24 + $0x34] sm:$0x1] }
  0xbd   : > { %4916 = vmatpush3.bf16.msra.mxu1 %v5197_v25  ;;  %4821 = vmatprep.subr.bf16.mxu0 %v5198_v52  ;;  %v778_v25 = vrot.slane %v776_v42, 5 }
  0xbe   : > { %4917 = vmatprep.subr.bf16.mxu1 %v5199_v10 }
  0xbf   : > { %v779_v30 = vor.u32 %v778_v25, %v775_v4 }
  0xc0   : > { %4822 = vmatpush3.bf16.msra.mxu0 %v5198_v52  ;;  %v754_v52 = vshll.u32 %v5988_v0, 16 }
  0xc1   : > { %4918 = vmatpush3.bf16.msra.mxu1 %v5199_v10  ;;  %4823 = vmatprep.subr.bf16.mxu0 %v5200_v54  ;;  %v6000_v10 = vld [vmem:[%s5346_s24 + $0x3c] sm:$0x1] }
  0xc2   : > { %4919 = vmatprep.subr.bf16.mxu1 %v5201_v15  ;;  %v782_v31 = vshll.u32 %v6000_v10, 16 }
  0xc4   : > { %4824 = vmatpush3.bf16.msra.mxu0 %v5200_v54  ;;  %v765_v54 = vor.u32 %v764_v3, %v761_v1 }
  0xc5   : > { %4920 = vmatpush3.bf16.msra.mxu1 %v5201_v15  ;;  %4833 = vmatprep.subr.bf16.mxu0 %v5202_v34 }
  0xc6   : > { %4929 = vmatprep.subr.bf16.mxu1 %v5203_v28 }
  0xc7   : > { %4826 = vmatmul.mubr.bf16.vlgmr.msra.gmra.mrb[8].mxu0 %v5687_v2 }
  0xc8   : > { %4922 = vmatmul.mubr.bf16.vlgmr.msra.gmra.mrb[8].mxu1 %v5674_v38  ;;  %v715_v38 = vsel %vm5382_vm5, %v710_v37, %v714_v40  ;;  %4834 = vmatpush3.bf16.msra.mxu0 %v5202_v34  ;;  %v752_v37 = vrot.slane %v751_v59, 4  ;;  %v756_v40 = vrot.slane %v754_v52, 5  ;;  %v840_v59 = vrot.slane %v5906_v24, 5 }
  0xc9   : > { %4930 = vmatpush3.bf16.msra.mxu1 %v5203_v28  ;;  %4925 = vmatprep.mubr.bf16.mxu1 %v5676_v39  ;;  %v5206_v39 = vld [vmem:[%s6227_s1 + $0x290] sm:$0xff]   ;;  %v5942_v2 = vcombine.low %v715_v38, %v729_v17  ;;  %v768_v28 = vshll.u32 %v5997_v19, 16  ;;  %v6023_v38 = vld [vmem:[%s5346_s24 + $0x44] sm:$0x1]  ;;  %v766_v17 = vrot.slane %v765_v54, 4 }
  0xca   : > { %4931 = vmatprep.subr.bf16.mxu1 %v5205_v36  ;;  %4829 = vmatprep.mubr.bf16.mxu0 %v5691_v61  ;;  %v4097_v61 = vcombine.low %v5884_v5, %v5887_v8  ;;  %v5991_v5 = vld [vmem:[%s5346_s24 + $0x40] sm:$0xf]  ;;  %v5994_v8 = vld [vmem:[%s5346_s24 + $0x48] sm:$0xf]  ;;  %v796_v6 = vshll.u32 %v6023_v38, 16  ;;  %v757_v7 = vsel %vm5382_vm5, %v752_v37, %v756_v40  ;;  %v5234_v37 = vld [vmem:[%s6227_s1 + $0x2f0] sm:$0xff]  }
  0xcb   : > { %4835 = vmatprep.subr.bf16.mxu0 %v5204_v45  ;;  %v787_v15 = vshrl.u32 %v5991_v5, 16  ;;  %v790_v16 = vshll.u32 %v5991_v5, 16  ;;  %v801_v18 = vshrl.u32 %v5994_v8, 16  ;;  %v804_v20 = vshll.u32 %v5994_v8, 16 }
  0xcc   : > { %4836 = vmatpush3.bf16.msra.mxu0 %v5204_v45  ;;  %v798_v1 = vrot.slane %v796_v6, 5  ;;  %v4100_v54 = vcombine.low %v5991_v5, %v5994_v8  ;;  %v5228_v5 = vld [vmem:[%s6227_s1 + $0x2e0] sm:$0xff]   ;;  %v5231_v8 = vld [vmem:[%s6227_s1 + $0x3e8] sm:$0xff]  }
  0xcd   : > { %4932 = vmatpush3.bf16.msra.mxu1 %v5205_v36  ;;  %4837 = vmatprep.subr.bf16.mxu0 %v5206_v39  ;;  %v742_v36 = vrot.slane %v740_v23, 5  ;;  %v789_v43 = vrot.slane %v787_v15, 4  ;;  %v792_v44 = vrot.slane %v790_v16, 5  ;;  %v803_v45 = vrot.slane %v801_v18, 4  ;;  %v5222_v15 = vld [vmem:[%s6227_s1 + $0x2c8] sm:$0xff]  }
  0xce   : > { %4933 = vmatprep.subr.bf16.mxu1 %v5207_v9  ;;  %v3798_v6 = vld [vmem:[%s5346_s24 + $0x48] sm:$0xe] }
  0xcf   : > { %4830 = vmatmul.mubr.bf16.gmra.mrb[12].mxu0 %v5723_v22  ;;  %v736_v22 = vrot.slane %v734_v26, 5  ;;  %v793_v48 = vor.u32 %v792_v44, %v789_v43  ;;  %v848_v43 = vrot.slane %v5985_v27, 5  ;;  %v5236_v27 = vld [vmem:[%s6227_s1 + $0x2f8] sm:$0xff]  }
  0xd0   : > { %4926 = vmatmul.mubr.bf16.gmra.mrb[12].mxu1 %v5714_v57  ;;  %v5211_v57 = vld [vmem:[%s6227_s1 + $0x3a0] sm:$0xff]   ;;  %4838 = vmatpush3.bf16.msra.mxu0 %v5206_v39  ;;  %v770_v39 = vrot.slane %v768_v28, 5  ;;  %v5226_v28 = vld [vmem:[%s6227_s1 + $0x2d8] sm:$0xff]  }
  0xd1   : > { %4934 = vmatpush3.bf16.msra.mxu1 %v5207_v9  ;;  %4945 = vmatprep.mubr.bf16.mxu1 %v5942_v2  ;;  %v737_v14 = vor.u32 %v736_v22, %v733_v62  ;;  %v806_v9 = vrot.slane %v804_v20, 5  ;;  %v3792_v62 = vld [vmem:[%s5346_s24 + $0x18] sm:$0xe]  ;;  %v5219_v22 = vld [vmem:[%s6227_s1 + $0x2c0] sm:$0xff]   ;;  %v794_v4 = vrot.slane %v793_v48, 4  ;;  %v864_v48 = vrot.slane %v6023_v38, 5 }
  0xd2   : > { %4935 = vmatprep.subr.bf16.mxu1 %v5209_v50  ;;  %4849 = vmatprep.mubr.bf16.mxu0 %v4097_v61  ;;  %v784_v61 = vrot.slane %v782_v31, 5  ;;  %v771_v42 = vsel %vm5382_vm5, %v766_v17, %v770_v39  ;;  %v3800_v52 = vrot.slane %v3792_v62, 9  ;;  %v5230_v31 = vld [vmem:[%s6227_s1 + $0x2e8] sm:$0xff]   ;;  %v856_v39 = vrot.slane %v5997_v19, 5 }
  0xd3   : > { %4839 = vmatprep.subr.bf16.mxu0 %v5208_v51  ;;  %v738_v34 = vrot.slane %v737_v14, 4  ;;  %v807_v49 = vor.u32 %v806_v9, %v803_v45  ;;  %v5223_v14 = vld [vmem:[%s6227_s1 + $0x3c8] sm:$0xff]   ;;  %v799_v24 = vsel %vm5382_vm5, %v794_v4, %v798_v1  ;;  %v852_v45 = vrot.slane %v5988_v0, 5  ;;  %v5237_v9 = vld [vmem:[%s6227_s1 + $0x3f8] sm:$0xff]  }
  0xd4   : > { %4840 = vmatpush3.bf16.msra.mxu0 %v5208_v51  ;;  %v6026_v51 = vld [vmem:[%s5346_s24 + $0x4c] sm:$0x1]  ;;  %v845_v16 = vsel %vm5375_vm4, %v3800_v52, %v844_v46 }
  0xd5   : > { %4936 = vmatpush3.bf16.msra.mxu1 %v5209_v50  ;;  %4841 = vmatprep.subr.bf16.mxu0 %v5210_v58  ;;  %v780_v50 = vrot.slane %v779_v30, 4  ;;  %v743_v26 = vsel %vm5382_vm5, %v738_v34, %v742_v36  ;;  %v808_v25 = vrot.slane %v807_v49, 4  ;;  %v5229_v30 = vld [vmem:[%s6227_s1 + $0x3e0] sm:$0xff]   ;;  %v3795_v34 = vld [vmem:[%s5346_s24 + $0x30] sm:$0xe] }
  0xd6   : > { %4937 = vmatprep.subr.bf16.mxu1 %v5211_v57  ;;  %v6051_v41 = vcombine.low %v743_v26, %v757_v7  ;;  %v3796_v36 = vld [vmem:[%s5346_s24 + $0x38] sm:$0xe]  ;;  %v3803_v17 = vrot.slane %v3795_v34, 9  ;;  %v3797_v26 = vld [vmem:[%s5346_s24 + $0x40] sm:$0xe] }
  0xd8   : > { %4842 = vmatpush3.bf16.msra.mxu0 %v5210_v58  ;;  %v785_v58 = vsel %vm5382_vm5, %v780_v50, %v784_v61  ;;  %v3804_v50 = vrot.slane %v3796_v36, 9  ;;  %v860_v61 = vrot.slane %v6000_v10, 5  ;;  %v857_v19 = vsel %vm5375_vm4, %v3803_v17, %v856_v39 }
  0xd9   : > { %4938 = vmatpush3.bf16.msra.mxu1 %v5211_v57  ;;  %4843 = vmatprep.subr.bf16.mxu0 %v5212_v11  ;;  %v810_v57 = vshll.u32 %v6026_v51, 16  ;;  %v6053_v3 = vcombine.low %v771_v42, %v785_v58  ;;  %v868_v42 = vrot.slane %v6026_v51, 5  ;;  %v6147_v51 = vld [vmem:[%s6228_s2] ss:$0 sm:$0xff] }
  0xda   : > { %4939 = vmatprep.subr.bf16.mxu1 %v5213_v60  ;;  %v861_v10 = vsel %vm5375_vm4, %v3804_v50, %v860_v61 }
  0xdb   : > { %v4244_v49 = vcombine.low %v857_v19, %v861_v10 }
  0xdc   : > { %4844 = vmatpush3.bf16.msra.mxu0 %v5212_v11  ;;  %v812_v11 = vrot.slane %v810_v57, 5  ;;  %v3805_v57 = vrot.slane %v3797_v26, 9 }
  0xdd   : > { %4940 = vmatpush3.bf16.msra.mxu1 %v5213_v60  ;;  %4845 = vmatprep.subr.bf16.mxu0 %v5214_v32  ;;  %v3791_v60 = vld [vmem:[%s5346_s24 + $0x10] sm:$0xe] }
  0xde   : > { %4941 = vmatprep.subr.bf16.mxu1 %v5215_v21  ;;  %v3799_v23 = vrot.slane %v3791_v60, 9  ;;  %v813_v56 = vsel %vm5382_vm5, %v808_v25, %v812_v11  ;;  %v865_v58 = vsel %vm5375_vm4, %v3805_v57, %v864_v48 }
  0xdf   : > { %v6081_v18 = vcombine.low %v799_v24, %v813_v56 }
  0xe0   : > { %4846 = vmatpush3.bf16.msra.mxu0 %v5214_v32  ;;  %v841_v13 = vsel %vm5375_vm4, %v3799_v23, %v840_v59  ;;  %v3793_v32 = vld [vmem:[%s5346_s24 + $0x20] sm:$0xe] }
  0xe1   : > { %4942 = vmatpush3.bf16.msra.mxu1 %v5215_v21  ;;  %4847 = vmatprep.subr.bf16.mxu0 %v5216_v53  ;;  %v4242_v20 = vcombine.low %v841_v13, %v845_v16  ;;  %v5227_v21 = vld [vmem:[%s6227_s1 + $0x3d8] sm:$0xff]   ;;  %v3801_v40 = vrot.slane %v3793_v32, 9 }
  0xe2   : > { %4943 = vmatprep.subr.bf16.mxu1 %v5217_v33 }
  0xe3   : > { %v849_v0 = vsel %vm5375_vm4, %v3801_v40, %v848_v43 }
  0xe4   : > { %4848 = vmatpush3.bf16.msra.mxu0 %v5216_v53 }
  0xe5   : > { %4944 = vmatpush3.bf16.msra.mxu1 %v5217_v33  ;;  %4857 = vmatprep.subr.bf16.mxu0 %v5219_v22  ;;  %v3794_v33 = vld [vmem:[%s5346_s24 + $0x28] sm:$0xe] }
  0xe6   : > { %4953 = vmatprep.subr.bf16.mxu1 %v5220_v55  ;;  %v3802_v44 = vrot.slane %v3794_v33, 9 }
  0xe7   : > { %4850 = vmatmul.mubr.bf16.vlgmr.msra.gmra.mrb[8].mxu0 %v4098_v63 }
  0xe8   : > { %4946 = vmatmul.mubr.bf16.vlgmr.msra.gmra.mrb[8].mxu1 %v6051_v41  ;;  %4858 = vmatpush3.bf16.msra.mxu0 %v5219_v22  ;;  %v853_v53 = vsel %vm5375_vm4, %v3802_v44, %v852_v45 }
  0xe9   : > { %4954 = vmatpush3.bf16.msra.mxu1 %v5220_v55  ;;  %4949 = vmatprep.mubr.bf16.mxu1 %v6053_v3  ;;  %v4243_v7 = vcombine.low %v849_v0, %v853_v53  ;;  %v3806_v55 = vrot.slane %v3798_v6, 9 }
  0xea   : > { %4955 = vmatprep.subr.bf16.mxu1 %v5223_v14  ;;  %4853 = vmatprep.mubr.bf16.mxu0 %v4099_v47 }
  0xeb   : > { %4859 = vmatprep.subr.bf16.mxu0 %v5222_v15  ;;  %v869_v60 = vsel %vm5375_vm4, %v3806_v55, %v868_v42 }
  0xec   : > { %4860 = vmatpush3.bf16.msra.mxu0 %v5222_v15  ;;  %v4245_v38 = vcombine.low %v865_v58, %v869_v60 }
  0xed   : > { %4956 = vmatpush3.bf16.msra.mxu1 %v5223_v14  ;;  %4861 = vmatprep.subr.bf16.mxu0 %v5224_v35 }
  0xee   : > { %4957 = vmatprep.subr.bf16.mxu1 %v5225_v12 }
  0xef   : > { %4854 = vmatmul.mubr.bf16.gmra.mrb[12].mxu0 %v4100_v54 }
  0xf0   : > { %4950 = vmatmul.mubr.bf16.gmra.mrb[12].mxu1 %v6081_v18  ;;  %4862 = vmatpush3.bf16.msra.mxu0 %v5224_v35 }
  0xf1   : > { %4958 = vmatpush3.bf16.msra.mxu1 %v5225_v12  ;;  %4969 = vmatprep.mubr.bf16.mxu1 %v4242_v20 }
  0xf2   : > { %4959 = vmatprep.subr.bf16.mxu1 %v5227_v21  ;;  %4873 = vmatprep.mubr.bf16.mxu0 %v5942_v2  ;;  %v5235_v2 = vld [vmem:[%s6227_s1 + $0x3f0] sm:$0xff]  }
  0xf3   : > { %4863 = vmatprep.subr.bf16.mxu0 %v5226_v28 }
  0xf4   : > { %4864 = vmatpush3.bf16.msra.mxu0 %v5226_v28 }
  0xf5   : > { %4960 = vmatpush3.bf16.msra.mxu1 %v5227_v21  ;;  %4865 = vmatprep.subr.bf16.mxu0 %v5228_v5 }
  0xf6   : > { %4961 = vmatprep.subr.bf16.mxu1 %v5229_v30 }
  0xf8   : > { %4866 = vmatpush3.bf16.msra.mxu0 %v5228_v5 }
  0xf9   : > { %4962 = vmatpush3.bf16.msra.mxu1 %v5229_v30  ;;  %4867 = vmatprep.subr.bf16.mxu0 %v5230_v31 }
  0xfa   : > { %4963 = vmatprep.subr.bf16.mxu1 %v5231_v8 }
  0xfc   : > { %4868 = vmatpush3.bf16.msra.mxu0 %v5230_v31 }
  0xfd   : > { %4964 = vmatpush3.bf16.msra.mxu1 %v5231_v8  ;;  %4869 = vmatprep.subr.bf16.mxu0 %v5234_v37 }
  0xfe   : > { %4965 = vmatprep.subr.bf16.mxu1 %v5235_v2 }
 0x100   : > { %4870 = vmatpush3.bf16.msra.mxu0 %v5234_v37 }
 0x101   : > { %4966 = vmatpush3.bf16.msra.mxu1 %v5235_v2  ;;  %4871 = vmatprep.subr.bf16.mxu0 %v5236_v27 }
 0x102   : > { %4967 = vmatprep.subr.bf16.mxu1 %v5237_v9 }
 0x104   : > { %4872 = vmatpush3.bf16.msra.mxu0 %v5236_v27 }
 0x105   : > { %4968 = vmatpush3.bf16.msra.mxu1 %v5237_v9 }
 0x107   : > { %4874 = vmatmul.mubr.bf16.vlgmr.msra.gmra.mrb[8].mxu0 %v6051_v41 }
 0x108   : > { %4970 = vmatmul.mubr.bf16.vlgmr.msra.gmra.mrb[8].mxu1 %v4243_v7  ;;  %4877 = vmatprep.mubr.bf16.mxu0 %v6053_v3 }
 0x109   : > { %4973 = vmatprep.mubr.bf16.mxu1 %v4244_v49 }
 0x10f   : > { %4878 = vmatmul.mubr.bf16.gmra.mrb[12].mxu0 %v6081_v18 }
 0x110   : > { %4974 = vmatmul.mubr.bf16.gmra.mrb[12].mxu1 %v4245_v38 }
 0x15a   : > { %v4683_v63 = vpop.f32.mrb[0].mxu0 }
 0x15b   : > { %v4779_v62 = vpop.f32.mrb[0].mxu1  ;;  %v1446_v4 = vpop.f32.mrb[1].mxu0  ;;  %v1494_v59 = vadd.f32 %v4683_v63, %v6147_v51 }
 0x15c   : > { %v2105_v22 = vpop.f32.mrb[1].mxu1  ;;  %v2153_v29 = vadd.f32 %v4779_v62, %v6147_v51  ;;  %v1492_v11 = vadd.f32 %v6147_v51, %v1446_v4  ;;  %v4684_v14 = vpop.f32.mrb[2].mxu0 }
 0x15d   : > { %v4780_v1 = vpop.f32.mrb[2].mxu1  ;;  %v2151_v41 = vadd.f32 %v6147_v51, %v2105_v22  ;;  %v1495_v52 = vadd.f32 %v4684_v14, %v6147_v51  ;;  %v1449_v47 = vpop.f32.mrb[3].mxu0  ;;  %v1556_v30 = vmul.f32 %v1494_v59, %v1494_v59 }
 0x15e   : > { %v2154_v3 = vadd.f32 %v4780_v1, %v6147_v51  ;;  %v2108_v25 = vpop.f32.mrb[3].mxu1  ;;  %v1493_v15 = vadd.f32 %v6147_v51, %v1449_v47  ;;  %v1554_v12 = vmul.f32 %v1492_v11, %v1492_v11  ;;  %v2216_v5 = vmul.f32 %v2153_v29, %v2153_v29 }
 0x15f   : > { %v2152_v23 = vadd.f32 %v6147_v51, %v2108_v25  ;;  %v2214_v13 = vmul.f32 %v2151_v41, %v2151_v41  ;;  %v4314_v16 = vpack.c.bf16 %v1495_v52, %v1494_v59  ;;  %v1557_v43 = vmul.f32 %v1495_v52, %v1495_v52 }
 0x160   : > { %v4334_v46 = vpack.c.bf16 %v2154_v3, %v2153_v29  ;;  %v4309_v18 = vpack.c.bf16 %v1493_v15, %v1492_v11  ;;  %v1540_v20 = vadd.f32 %v1493_v15, %v1492_v11  ;;  %v1555_v21 = vmul.f32 %v1493_v15, %v1493_v15 }
 0x161   : > { %v4329_v24 = vpack.c.bf16 %v2152_v23, %v2151_v41  ;;  %v2200_v56 = vadd.f32 %v2152_v23, %v2151_v41  ;;  %v2215_v35 = vmul.f32 %v2152_v23, %v2152_v23  ;;  %4386 = vst [vmem:[%s6157_s25 + $0x8] sm:$0xff] %v4314_v16   ;;  %v2217_v8 = vmul.f32 %v2154_v3, %v2154_v3 }
 0x162   : > { %4390 = vst [vmem:[%s6157_s25 + $0x28] sm:$0xff] %v4334_v46   ;;  %4310 = vst [vmem:[%s6157_s25] sm:$0xff] %v4309_v18   ;;  %v1541_v32 = vadd.f32 %v1540_v20, %v1494_v59  ;;  %v1562_v33 = vadd.f32 %v1555_v21, %v1554_v12  ;;  %v4687_v34 = vpop.f32.mrb[4].mxu0 }
 0x163   : > { %4389 = vst [vmem:[%s6157_s25 + $0x20] sm:$0xff] %v4329_v24   ;;  %v2201_v54 = vadd.f32 %v2200_v56, %v2153_v29  ;;  %v4783_v28 = vpop.f32.mrb[4].mxu1  ;;  %v2222_v31 = vadd.f32 %v2215_v35, %v2214_v13  ;;  %v1462_v9 = vpop.f32.mrb[5].mxu0  ;;  %v1498_v19 = vadd.f32 %v4687_v34, %v6147_v51 }
 0x164   : > { %v2121_v2 = vpop.f32.mrb[5].mxu1  ;;  %v2157_v45 = vadd.f32 %v4783_v28, %v6147_v51  ;;  %v1563_v50 = vadd.f32 %v1562_v33, %v1556_v30  ;;  %v1496_v61 = vadd.f32 %v6147_v51, %v1462_v9  ;;  %v1542_v27 = vadd.f32 %v1541_v32, %v1495_v52  ;;  %v4688_v53 = vpop.f32.mrb[6].mxu0 }
 0x165   : > { %v2155_v36 = vadd.f32 %v6147_v51, %v2121_v2  ;;  %v2202_v37 = vadd.f32 %v2201_v54, %v2154_v3  ;;  %v4784_v40 = vpop.f32.mrb[6].mxu1  ;;  %v2223_v44 = vadd.f32 %v2222_v31, %v2216_v5  ;;  %v1499_v6 = vadd.f32 %v4688_v53, %v6147_v51  ;;  %v1465_v7 = vpop.f32.mrb[7].mxu0 }
 0x166   : > { %v2158_v17 = vadd.f32 %v4784_v40, %v6147_v51  ;;  %v2124_v39 = vpop.f32.mrb[7].mxu1  ;;  %v1543_v48 = vadd.f32 %v1542_v27, %v1496_v61  ;;  %v1558_v49 = vmul.f32 %v1496_v61, %v1496_v61  ;;  %v1564_v57 = vadd.f32 %v1563_v50, %v1557_v43 }
 0x167   : > { %v2203_v0 = vadd.f32 %v2202_v37, %v2155_v36  ;;  %v2218_v10 = vmul.f32 %v2155_v36, %v2155_v36  ;;  %v2224_v26 = vadd.f32 %v2223_v44, %v2217_v8  ;;  %v4324_v58 = vpack.c.bf16 %v1499_v6, %v1498_v19 }
 0x168   : > { %v4344_v55 = vpack.c.bf16 %v2158_v17, %v2157_v45  ;;  %v1565_v60 = vadd.f32 %v1564_v57, %v1558_v49  ;;  %v1497_v38 = vadd.f32 %v6147_v51, %v1465_v7  ;;  %v2156_v62 = vadd.f32 %v6147_v51, %v2124_v39 }
 0x169   : > { %v2225_v42 = vadd.f32 %v2224_v26, %v2218_v10  ;;  %4388 = vst [vmem:[%s6157_s25 + $0x18] sm:$0xff] %v4324_v58   ;;  %v1560_v3 = vmul.f32 %v1498_v19, %v1498_v19  ;;  %v2220_v14 = vmul.f32 %v2157_v45, %v2157_v45  ;;  %v1561_v52 = vmul.f32 %v1499_v6, %v1499_v6 }
 0x16a   : > { %4392 = vst [vmem:[%s6157_s25 + $0x38] sm:$0xff] %v4344_v55   ;;  %v4319_v22 = vpack.c.bf16 %v1497_v38, %v1496_v61  ;;  %v1544_v63 = vadd.f32 %v1543_v48, %v1497_v38  ;;  %v1559_v1 = vmul.f32 %v1497_v38, %v1497_v38  ;;  %v4339_v29 = vpack.c.bf16 %v2156_v62, %v2155_v36 }
 0x16b   : > { %v2204_v4 = vadd.f32 %v2203_v0, %v2156_v62  ;;  %v2219_v41 = vmul.f32 %v2156_v62, %v2156_v62  ;;  %v2221_v15 = vmul.f32 %v2158_v17, %v2158_v17 }
 0x16c   : > { %4387 = vst [vmem:[%s6157_s25 + $0x10] sm:$0xff] %v4319_v22   ;;  %v1545_v25 = vadd.f32 %v1544_v63, %v1498_v19  ;;  %v1566_v11 = vadd.f32 %v1565_v60, %v1559_v1  ;;  %4391 = vst [vmem:[%s6157_s25 + $0x30] sm:$0xff] %v4339_v29  }
 0x16d   : > { %v2205_v23 = vadd.f32 %v2204_v4, %v2157_v45  ;;  %v2226_v59 = vadd.f32 %v2225_v42, %v2219_v41 }
 0x16e   : > { %v1546_v46 = vadd.f32 %v1545_v25, %v1499_v6  ;;  %v1567_v47 = vadd.f32 %v1566_v11, %v1560_v3 }
 0x16f   : > { %v2206_v24 = vadd.f32 %v2205_v23, %v2158_v17  ;;  %v2227_v56 = vadd.f32 %v2226_v59, %v2220_v14 }
 0x170   : > { %v1547_v12 = vrot.slane %v1546_v46, 4  ;;  %v1568_v13 = vadd.f32 %v1567_v47, %v1561_v52 }
 0x171   : > { %v2207_v16 = vrot.slane %v2206_v24, 4  ;;  %v2228_v35 = vadd.f32 %v2227_v56, %v2221_v15 }
 0x172   : > { %v1548_v18 = vadd.f32 %v1547_v12, %v1546_v46  ;;  %v1569_v20 = vrot.slane %v1568_v13, 4 }
 0x173   : > { %v2208_v21 = vadd.f32 %v2207_v16, %v2206_v24  ;;  %v2229_v54 = vrot.slane %v2228_v35, 4 }
 0x174   : > { %v1549_v28 = vrot.slane %v1548_v18, 2  ;;  %v1570_v30 = vadd.f32 %v1569_v20, %v1568_v13 }
 0x175   : > { %v2209_v5 = vrot.slane %v2208_v21, 2  ;;  %v2230_v8 = vadd.f32 %v2229_v54, %v2228_v35 }
 0x176   : > { %v1550_v31 = vadd.f32 %v1549_v28, %v1548_v18  ;;  %v1571_v2 = vrot.slane %v1570_v30, 2 }
 0x177   : > { %v2210_v32 = vadd.f32 %v2209_v5, %v2208_v21  ;;  %v2231_v33 = vrot.slane %v2230_v8, 2 }
 0x178   : > { %v1551_v34 = vrot.slane %v1550_v31, 1  ;;  %v1572_v36 = vadd.f32 %v1571_v2, %v1570_v30 }
 0x179   : > { %v2211_v37 = vrot.slane %v2210_v32, 1  ;;  %v2232_v40 = vadd.f32 %v2231_v33, %v2230_v8 }
 0x17a   : > { %v1552_v43 = vadd.f32 %v1551_v34, %v1550_v31  ;;  %v1573_v44 = vrot.slane %v1572_v36, 1 }
 0x17b   : > { %v2212_v45 = vadd.f32 %v2211_v37, %v2210_v32  ;;  %v2233_v9 = vrot.slane %v2232_v40, 1 }
 0x17c   : > { %v1574_v17 = vadd.f32 %v1573_v44, %v1572_v36 }
 0x17d   : > { %v6179_v39 = vadd.f32 %v2212_v45, %v1552_v43  ;;  %v2234_v50 = vadd.f32 %v2233_v9, %v2232_v40 }
 0x17f   : > { %v6181_v61 = vadd.f32 %v2234_v50, %v1574_v17 }
 0x1da   : > { %v4875_v53 = vpop.f32.mrb[8].mxu0 }
 0x1db   : > { %v4971_v27 = vpop.f32.mrb[8].mxu1  ;;  %v2773_v26 = vpop.f32.mrb[9].mxu0  ;;  %v2821_v42 = vadd.f32 %v4875_v53, %v6147_v51 }
 0x1dc   : > { %v3417_v0 = vpop.f32.mrb[9].mxu1  ;;  %v3465_v10 = vadd.f32 %v4971_v27, %v6147_v51  ;;  %v2819_v49 = vadd.f32 %v6147_v51, %v2773_v26  ;;  %v4876_v57 = vpop.f32.mrb[10].mxu0 }
 0x1dd   : > { %v4972_v19 = vpop.f32.mrb[10].mxu1  ;;  %v3463_v6 = vadd.f32 %v6147_v51, %v3417_v0  ;;  %v2822_v58 = vadd.f32 %v4876_v57, %v6147_v51  ;;  %v2776_v38 = vpop.f32.mrb[11].mxu0  ;;  %v2884_v59 = vmul.f32 %v2821_v42, %v2821_v42 }
 0x1de   : > { %v3466_v7 = vadd.f32 %v4972_v19, %v6147_v51  ;;  %v3420_v48 = vpop.f32.mrb[11].mxu1  ;;  %v2820_v62 = vadd.f32 %v6147_v51, %v2776_v38  ;;  %v2882_v1 = vmul.f32 %v2819_v49, %v2819_v49  ;;  %v3528_v52 = vmul.f32 %v3465_v10, %v3465_v10 }
 0x1df   : > { %v3464_v55 = vadd.f32 %v6147_v51, %v3420_v48  ;;  %v3526_v29 = vmul.f32 %v3463_v6, %v3463_v6  ;;  %v4354_v4 = vpack.c.bf16 %v2822_v58, %v2821_v42  ;;  %v2885_v18 = vmul.f32 %v2822_v58, %v2822_v58 }
 0x1e0   : > { %v4374_v60 = vpack.c.bf16 %v3466_v7, %v3465_v10  ;;  %v4349_v3 = vpack.c.bf16 %v2820_v62, %v2819_v49  ;;  %v2868_v25 = vadd.f32 %v2820_v62, %v2819_v49  ;;  %v2883_v11 = vmul.f32 %v2820_v62, %v2820_v62 }
 0x1e1   : > { %v4369_v22 = vpack.c.bf16 %v3464_v55, %v3463_v6  ;;  %v3512_v63 = vadd.f32 %v3464_v55, %v3463_v6  ;;  %v3527_v41 = vmul.f32 %v3464_v55, %v3464_v55  ;;  %4394 = vst [vmem:[%s6157_s25 + $0x48] sm:$0xff] %v4354_v4   ;;  %v3529_v46 = vmul.f32 %v3466_v7, %v3466_v7 }
 0x1e2   : > { %4398 = vst [vmem:[%s6157_s25 + $0x68] sm:$0xff] %v4374_v60   ;;  %4393 = vst [vmem:[%s6157_s25 + $0x40] sm:$0xff] %v4349_v3   ;;  %v2869_v24 = vadd.f32 %v2868_v25, %v2821_v42  ;;  %v2890_v56 = vadd.f32 %v2883_v11, %v2882_v1  ;;  %v4879_v12 = vpop.f32.mrb[12].mxu0 }
 0x1e3   : > { %4397 = vst [vmem:[%s6157_s25 + $0x60] sm:$0xff] %v4369_v22   ;;  %v3513_v14 = vadd.f32 %v3512_v63, %v3465_v10  ;;  %v4975_v23 = vpop.f32.mrb[12].mxu1  ;;  %v3534_v47 = vadd.f32 %v3527_v41, %v3526_v29  ;;  %v2789_v54 = vpop.f32.mrb[13].mxu0  ;;  %v2825_v33 = vadd.f32 %v4879_v12, %v6147_v51 }
 0x1e4   : > { %v3433_v15 = vpop.f32.mrb[13].mxu1  ;;  %v3469_v21 = vadd.f32 %v4975_v23, %v6147_v51  ;;  %v2891_v5 = vadd.f32 %v2890_v56, %v2884_v59  ;;  %v2823_v8 = vadd.f32 %v6147_v51, %v2789_v54  ;;  %v2870_v31 = vadd.f32 %v2869_v24, %v2822_v58  ;;  %v4880_v32 = vpop.f32.mrb[14].mxu0 }
 0x1e5   : > { %v3467_v13 = vadd.f32 %v6147_v51, %v3433_v15  ;;  %v3514_v16 = vadd.f32 %v3513_v14, %v3466_v7  ;;  %v4976_v35 = vpop.f32.mrb[14].mxu1  ;;  %v3535_v20 = vadd.f32 %v3534_v47, %v3528_v52  ;;  %v2826_v37 = vadd.f32 %v4880_v32, %v6147_v51  ;;  %v2792_v40 = vpop.f32.mrb[15].mxu0 }
 0x1e6   : > { %v3470_v28 = vadd.f32 %v4976_v35, %v6147_v51  ;;  %v3436_v30 = vpop.f32.mrb[15].mxu1  ;;  %v2871_v43 = vadd.f32 %v2870_v31, %v2823_v8  ;;  %v2886_v44 = vmul.f32 %v2823_v8, %v2823_v8  ;;  %v2892_v45 = vadd.f32 %v2891_v5, %v2885_v18 }
 0x1e7   : > { %v3515_v2 = vadd.f32 %v3514_v16, %v3467_v13  ;;  %v3530_v34 = vmul.f32 %v3467_v13, %v3467_v13  ;;  %v3536_v36 = vadd.f32 %v3535_v20, %v3529_v46  ;;  %v4364_v50 = vpack.c.bf16 %v2826_v37, %v2825_v33 }
 0x1e8   : > { %v4384_v9 = vpack.c.bf16 %v3470_v28, %v3469_v21  ;;  %v2893_v27 = vadd.f32 %v2892_v45, %v2886_v44  ;;  %v2824_v0 = vadd.f32 %v6147_v51, %v2792_v40  ;;  %v3468_v53 = vadd.f32 %v6147_v51, %v3436_v30 }
 0x1e9   : > { %v3537_v17 = vadd.f32 %v3536_v36, %v3530_v34  ;;  %4396 = vst [vmem:[%s6157_s25 + $0x58] sm:$0xff] %v4364_v50   ;;  %v2888_v49 = vmul.f32 %v2825_v33, %v2825_v33  ;;  %v3532_v42 = vmul.f32 %v3469_v21, %v3469_v21  ;;  %v2889_v38 = vmul.f32 %v2826_v37, %v2826_v37 }
 0x1ea   : > { %4400 = vst [vmem:[%s6157_s25 + $0x78] sm:$0xff] %v4384_v9   ;;  %v4359_v19 = vpack.c.bf16 %v2824_v0, %v2823_v8  ;;  %v2872_v10 = vadd.f32 %v2871_v43, %v2824_v0  ;;  %v2887_v26 = vmul.f32 %v2824_v0, %v2824_v0  ;;  %v4379_v6 = vpack.c.bf16 %v3468_v53, %v3467_v13 }
 0x1eb   : > { %v3516_v7 = vadd.f32 %v3515_v2, %v3468_v53  ;;  %v3531_v48 = vmul.f32 %v3468_v53, %v3468_v53  ;;  %v3533_v63 = vmul.f32 %v3470_v28, %v3470_v28 }
 0x1ec   : > { %4395 = vst [vmem:[%s6157_s25 + $0x50] sm:$0xff] %v4359_v19   ;;  %v2873_v57 = vadd.f32 %v2872_v10, %v2825_v33  ;;  %v2894_v55 = vadd.f32 %v2893_v27, %v2887_v26  ;;  %4399 = vst [vmem:[%s6157_s25 + $0x70] sm:$0xff] %v4379_v6  }
 0x1ed   : > { %v3517_v58 = vadd.f32 %v3516_v7, %v3469_v21  ;;  %v3538_v60 = vadd.f32 %v3537_v17, %v3531_v48 }
 0x1ee   : > { %v2874_v62 = vadd.f32 %v2873_v57, %v2826_v37  ;;  %v2895_v22 = vadd.f32 %v2894_v55, %v2888_v49 }
 0x1ef   : > { %v3518_v51 = vadd.f32 %v3517_v58, %v3470_v28  ;;  %v3539_v1 = vadd.f32 %v3538_v60, %v3532_v42 }
 0x1f0   : > { %v2875_v29 = vrot.slane %v2874_v62, 4  ;;  %v2896_v4 = vadd.f32 %v2895_v22, %v2889_v38 }
 0x1f1   : > { %v3519_v41 = vrot.slane %v3518_v51, 4  ;;  %v3540_v3 = vadd.f32 %v3539_v1, %v3533_v63 }
 0x1f2   : > { %v2876_v25 = vadd.f32 %v2875_v29, %v2874_v62  ;;  %v2897_v11 = vrot.slane %v2896_v4, 4 }
 0x1f3   : > { %v3520_v14 = vadd.f32 %v3519_v41, %v3518_v51  ;;  %v3541_v23 = vrot.slane %v3540_v3, 4 }
 0x1f4   : > { %v2877_v59 = vrot.slane %v2876_v25, 2  ;;  %v2898_v52 = vadd.f32 %v2897_v11, %v2896_v4 }
 0x1f5   : > { %v3521_v46 = vrot.slane %v3520_v14, 2  ;;  %v3542_v47 = vadd.f32 %v3541_v23, %v3540_v3 }
 0x1f6   : > { %v2878_v15 = vadd.f32 %v2877_v59, %v2876_v25  ;;  %v2899_v24 = vrot.slane %v2898_v52, 2 }
 0x1f7   : > { %v3522_v56 = vadd.f32 %v3521_v46, %v3520_v14  ;;  %v3543_v12 = vrot.slane %v3542_v47, 2 }
 0x1f8   : > { %v2879_v13 = vrot.slane %v2878_v15, 1  ;;  %v2900_v16 = vadd.f32 %v2899_v24, %v2898_v52 }
 0x1f9   : > { %v3523_v35 = vrot.slane %v3522_v56, 1  ;;  %v3544_v18 = vadd.f32 %v3543_v12, %v3542_v47 }
 0x1fa   : > { %v2880_v20 = vadd.f32 %v2879_v13, %v2878_v15  ;;  %v2901_v21 = vrot.slane %v2900_v16, 1 }
 0x1fb   : > { %v3545_v54 = vrot.slane %v3544_v18, 1  ;;  %v3524_v5 = vadd.f32 %v3523_v35, %v3522_v56 }
 0x1fc   : > { %v2881_v28 = vadd.f32 %v2880_v20, %v6179_v39  ;;  %v2902_v30 = vadd.f32 %v2901_v21, %v2900_v16 }
 0x1fd   : > { %v3546_v2 = vadd.f32 %v3545_v54, %v3544_v18 }
 0x1fe   : > { %v2903_v8 = vadd.f32 %v2902_v30, %v6181_v61  ;;  %v3525_v31 = vadd.f32 %v3524_v5, %v2881_v28 }
 0x200   : > { %v3547_v32 = vadd.f32 %v3546_v2, %v2903_v8  ;;  %3548 = vst [vmem:[%s302_s28] sm:$0x1] %v3525_v31 }
 0x202   : > { %3549 = vst [vmem:[%s308_s6] sm:$0x1] %v3547_v32 }
 0x203 PF: > { %s16_s20 = sadd.s32 1, %s5260_s20   ;;  %s6236_s18 = smov %s5256_s19 }
 0x204   : > { %p13_p5 = scmp.ge.s32.totalorder %s16_s20, 4   ;;  %s6237_s19 = smov %s6239_s21 }
 0x206   :  { %15 = sbr.rel (!%p13_p5) target bundleno = 2 (0x2), region = 112 }

</bundles_post_ra>
